<compile_context>
chip_gen: v7x
topology: tpu7x:2x2x1
jax: 0.10.0
libtpu: 0.0.40
codegen_flags: <defaults>
</compile_context>

<pallas_src>
import functools

import jax
import jax.numpy as jnp
from jax import lax
from jax.experimental import pallas as pl
from jax.experimental.pallas import tpu as pltpu

LANE = 128
SLOPE = 0.2          # LeakyReLU negative slope
BN_EPS = 1e-5        # PyTorch BatchNorm2d default


def _ceil_to(x, m):
    return (x + m - 1) // m * m


# ------------------------------ Pallas kernel ------------------------------ #

def _conv_kernel(p_ref, w_ref, b_ref, o_ref, *stat_refs, act_slope, emit_stats):
    """(tm, K) @ (K, Cp) whole-K matmul tile, straight-line (no pl.when).

    Fused epilogue on the f32 accumulator: bias add, optional LeakyReLU,
    optional per-channel sum / sum-of-squares partials for the following
    BatchNorm, then the (lane-dense, Cp = multiple of 128) store.
    """
    y = jnp.dot(p_ref[...], w_ref[...], preferred_element_type=jnp.float32)
    y = y + b_ref[...]
    if act_slope is not None:
        y = jnp.where(y > 0, y, act_slope * y)
    if emit_stats:
        ssum_ref, ssq_ref = stat_refs
        ssum_ref[...] = jnp.sum(y, axis=0, keepdims=True).reshape(1, 1, -1)
        ssq_ref[...] = jnp.sum(y * y, axis=0, keepdims=True).reshape(1, 1, -1)
    o_ref[...] = y.astype(o_ref.dtype)


# ------------------------------ JAX wrappers ------------------------------- #

def _pick_tm(m):
    """Largest tile <= 512 that divides M exactly, preferring >= 2 tiles
    (megacore) when M is big enough.  Falls back to a full-M block."""
    if m % 8 != 0 or m <= 16:
        return m
    tm = min(512, m // 2)
    tm -= tm % 8
    while m % tm:
        tm -= 8
    return max(tm, 8)


def _conv_matmul(patches, w_kc, bias, *, act_slope=None, emit_stats=False,
                 out_dtype=jnp.float32):
    """patches (M, K) bf16 @ w_kc (K, Cp) bf16 (+bias, +act, +BN partials)."""
    M, K = patches.shape
    Kw, Cp = w_kc.shape
    assert K == Kw, (K, Kw)

    tm = _pick_tm(M)
    grid_m = M // tm

    kernel = functools.partial(_conv_kernel, act_slope=act_slope,
                               emit_stats=emit_stats)

    out_shapes = [jax.ShapeDtypeStruct((M, Cp), out_dtype)]
    out_specs = [pl.BlockSpec((tm, Cp), lambda i: (i, 0))]
    if emit_stats:
        out_shapes += [jax.ShapeDtypeStruct((grid_m, 1, Cp), jnp.float32)] * 2
        out_specs += [pl.BlockSpec((1, 1, Cp), lambda i: (i, 0, 0))] * 2

    return pl.pallas_call(
        kernel,
        out_shape=tuple(out_shapes),
        grid=(grid_m,),
        in_specs=[
            pl.BlockSpec((tm, K), lambda i: (i, 0)),   # patches
            pl.BlockSpec((K, Cp), lambda i: (0, 0)),   # weights (resident)
            pl.BlockSpec((1, Cp), lambda i: (0, 0)),   # bias
        ],
        out_specs=tuple(out_specs),
        compiler_params=pltpu.CompilerParams(
            dimension_semantics=("parallel",)),
    )(patches, w_kc, bias)


def _im2col(x, kh, kw, stride, pad, k_pad_to=0):
    """NHWC x -> (N*OH*OW, kh*kw*C) bf16 patches, (kh, kw, c) K-order.

    kh*kw static strided slices + one concat; XLA fuses this with the
    preceding BN-apply/LeakyReLU elementwise and the spatial pad.
    """
    N, H, W, C = x.shape
    if pad:
        x = jnp.pad(x, ((0, 0), (pad, pad), (pad, pad), (0, 0)))
    Hp, Wp = H + 2 * pad, W + 2 * pad
    OH = (Hp - kh) // stride + 1
    OW = (Wp - kw) // stride + 1
    taps = []
    for i in range(kh):
        for j in range(kw):
            taps.append(lax.slice(
                x,
                (0, i, j, 0),
                (N, i + (OH - 1) * stride + 1, j + (OW - 1) * stride + 1, C),
                (1, stride, stride, 1)))
    p = jnp.concatenate(taps, axis=-1).reshape(N * OH * OW, kh * kw * C)
    if k_pad_to > p.shape[1]:
        p = jnp.pad(p, ((0, 0), (0, k_pad_to - p.shape[1])))
    return p.astype(jnp.bfloat16), OH, OW


def _bn_leaky(z, ssum, ssq, gamma, beta, cout):
    """Finalize batch stats from kernel partials, apply affine + LeakyReLU.

    Tiny (1, C) math + one elementwise pass; fuses into the next patch build.
    Training-mode BatchNorm2d semantics (biased batch variance).
    """
    m = float(z.shape[0])
    mean = jnp.sum(ssum, axis=0) / m                              # (1, Cp)
    var = jnp.maximum(jnp.sum(ssq, axis=0) / m - mean * mean, 0.0)
    scale = gamma[None, :] * lax.rsqrt(var + BN_EPS)
    shift = beta[None, :] - mean * scale
    a = z[:, :cout] * scale[:, :cout] + shift[:, :cout]
    return jnp.where(a > 0, a, SLOPE * a)


# ------------------------------ Discriminator ------------------------------ #

def init_params(key, hidden_size):
    """Random PyTorch-layout conv params, pre-reshaped for the kernels.

    Weights: (KH*KW*Cin, Cout_pad) bf16 with (kh, kw, c) K-ordering (matching
    _im2col).  Only Cout is padded (to 128); conv1's K is padded 75 -> 80.
    Padded columns are zero so padded output channels stay exactly zero.
    """
    Hh = hidden_size
    convs = [
        (3, Hh, 5, 80),            # conv1: 3 -> H,   k5 s3 p1 (K 75 -> 80)
        (Hh, 2 * Hh, 4, None),     # conv2
        (2 * Hh, 4 * Hh, 4, None),  # conv3
        (4 * Hh, 8 * Hh, 4, None),  # conv4
        (8 * Hh, 1, 4, None),      # conv5: 8H -> 1,  k4 s1 p0
    ]
    params = {}
    keys = jax.random.split(key, 2 * len(convs))
    for i, (cin, cout, k, kpad) in enumerate(convs):
        cp = _ceil_to(cout, LANE)
        w = 0.02 * jax.random.normal(keys[2 * i], (cout, cin, k, k), jnp.float32)
        b = 0.02 * jax.random.normal(keys[2 * i + 1], (cout,), jnp.float32)
        K = k * k * cin
        wt = jnp.transpose(w, (2, 3, 1, 0)).reshape(K, cout)       # (K, Cout)
        kp = kpad if kpad else K
        wt = jnp.pad(wt, ((0, kp - K), (0, cp - cout)))
        params[f"w{i + 1}"] = wt.astype(jnp.bfloat16)
        params[f"b{i + 1}"] = jnp.pad(b, (0, cp - cout)).reshape(1, cp)
    # BatchNorm affine params (PyTorch defaults: weight=1, bias=0), channel-padded.
    for idx, c in ((2, 2 * Hh), (3, 4 * Hh), (4, 8 * Hh)):
        cp = _ceil_to(c, LANE)
        params[f"g{idx}"] = jnp.pad(jnp.ones((c,), jnp.float32), (0, cp - c))
        params[f"be{idx}"] = jnp.zeros((cp,), jnp.float32)
    return params


def discriminator_forward(x, params, *, hidden_size):
    """x: (N, 3, H, W) float32 NCHW (PyTorch convention) -> flat f32 vector."""
    Hh = hidden_size
    N = x.shape[0]
    # Single entry transpose to NHWC; activations stay NHWC / (M, C) after this.
    x = jnp.transpose(x, (0, 2, 3, 1))

    # block 1: conv(3 -> H, k5 s3 p1) + LeakyReLU(0.2) fused in the kernel.
    p, OH, OW = _im2col(x, 5, 5, 3, 1, k_pad_to=80)
    (z1,) = _conv_matmul(p, params["w1"], params["b1"], act_slope=SLOPE)
    a = z1[:, :Hh].reshape(N, OH, OW, Hh)

    # blocks 2-4: conv(k4 s2 p1) -> BatchNorm(batch stats) -> LeakyReLU(0.2).
    # Stats come out of the conv epilogue; apply fuses into the next patch build.
    for idx, cout in ((2, 2 * Hh), (3, 4 * Hh), (4, 8 * Hh)):
        p, OH, OW = _im2col(a, 4, 4, 2, 1)
        z, ssum, ssq = _conv_matmul(p, params[f"w{idx}"], params[f"b{idx}"],
                                    emit_stats=True)
        a = _bn_leaky(z, ssum, ssq, params[f"g{idx}"], params[f"be{idx}"], cout)
        a = a.reshape(N, OH, OW, cout)

    # block 5: conv(8H -> 1, k4 s1 p0), no activation; real Cout == 1.
    p, OH, OW = _im2col(a, 4, 4, 1, 0)
    (z5,) = _conv_matmul(p, params["w5"], params["b5"])
    return z5[:, 0].reshape(-1)    # matches PyTorch .view(-1)


if __name__ == "__main__":
    key = jax.random.PRNGKey(0)
    k_x, k_p = jax.random.split(key)

    hidden_size = 32
    batch = 2
    # 96x96 is the minimal spatial size for which the final 4x4 valid conv
    # produces a 1x1 map (one scalar per image).
    x = jax.random.normal(k_x, (batch, 3, 96, 96), jnp.float32)
    params = init_params(k_p, hidden_size)

    fwd = jax.jit(functools.partial(discriminator_forward,
                                    hidden_size=hidden_size))
    out = jax.block_until_ready(fwd(x, params))

    assert out.shape == (batch,), out.shape
    assert bool(jnp.all(jnp.isfinite(out)))
    print("KERNEL_OK")
</pallas_src>

<mosaic_0001>
module attributes {stable_mosaic.version = 11 : i64} {
  func.func @_conv_kernel(%arg0: i32, %arg1: memref<512x80xbf16, #tpu.memory_space<vmem>>, %arg2: memref<80x128xbf16, #tpu.memory_space<vmem>>, %arg3: memref<1x128xf32, #tpu.memory_space<vmem>>, %arg4: memref<512x128xf32, #tpu.memory_space<vmem>>) attributes {dimension_semantics = [#tpu.dimension_semantics<parallel>], iteration_bounds = array<i64: 4>, scalar_prefetch = 0 : i64, scratch_operands = 0 : i64, tpu.core_type = #tpu.core_type<tc>, window_params = [{transform_indices = @transform_0, window_bounds = array<i64: 512, 80>}, {pipeline_mode = #tpu.pipeline_mode<synchronous>, transform_indices = @transform_1, window_bounds = array<i64: 80, 128>}, {pipeline_mode = #tpu.pipeline_mode<synchronous>, transform_indices = @transform_2, window_bounds = array<i64: 1, 128>}, {transform_indices = @transform_3, window_bounds = array<i64: 512, 128>}]} {
    %c0 = arith.constant 0 : index
    %c0_0 = arith.constant 0 : index
    %0 = vector.load %arg1[%c0, %c0_0] : memref<512x80xbf16, #tpu.memory_space<vmem>>, vector<512x80xbf16>
    %c0_1 = arith.constant 0 : index
    %c0_2 = arith.constant 0 : index
    %1 = vector.load %arg2[%c0_1, %c0_2] : memref<80x128xbf16, #tpu.memory_space<vmem>>, vector<80x128xbf16>
    %cst = arith.constant dense<0.000000e+00> : vector<512x128xf32>
    %2 = tpu.matmul %0, %1, %cst {dimension_numbers = #tpu.dot_dimension_numbers<[1], [0], [0], [1], [0, 0, 1, 1], [], []>} : vector<512x80xbf16>, vector<80x128xbf16>, vector<512x128xf32> -> vector<512x128xf32>
    %c0_3 = arith.constant 0 : index
    %c0_4 = arith.constant 0 : index
    %3 = vector.load %arg3[%c0_3, %c0_4] : memref<1x128xf32, #tpu.memory_space<vmem>>, vector<1x128xf32>
    %4 = vector.broadcast %3 : vector<1x128xf32> to vector<512x128xf32>
    %5 = arith.addf %2, %4 : vector<512x128xf32>
    %cst_5 = arith.constant 0.000000e+00 : f32
    %6 = vector.broadcast %cst_5 : f32 to vector<512x128xf32>
    %7 = arith.cmpf ogt, %5, %6 : vector<512x128xf32>
    %cst_6 = arith.constant 2.000000e-01 : f32
    %8 = vector.broadcast %cst_6 : f32 to vector<512x128xf32>
    %9 = arith.mulf %8, %5 : vector<512x128xf32>
    %10 = arith.select %7, %5, %9 : vector<512x128xi1>, vector<512x128xf32>
    %c0_7 = arith.constant 0 : index
    %c0_8 = arith.constant 0 : index
    %11 = vector.load %arg4[%c0_7, %c0_8] : memref<512x128xf32, #tpu.memory_space<vmem>>, vector<512x128xf32>
    tpu.vector_store %arg4[%c0_7, %c0_8], %10 {strides = array<i32>} : memref<512x128xf32, #tpu.memory_space<vmem>>, vector<512x128xf32>,
    return
  }
  func.func @transform_0(%arg0: i32) -> (i32, i32) {
    %c0_i32 = arith.constant 0 : i32
    %c0_i32_0 = arith.constant 0 : i32
    return %arg0, %c0_i32 : i32, i32
  }
  func.func @transform_1(%arg0: i32) -> (i32, i32) {
    %c0_i32 = arith.constant 0 : i32
    %c0_i32_0 = arith.constant 0 : i32
    %c0_i32_1 = arith.constant 0 : i32
    return %c0_i32, %c0_i32_0 : i32, i32
  }
  func.func @transform_2(%arg0: i32) -> (i32, i32) {
    %c0_i32 = arith.constant 0 : i32
    %c0_i32_0 = arith.constant 0 : i32
    %c0_i32_1 = arith.constant 0 : i32
    return %c0_i32, %c0_i32_0 : i32, i32
  }
  func.func @transform_3(%arg0: i32) -> (i32, i32) {
    %c0_i32 = arith.constant 0 : i32
    %c0_i32_0 = arith.constant 0 : i32
    return %arg0, %c0_i32 : i32, i32
  }
}

module attributes {stable_mosaic.version = 11 : i64} {
  func.func @_conv_kernel(%arg0: i32, %arg1: memref<256x512xbf16, #tpu.memory_space<vmem>>, %arg2: memref<512x128xbf16, #tpu.memory_space<vmem>>, %arg3: memref<1x128xf32, #tpu.memory_space<vmem>>, %arg4: memref<256x128xf32, #tpu.memory_space<vmem>>, %arg5: memref<1x1x128xf32, #tpu.memory_space<vmem>>, %arg6: memref<1x1x128xf32, #tpu.memory_space<vmem>>) attributes {dimension_semantics = [#tpu.dimension_semantics<parallel>], iteration_bounds = array<i64: 2>, scalar_prefetch = 0 : i64, scratch_operands = 0 : i64, tpu.core_type = #tpu.core_type<tc>, window_params = [{transform_indices = @transform_0, window_bounds = array<i64: 256, 512>}, {pipeline_mode = #tpu.pipeline_mode<synchronous>, transform_indices = @transform_1, window_bounds = array<i64: 512, 128>}, {pipeline_mode = #tpu.pipeline_mode<synchronous>, transform_indices = @transform_2, window_bounds = array<i64: 1, 128>}, {transform_indices = @transform_3, window_bounds = array<i64: 256, 128>}, {transform_indices = @transform_4, window_bounds = array<i64: 1, 1, 128>}, {transform_indices = @transform_5, window_bounds = array<i64: 1, 1, 128>}]} {
    %c0 = arith.constant 0 : index
    %c0_0 = arith.constant 0 : index
    %0 = vector.load %arg1[%c0, %c0_0] : memref<256x512xbf16, #tpu.memory_space<vmem>>, vector<256x512xbf16>
    %c0_1 = arith.constant 0 : index
    %c0_2 = arith.constant 0 : index
    %1 = vector.load %arg2[%c0_1, %c0_2] : memref<512x128xbf16, #tpu.memory_space<vmem>>, vector<512x128xbf16>
    %cst = arith.constant dense<0.000000e+00> : vector<256x128xf32>
    %2 = tpu.matmul %0, %1, %cst {dimension_numbers = #tpu.dot_dimension_numbers<[1], [0], [0], [1], [0, 0, 1, 1], [], []>} : vector<256x512xbf16>, vector<512x128xbf16>, vector<256x128xf32> -> vector<256x128xf32>
    %c0_3 = arith.constant 0 : index
    %c0_4 = arith.constant 0 : index
    %3 = vector.load %arg3[%c0_3, %c0_4] : memref<1x128xf32, #tpu.memory_space<vmem>>, vector<1x128xf32>
    %4 = vector.broadcast %3 : vector<1x128xf32> to vector<256x128xf32>
    %5 = arith.addf %2, %4 : vector<256x128xf32>
    %cst_5 = arith.constant dense<0.000000e+00> : vector<128xf32>
    %6 = vector.multi_reduction <add>, %5, %cst_5 [0] : vector<256x128xf32> to vector<128xf32>
    %7 = vector.shape_cast %6 : vector<128xf32> to vector<1x128xf32>
    %8 = vector.shape_cast %7 : vector<1x128xf32> to vector<1x1x128xf32>
    %c0_6 = arith.constant 0 : index
    %c0_7 = arith.constant 0 : index
    %c0_8 = arith.constant 0 : index
    %9 = vector.load %arg5[%c0_6, %c0_7, %c0_8] : memref<1x1x128xf32, #tpu.memory_space<vmem>>, vector<1x1x128xf32>
    tpu.vector_store %arg5[%c0_6, %c0_7, %c0_8], %8 {strides = array<i32>} : memref<1x1x128xf32, #tpu.memory_space<vmem>>, vector<1x1x128xf32>,
    %10 = arith.mulf %5, %5 : vector<256x128xf32>
    %cst_9 = arith.constant dense<0.000000e+00> : vector<128xf32>
    %11 = vector.multi_reduction <add>, %10, %cst_9 [0] : vector<256x128xf32> to vector<128xf32>
    %12 = vector.shape_cast %11 : vector<128xf32> to vector<1x128xf32>
    %13 = vector.shape_cast %12 : vector<1x128xf32> to vector<1x1x128xf32>
    %c0_10 = arith.constant 0 : index
    %c0_11 = arith.constant 0 : index
    %c0_12 = arith.constant 0 : index
    %14 = vector.load %arg6[%c0_10, %c0_11, %c0_12] : memref<1x1x128xf32, #tpu.memory_space<vmem>>, vector<1x1x128xf32>
    tpu.vector_store %arg6[%c0_10, %c0_11, %c0_12], %13 {strides = array<i32>} : memref<1x1x128xf32, #tpu.memory_space<vmem>>, vector<1x1x128xf32>,
    %c0_13 = arith.constant 0 : index
    %c0_14 = arith.constant 0 : index
    %15 = vector.load %arg4[%c0_13, %c0_14] : memref<256x128xf32, #tpu.memory_space<vmem>>, vector<256x128xf32>
    tpu.vector_store %arg4[%c0_13, %c0_14], %5 {strides = array<i32>} : memref<256x128xf32, #tpu.memory_space<vmem>>, vector<256x128xf32>,
    return
  }
  func.func @transform_0(%arg0: i32) -> (i32, i32) {
    %c0_i32 = arith.constant 0 : i32
    %c0_i32_0 = arith.constant 0 : i32
    return %arg0, %c0_i32 : i32, i32
  }
  func.func @transform_1(%arg0: i32) -> (i32, i32) {
    %c0_i32 = arith.constant 0 : i32
    %c0_i32_0 = arith.constant 0 : i32
    %c0_i32_1 = arith.constant 0 : i32
    return %c0_i32, %c0_i32_0 : i32, i32
  }
  func.func @transform_2(%arg0: i32) -> (i32, i32) {
    %c0_i32 = arith.constant 0 : i32
    %c0_i32_0 = arith.constant 0 : i32
    %c0_i32_1 = arith.constant 0 : i32
    return %c0_i32, %c0_i32_0 : i32, i32
  }
  func.func @transform_3(%arg0: i32) -> (i32, i32) {
    %c0_i32 = arith.constant 0 : i32
    %c0_i32_0 = arith.constant 0 : i32
    return %arg0, %c0_i32 : i32, i32
  }
  func.func @transform_4(%arg0: i32) -> (i32, i32, i32) {
    %c0_i32 = arith.constant 0 : i32
    %c0_i32_0 = arith.constant 0 : i32
    %c0_i32_1 = arith.constant 0 : i32
    return %arg0, %c0_i32, %c0_i32_0 : i32, i32, i32
  }
  func.func @transform_5(%arg0: i32) -> (i32, i32, i32) {
    %c0_i32 = arith.constant 0 : i32
    %c0_i32_0 = arith.constant 0 : i32
    %c0_i32_1 = arith.constant 0 : i32
    return %arg0, %c0_i32, %c0_i32_0 : i32, i32, i32
  }
}

module attributes {stable_mosaic.version = 11 : i64} {
  func.func @_conv_kernel(%arg0: i32, %arg1: memref<64x1024xbf16, #tpu.memory_space<vmem>>, %arg2: memref<1024x128xbf16, #tpu.memory_space<vmem>>, %arg3: memref<1x128xf32, #tpu.memory_space<vmem>>, %arg4: memref<64x128xf32, #tpu.memory_space<vmem>>, %arg5: memref<1x1x128xf32, #tpu.memory_space<vmem>>, %arg6: memref<1x1x128xf32, #tpu.memory_space<vmem>>) attributes {dimension_semantics = [#tpu.dimension_semantics<parallel>], iteration_bounds = array<i64: 2>, scalar_prefetch = 0 : i64, scratch_operands = 0 : i64, tpu.core_type = #tpu.core_type<tc>, window_params = [{transform_indices = @transform_0, window_bounds = array<i64: 64, 1024>}, {pipeline_mode = #tpu.pipeline_mode<synchronous>, transform_indices = @transform_1, window_bounds = array<i64: 1024, 128>}, {pipeline_mode = #tpu.pipeline_mode<synchronous>, transform_indices = @transform_2, window_bounds = array<i64: 1, 128>}, {transform_indices = @transform_3, window_bounds = array<i64: 64, 128>}, {transform_indices = @transform_4, window_bounds = array<i64: 1, 1, 128>}, {transform_indices = @transform_5, window_bounds = array<i64: 1, 1, 128>}]} {
    %c0 = arith.constant 0 : index
    %c0_0 = arith.constant 0 : index
    %0 = vector.load %arg1[%c0, %c0_0] : memref<64x1024xbf16, #tpu.memory_space<vmem>>, vector<64x1024xbf16>
    %c0_1 = arith.constant 0 : index
    %c0_2 = arith.constant 0 : index
    %1 = vector.load %arg2[%c0_1, %c0_2] : memref<1024x128xbf16, #tpu.memory_space<vmem>>, vector<1024x128xbf16>
    %cst = arith.constant dense<0.000000e+00> : vector<64x128xf32>
    %2 = tpu.matmul %0, %1, %cst {dimension_numbers = #tpu.dot_dimension_numbers<[1], [0], [0], [1], [0, 0, 1, 1], [], []>} : vector<64x1024xbf16>, vector<1024x128xbf16>, vector<64x128xf32> -> vector<64x128xf32>
    %c0_3 = arith.constant 0 : index
    %c0_4 = arith.constant 0 : index
    %3 = vector.load %arg3[%c0_3, %c0_4] : memref<1x128xf32, #tpu.memory_space<vmem>>, vector<1x128xf32>
    %4 = vector.broadcast %3 : vector<1x128xf32> to vector<64x128xf32>
    %5 = arith.addf %2, %4 : vector<64x128xf32>
    %cst_5 = arith.constant dense<0.000000e+00> : vector<128xf32>
    %6 = vector.multi_reduction <add>, %5, %cst_5 [0] : vector<64x128xf32> to vector<128xf32>
    %7 = vector.shape_cast %6 : vector<128xf32> to vector<1x128xf32>
    %8 = vector.shape_cast %7 : vector<1x128xf32> to vector<1x1x128xf32>
    %c0_6 = arith.constant 0 : index
    %c0_7 = arith.constant 0 : index
    %c0_8 = arith.constant 0 : index
    %9 = vector.load %arg5[%c0_6, %c0_7, %c0_8] : memref<1x1x128xf32, #tpu.memory_space<vmem>>, vector<1x1x128xf32>
    tpu.vector_store %arg5[%c0_6, %c0_7, %c0_8], %8 {strides = array<i32>} : memref<1x1x128xf32, #tpu.memory_space<vmem>>, vector<1x1x128xf32>,
    %10 = arith.mulf %5, %5 : vector<64x128xf32>
    %cst_9 = arith.constant dense<0.000000e+00> : vector<128xf32>
    %11 = vector.multi_reduction <add>, %10, %cst_9 [0] : vector<64x128xf32> to vector<128xf32>
    %12 = vector.shape_cast %11 : vector<128xf32> to vector<1x128xf32>
    %13 = vector.shape_cast %12 : vector<1x128xf32> to vector<1x1x128xf32>
    %c0_10 = arith.constant 0 : index
    %c0_11 = arith.constant 0 : index
    %c0_12 = arith.constant 0 : index
    %14 = vector.load %arg6[%c0_10, %c0_11, %c0_12] : memref<1x1x128xf32, #tpu.memory_space<vmem>>, vector<1x1x128xf32>
    tpu.vector_store %arg6[%c0_10, %c0_11, %c0_12], %13 {strides = array<i32>} : memref<1x1x128xf32, #tpu.memory_space<vmem>>, vector<1x1x128xf32>,
    %c0_13 = arith.constant 0 : index
    %c0_14 = arith.constant 0 : index
    %15 = vector.load %arg4[%c0_13, %c0_14] : memref<64x128xf32, #tpu.memory_space<vmem>>, vector<64x128xf32>
    tpu.vector_store %arg4[%c0_13, %c0_14], %5 {strides = array<i32>} : memref<64x128xf32, #tpu.memory_space<vmem>>, vector<64x128xf32>,
    return
  }
  func.func @transform_0(%arg0: i32) -> (i32, i32) {
    %c0_i32 = arith.constant 0 : i32
    %c0_i32_0 = arith.constant 0 : i32
    return %arg0, %c0_i32 : i32, i32
  }
  func.func @transform_1(%arg0: i32) -> (i32, i32) {
    %c0_i32 = arith.constant 0 : i32
    %c0_i32_0 = arith.constant 0 : i32
    %c0_i32_1 = arith.constant 0 : i32
    return %c0_i32, %c0_i32_0 : i32, i32
  }
  func.func @transform_2(%arg0: i32) -> (i32, i32) {
    %c0_i32 = arith.constant 0 : i32
    %c0_i32_0 = arith.constant 0 : i32
    %c0_i32_1 = arith.constant 0 : i32
    return %c0_i32, %c0_i32_0 : i32, i32
  }
  func.func @transform_3(%arg0: i32) -> (i32, i32) {
    %c0_i32 = arith.constant 0 : i32
    %c0_i32_0 = arith.constant 0 : i32
    return %arg0, %c0_i32 : i32, i32
  }
  func.func @transform_4(%arg0: i32) -> (i32, i32, i32) {
    %c0_i32 = arith.constant 0 : i32
    %c0_i32_0 = arith.constant 0 : i32
    %c0_i32_1 = arith.constant 0 : i32
    return %arg0, %c0_i32, %c0_i32_0 : i32, i32, i32
  }
  func.func @transform_5(%arg0: i32) -> (i32, i32, i32) {
    %c0_i32 = arith.constant 0 : i32
    %c0_i32_0 = arith.constant 0 : i32
    %c0_i32_1 = arith.constant 0 : i32
    return %arg0, %c0_i32, %c0_i32_0 : i32, i32, i32
  }
}

module attributes {stable_mosaic.version = 11 : i64} {
  func.func @_conv_kernel(%arg0: i32, %arg1: memref<16x2048xbf16, #tpu.memory_space<vmem>>, %arg2: memref<2048x256xbf16, #tpu.memory_space<vmem>>, %arg3: memref<1x256xf32, #tpu.memory_space<vmem>>, %arg4: memref<16x256xf32, #tpu.memory_space<vmem>>, %arg5: memref<1x1x256xf32, #tpu.memory_space<vmem>>, %arg6: memref<1x1x256xf32, #tpu.memory_space<vmem>>) attributes {dimension_semantics = [#tpu.dimension_semantics<parallel>], iteration_bounds = array<i64: 2>, scalar_prefetch = 0 : i64, scratch_operands = 0 : i64, tpu.core_type = #tpu.core_type<tc>, window_params = [{transform_indices = @transform_0, window_bounds = array<i64: 16, 2048>}, {pipeline_mode = #tpu.pipeline_mode<synchronous>, transform_indices = @transform_1, window_bounds = array<i64: 2048, 256>}, {pipeline_mode = #tpu.pipeline_mode<synchronous>, transform_indices = @transform_2, window_bounds = array<i64: 1, 256>}, {transform_indices = @transform_3, window_bounds = array<i64: 16, 256>}, {transform_indices = @transform_4, window_bounds = array<i64: 1, 1, 256>}, {transform_indices = @transform_5, window_bounds = array<i64: 1, 1, 256>}]} {
    %c0 = arith.constant 0 : index
    %c0_0 = arith.constant 0 : index
    %0 = vector.load %arg1[%c0, %c0_0] : memref<16x2048xbf16, #tpu.memory_space<vmem>>, vector<16x2048xbf16>
    %c0_1 = arith.constant 0 : index
    %c0_2 = arith.constant 0 : index
    %1 = vector.load %arg2[%c0_1, %c0_2] : memref<2048x256xbf16, #tpu.memory_space<vmem>>, vector<2048x256xbf16>
    %cst = arith.constant dense<0.000000e+00> : vector<16x256xf32>
    %2 = tpu.matmul %0, %1, %cst {dimension_numbers = #tpu.dot_dimension_numbers<[1], [0], [0], [1], [0, 0, 1, 1], [], []>} : vector<16x2048xbf16>, vector<2048x256xbf16>, vector<16x256xf32> -> vector<16x256xf32>
    %c0_3 = arith.constant 0 : index
    %c0_4 = arith.constant 0 : index
    %3 = vector.load %arg3[%c0_3, %c0_4] : memref<1x256xf32, #tpu.memory_space<vmem>>, vector<1x256xf32>
    %4 = vector.broadcast %3 : vector<1x256xf32> to vector<16x256xf32>
    %5 = arith.addf %2, %4 : vector<16x256xf32>
    %cst_5 = arith.constant dense<0.000000e+00> : vector<256xf32>
    %6 = vector.multi_reduction <add>, %5, %cst_5 [0] : vector<16x256xf32> to vector<256xf32>
    %7 = vector.shape_cast %6 : vector<256xf32> to vector<1x256xf32>
    %8 = vector.shape_cast %7 : vector<1x256xf32> to vector<1x1x256xf32>
    %c0_6 = arith.constant 0 : index
    %c0_7 = arith.constant 0 : index
    %c0_8 = arith.constant 0 : index
    %9 = vector.load %arg5[%c0_6, %c0_7, %c0_8] : memref<1x1x256xf32, #tpu.memory_space<vmem>>, vector<1x1x256xf32>
    tpu.vector_store %arg5[%c0_6, %c0_7, %c0_8], %8 {strides = array<i32>} : memref<1x1x256xf32, #tpu.memory_space<vmem>>, vector<1x1x256xf32>,
    %10 = arith.mulf %5, %5 : vector<16x256xf32>
    %cst_9 = arith.constant dense<0.000000e+00> : vector<256xf32>
    %11 = vector.multi_reduction <add>, %10, %cst_9 [0] : vector<16x256xf32> to vector<256xf32>
    %12 = vector.shape_cast %11 : vector<256xf32> to vector<1x256xf32>
    %13 = vector.shape_cast %12 : vector<1x256xf32> to vector<1x1x256xf32>
    %c0_10 = arith.constant 0 : index
    %c0_11 = arith.constant 0 : index
    %c0_12 = arith.constant 0 : index
    %14 = vector.load %arg6[%c0_10, %c0_11, %c0_12] : memref<1x1x256xf32, #tpu.memory_space<vmem>>, vector<1x1x256xf32>
    tpu.vector_store %arg6[%c0_10, %c0_11, %c0_12], %13 {strides = array<i32>} : memref<1x1x256xf32, #tpu.memory_space<vmem>>, vector<1x1x256xf32>,
    %c0_13 = arith.constant 0 : index
    %c0_14 = arith.constant 0 : index
    %15 = vector.load %arg4[%c0_13, %c0_14] : memref<16x256xf32, #tpu.memory_space<vmem>>, vector<16x256xf32>
    tpu.vector_store %arg4[%c0_13, %c0_14], %5 {strides = array<i32>} : memref<16x256xf32, #tpu.memory_space<vmem>>, vector<16x256xf32>,
    return
  }
  func.func @transform_0(%arg0: i32) -> (i32, i32) {
    %c0_i32 = arith.constant 0 : i32
    %c0_i32_0 = arith.constant 0 : i32
    return %arg0, %c0_i32 : i32, i32
  }
  func.func @transform_1(%arg0: i32) -> (i32, i32) {
    %c0_i32 = arith.constant 0 : i32
    %c0_i32_0 = arith.constant 0 : i32
    %c0_i32_1 = arith.constant 0 : i32
    return %c0_i32, %c0_i32_0 : i32, i32
  }
  func.func @transform_2(%arg0: i32) -> (i32, i32) {
    %c0_i32 = arith.constant 0 : i32
    %c0_i32_0 = arith.constant 0 : i32
    %c0_i32_1 = arith.constant 0 : i32
    return %c0_i32, %c0_i32_0 : i32, i32
  }
  func.func @transform_3(%arg0: i32) -> (i32, i32) {
    %c0_i32 = arith.constant 0 : i32
    %c0_i32_0 = arith.constant 0 : i32
    return %arg0, %c0_i32 : i32, i32
  }
  func.func @transform_4(%arg0: i32) -> (i32, i32, i32) {
    %c0_i32 = arith.constant 0 : i32
    %c0_i32_0 = arith.constant 0 : i32
    %c0_i32_1 = arith.constant 0 : i32
    return %arg0, %c0_i32, %c0_i32_0 : i32, i32, i32
  }
  func.func @transform_5(%arg0: i32) -> (i32, i32, i32) {
    %c0_i32 = arith.constant 0 : i32
    %c0_i32_0 = arith.constant 0 : i32
    %c0_i32_1 = arith.constant 0 : i32
    return %arg0, %c0_i32, %c0_i32_0 : i32, i32, i32
  }
}

module attributes {stable_mosaic.version = 11 : i64} {
  func.func @_conv_kernel(%arg0: i32, %arg1: memref<2x4096xbf16, #tpu.memory_space<vmem>>, %arg2: memref<4096x128xbf16, #tpu.memory_space<vmem>>, %arg3: memref<1x128xf32, #tpu.memory_space<vmem>>, %arg4: memref<2x128xf32, #tpu.memory_space<vmem>>) attributes {dimension_semantics = [#tpu.dimension_semantics<parallel>], iteration_bounds = array<i64: 1>, scalar_prefetch = 0 : i64, scratch_operands = 0 : i64, tpu.core_type = #tpu.core_type<tc>, window_params = [{transform_indices = @transform_0, window_bounds = array<i64: 2, 4096>}, {pipeline_mode = #tpu.pipeline_mode<synchronous>, transform_indices = @transform_1, window_bounds = array<i64: 4096, 128>}, {pipeline_mode = #tpu.pipeline_mode<synchronous>, transform_indices = @transform_2, window_bounds = array<i64: 1, 128>}, {transform_indices = @transform_3, window_bounds = array<i64: 2, 128>}]} {
    %c0 = arith.constant 0 : index
    %c0_0 = arith.constant 0 : index
    %0 = vector.load %arg1[%c0, %c0_0] : memref<2x4096xbf16, #tpu.memory_space<vmem>>, vector<2x4096xbf16>
    %c0_1 = arith.constant 0 : index
    %c0_2 = arith.constant 0 : index
    %1 = vector.load %arg2[%c0_1, %c0_2] : memref<4096x128xbf16, #tpu.memory_space<vmem>>, vector<4096x128xbf16>
    %cst = arith.constant dense<0.000000e+00> : vector<2x128xf32>
    %2 = tpu.matmul %0, %1, %cst {dimension_numbers = #tpu.dot_dimension_numbers<[1], [0], [0], [1], [0, 0, 1, 1], [], []>} : vector<2x4096xbf16>, vector<4096x128xbf16>, vector<2x128xf32> -> vector<2x128xf32>
    %c0_3 = arith.constant 0 : index
    %c0_4 = arith.constant 0 : index
    %3 = vector.load %arg3[%c0_3, %c0_4] : memref<1x128xf32, #tpu.memory_space<vmem>>, vector<1x128xf32>
    %4 = vector.broadcast %3 : vector<1x128xf32> to vector<2x128xf32>
    %5 = arith.addf %2, %4 : vector<2x128xf32>
    %c0_5 = arith.constant 0 : index
    %c0_6 = arith.constant 0 : index
    %6 = vector.load %arg4[%c0_5, %c0_6] : memref<2x128xf32, #tpu.memory_space<vmem>>, vector<2x128xf32>
    tpu.vector_store %arg4[%c0_5, %c0_6], %5 {strides = array<i32>} : memref<2x128xf32, #tpu.memory_space<vmem>>, vector<2x128xf32>,
    return
  }
  func.func @transform_0(%arg0: i32) -> (i32, i32) {
    %c0_i32 = arith.constant 0 : i32
    %c0_i32_0 = arith.constant 0 : i32
    return %arg0, %c0_i32 : i32, i32
  }
  func.func @transform_1(%arg0: i32) -> (i32, i32) {
    %c0_i32 = arith.constant 0 : i32
    %c0_i32_0 = arith.constant 0 : i32
    %c0_i32_1 = arith.constant 0 : i32
    return %c0_i32, %c0_i32_0 : i32, i32
  }
  func.func @transform_2(%arg0: i32) -> (i32, i32) {
    %c0_i32 = arith.constant 0 : i32
    %c0_i32_0 = arith.constant 0 : i32
    %c0_i32_1 = arith.constant 0 : i32
    return %c0_i32, %c0_i32_0 : i32, i32
  }
  func.func @transform_3(%arg0: i32) -> (i32, i32) {
    %c0_i32 = arith.constant 0 : i32
    %c0_i32_0 = arith.constant 0 : i32
    return %arg0, %c0_i32 : i32, i32
  }
}

</mosaic_0001>

<bundles_post_ra>
// kernel: discriminator_forward.5
= control target key start
LH: loop header
LB: loop body
LE: loop exit
PB: predicated region body
PF: predicated region fallthrough
CT: control target
= control target key end

     0   :  { %s1419_s12 = smov 0   ;;  %s1656_s0 = inlined_call_operand.vmem [shape: bf16[2048,80], index: 0, kind: input, shape index: {}]   ;;  %s1657_s1 = inlined_call_operand.vmem [shape: bf16[80,128], index: 1, kind: input, shape index: {}]   ;;  %s1658_s2 = inlined_call_operand.vmem [shape: f32[1,128], index: 2, kind: input, shape index: {}]   ;;  %s1659_s3 = inlined_call_operand.vmem [shape: f32[2048,128], index: 3, kind: output, shape index: {}]  }
   0x1 LB: > { %s1144_s13 = sadd.s32 4294967295, %s1397_s12   ;;  %p1148_p0 = scmp.ge.s32.totalorder %s1397_s12, 1  ;;  %s1397_s12 = sphi %s1419_s12, %s13_s12  }
   0x2   : > { %p138_p1 = scmp.lt.s32.totalorder %s1397_s12, 5 }
   0x4   : > { %p139_p2 = pnand %p1148_p0, %p138_p1 }
   0x5   : > { %v1354_v0 = vld [vmem:[%s1657_s1] sm:$0xff] (!%p139_p2)   ;;  %s1149_s16 = sshll.u32 (!%p139_p2), %s1144_s13, 6  ;;  %v1355_v1 = vld [vmem:[%s1657_s1 + $0x8] sm:$0xff] (!%p139_p2)   ;;  %v1356_v2 = vld [vmem:[%s1657_s1 + $0x10] sm:$0xff] (!%p139_p2)   ;;  %vm446_vm0 = vcmask (!%p139_p2), 654336  }
   0x6   : > { %142 = sbr.rel (%p139_p2) target bundleno = 307 (0x133), region = 32  ;;  %p163_p3 = scmp.lt.s32.totalorder (!%p139_p2), %s1149_s16, 255  ;;  %1262 = vmatprep.subr.bf16.mxu0 (!%p139_p2), %v1354_v0  ;;  %1336 = vmatprep.subr.bf16.mxu1 (!%p139_p2), %v1354_v0  ;;  %v1357_v3 = vld [vmem:[%s1657_s1 + $0x18] sm:$0xff] (!%p139_p2)   ;;  %v1358_v6 = vld [vmem:[%s1657_s1 + $0x20] sm:$0xff] (!%p139_p2)  }
   0x7   : > { %1263 = vmatpush3.bf16.msra.mxu0 (!%p139_p2), %v1354_v0  ;;  %1341 = vmatpush3.bf16.msra.mxu1 (!%p139_p2), %v1354_v0  ;;  %v1517_v37 = vld [vmem:[%s1658_s2] ss:$0 sm:$0xff] (!%p139_p2) }
   0x8   : > { %1264 = vmatprep.subr.bf16.mxu0 (!%p139_p2), %v1355_v1  ;;  %1337 = vmatprep.subr.bf16.mxu1 (!%p139_p2), %v1355_v1 }
   0xb   : > { %1265 = vmatpush3.bf16.msra.mxu0 (!%p139_p2), %v1355_v1  ;;  %1342 = vmatpush3.bf16.msra.mxu1 (!%p139_p2), %v1355_v1 }
   0xc   : > { %1266 = vmatprep.subr.bf16.mxu0 (!%p139_p2), %v1356_v2  ;;  %1338 = vmatprep.subr.bf16.mxu1 (!%p139_p2), %v1356_v2 }
   0xd   : > { %s1661_s16 = smov (!%p163_p3, %s1149_s16), 255 }
   0xe   : > { %s1150_s21 = sshll.u32 %s1661_s16, 2  ;;  %s1152_s4 = sshll.u32 %s1661_s16, 3 }
   0xf   : > { %s1445_s26 = scalar_lea.vmem %s1656_s0, %s1150_s21  ;;  %1267 = vmatpush3.bf16.msra.mxu0 %v1356_v2  ;;  %1343 = vmatpush3.bf16.msra.mxu1 %v1356_v2  ;;  %s1527_s7 = scalar_lea.vmem %s1659_s3, %s1152_s4 }
  0x10   : > { %v1359_v4 = vld [vmem:[%s1445_s26] sm:$0xff]   ;;  %1268 = vmatprep.subr.bf16.mxu0 %v1357_v3  ;;  %1339 = vmatprep.subr.bf16.mxu1 %v1357_v3  ;;  %v1361_v7 = vld [vmem:[%s1445_s26 + $0x8] sm:$0xff]   ;;  %v1363_v9 = vld [vmem:[%s1445_s26 + $0x10] sm:$0xff]  }
  0x11   : > { %v1360_v5 = vld [vmem:[%s1445_s26 + $0x80] sm:$0xff]   ;;  %1272 = vmatprep.mubr.msk.bf16.mxu0 %vm446_vm0, %v1359_v4  ;;  %v1362_v8 = vld [vmem:[%s1445_s26 + $0x88] sm:$0xff]   ;;  %v1364_v10 = vld [vmem:[%s1445_s26 + $0x90] sm:$0xff]  }
  0x12   : > { %1304 = vmatprep.mubr.msk.bf16.mxu1 %vm446_vm0, %v1360_v5  ;;  %v1365_v11 = vld [vmem:[%s1445_s26 + $0x18] sm:$0xff]   ;;  %v1367_v13 = vld [vmem:[%s1445_s26 + $0x20] sm:$0xff]   ;;  %v1369_v15 = vld [vmem:[%s1445_s26 + $0x28] sm:$0xff]  }
  0x13   : > { %1269 = vmatpush3.bf16.msra.mxu0 %v1357_v3  ;;  %1344 = vmatpush3.bf16.msra.mxu1 %v1357_v3  ;;  %v1366_v12 = vld [vmem:[%s1445_s26 + $0x98] sm:$0xff]   ;;  %v1368_v14 = vld [vmem:[%s1445_s26 + $0xa0] sm:$0xff]   ;;  %v1370_v16 = vld [vmem:[%s1445_s26 + $0xa8] sm:$0xff]  }
  0x14   : > { %1270 = vmatprep.subr.bf16.mxu0 %v1358_v6  ;;  %1340 = vmatprep.subr.bf16.mxu1 %v1358_v6  ;;  %v1371_v17 = vld [vmem:[%s1445_s26 + $0x30] sm:$0xff]   ;;  %v1373_v19 = vld [vmem:[%s1445_s26 + $0x38] sm:$0xff]   ;;  %v1375_v21 = vld [vmem:[%s1445_s26 + $0x40] sm:$0xff]  }
  0x15   : > { %v1372_v18 = vld [vmem:[%s1445_s26 + $0xb0] sm:$0xff]   ;;  %v1374_v20 = vld [vmem:[%s1445_s26 + $0xb8] sm:$0xff]   ;;  %v1376_v22 = vld [vmem:[%s1445_s26 + $0xc0] sm:$0xff]  }
  0x16   : > { %v1377_v23 = vld [vmem:[%s1445_s26 + $0x48] sm:$0xff]   ;;  %v1379_v25 = vld [vmem:[%s1445_s26 + $0x50] sm:$0xff]   ;;  %v1381_v27 = vld [vmem:[%s1445_s26 + $0x58] sm:$0xff]  }
  0x17   : > { %1271 = vmatpush3.bf16.msra.mxu0 %v1358_v6  ;;  %1345 = vmatpush3.bf16.msra.mxu1 %v1358_v6  ;;  %v1378_v24 = vld [vmem:[%s1445_s26 + $0xc8] sm:$0xff]   ;;  %v1380_v26 = vld [vmem:[%s1445_s26 + $0xd0] sm:$0xff]   ;;  %v1382_v28 = vld [vmem:[%s1445_s26 + $0xd8] sm:$0xff]  }
  0x18   : > { %v1383_v29 = vld [vmem:[%s1445_s26 + $0x60] sm:$0xff]   ;;  %v1385_v31 = vld [vmem:[%s1445_s26 + $0x68] sm:$0xff]   ;;  %v1387_v33 = vld [vmem:[%s1445_s26 + $0x70] sm:$0xff]  }
  0x19   : > { %v1384_v30 = vld [vmem:[%s1445_s26 + $0xe0] sm:$0xff]   ;;  %v1386_v32 = vld [vmem:[%s1445_s26 + $0xe8] sm:$0xff]   ;;  %v1388_v34 = vld [vmem:[%s1445_s26 + $0xf0] sm:$0xff]  }
  0x1a   : > { %1273 = vmatmul.mubr.msk.bf16.vlgmr.msra.gmra.mrb[0].mxu0 %vm446_vm0, %v1361_v7  ;;  %1305 = vmatmul.mubr.msk.bf16.vlgmr.msra.gmra.mrb[0].mxu1 %vm446_vm0, %v1362_v8  ;;  %v1389_v35 = vld [vmem:[%s1445_s26 + $0x78] sm:$0xff]  }
  0x1b   : > { %1276 = vmatprep.mubr.msk.bf16.mxu0 %vm446_vm0, %v1363_v9  ;;  %1308 = vmatprep.mubr.msk.bf16.mxu1 %vm446_vm0, %v1364_v10  ;;  %v1390_v36 = vld [vmem:[%s1445_s26 + $0xf8] sm:$0xff]  }
  0x22   : > { %1277 = vmatmul.mubr.msk.bf16.gmra.mrb[4].mxu0 %vm446_vm0, %v1365_v11  ;;  %1309 = vmatmul.mubr.msk.bf16.gmra.mrb[4].mxu1 %vm446_vm0, %v1366_v12 }
  0x23   : > { %1280 = vmatprep.mubr.msk.bf16.mxu0 %vm446_vm0, %v1367_v13  ;;  %1312 = vmatprep.mubr.msk.bf16.mxu1 %vm446_vm0, %v1368_v14 }
  0x2a   : > { %1281 = vmatmul.mubr.msk.bf16.gmra.mrb[8].mxu0 %vm446_vm0, %v1369_v15  ;;  %1313 = vmatmul.mubr.msk.bf16.gmra.mrb[8].mxu1 %vm446_vm0, %v1370_v16 }
  0x2b   : > { %1284 = vmatprep.mubr.msk.bf16.mxu0 %vm446_vm0, %v1371_v17  ;;  %1316 = vmatprep.mubr.msk.bf16.mxu1 %vm446_vm0, %v1372_v18 }
  0x32   : > { %1285 = vmatmul.mubr.msk.bf16.gmra.mrb[12].mxu0 %vm446_vm0, %v1373_v19  ;;  %1317 = vmatmul.mubr.msk.bf16.gmra.mrb[12].mxu1 %vm446_vm0, %v1374_v20 }
  0x33   : > { %1288 = vmatprep.mubr.msk.bf16.mxu0 %vm446_vm0, %v1375_v21  ;;  %1320 = vmatprep.mubr.msk.bf16.mxu1 %vm446_vm0, %v1376_v22 }
  0x3a   : > { %1289 = vmatmul.mubr.msk.bf16.gmra.mrb[16].mxu0 %vm446_vm0, %v1377_v23  ;;  %1321 = vmatmul.mubr.msk.bf16.gmra.mrb[16].mxu1 %vm446_vm0, %v1378_v24 }
  0x3b   : > { %1292 = vmatprep.mubr.msk.bf16.mxu0 %vm446_vm0, %v1379_v25  ;;  %1324 = vmatprep.mubr.msk.bf16.mxu1 %vm446_vm0, %v1380_v26 }
  0x42   : > { %1293 = vmatmul.mubr.msk.bf16.gmra.mrb[20].mxu0 %vm446_vm0, %v1381_v27  ;;  %1325 = vmatmul.mubr.msk.bf16.gmra.mrb[20].mxu1 %vm446_vm0, %v1382_v28 }
  0x43   : > { %1296 = vmatprep.mubr.msk.bf16.mxu0 %vm446_vm0, %v1383_v29  ;;  %1328 = vmatprep.mubr.msk.bf16.mxu1 %vm446_vm0, %v1384_v30 }
  0x4a   : > { %1297 = vmatmul.mubr.msk.bf16.gmra.mrb[24].mxu0 %vm446_vm0, %v1385_v31  ;;  %1329 = vmatmul.mubr.msk.bf16.gmra.mrb[24].mxu1 %vm446_vm0, %v1386_v32 }
  0x4b   : > { %1300 = vmatprep.mubr.msk.bf16.mxu0 %vm446_vm0, %v1387_v33  ;;  %1332 = vmatprep.mubr.msk.bf16.mxu1 %vm446_vm0, %v1388_v34 }
  0x52   : > { %1301 = vmatmul.mubr.msk.bf16.gmra.mrb[28].mxu0 %vm446_vm0, %v1389_v35  ;;  %1333 = vmatmul.mubr.msk.bf16.gmra.mrb[28].mxu1 %vm446_vm0, %v1390_v36 }
  0xed   : > { %v1274_v38 = vpop.f32.mrb[0].mxu0  ;;  %v1306_v39 = vpop.f32.mrb[0].mxu1 }
  0xee   : > { %v586_v40 = vadd.f32 %v1274_v38, %v1517_v37  ;;  %v714_v41 = vadd.f32 %v1306_v39, %v1517_v37  ;;  %v577_v42 = vpop.f32.mrb[1].mxu0  ;;  %v705_v43 = vpop.f32.mrb[1].mxu1 }
  0xef   : > { %v578_v44 = vadd.f32 %v1517_v37, %v577_v42  ;;  %v706_v45 = vadd.f32 %v1517_v37, %v705_v43  ;;  %v1275_v46 = vpop.f32.mrb[2].mxu0  ;;  %v1307_v47 = vpop.f32.mrb[2].mxu1 }
  0xf0   : > { %vm834_vm1 = vcmp.gt.f32.partialorder %v586_v40, 0.0  ;;  %v898_v48 = vmul.f32 0.2, %v586_v40  ;;  %vm866_vm2 = vcmp.gt.f32.partialorder %v714_v41, 0.0  ;;  %v930_v49 = vmul.f32 0.2, %v714_v41 }
  0xf1   : > { %vm832_vm3 = vcmp.gt.f32.partialorder %v578_v44, 0.0  ;;  %v896_v50 = vmul.f32 0.2, %v578_v44  ;;  %vm864_vm4 = vcmp.gt.f32.partialorder %v706_v45, 0.0  ;;  %v928_v51 = vmul.f32 0.2, %v706_v45 }
  0xf2   : > { %v962_v52 = vsel %vm834_vm1, %v586_v40, %v898_v48  ;;  %v994_v53 = vsel %vm866_vm2, %v714_v41, %v930_v49  ;;  %v589_v54 = vadd.f32 %v1275_v46, %v1517_v37  ;;  %v717_v55 = vadd.f32 %v1307_v47, %v1517_v37  ;;  %v580_v56 = vpop.f32.mrb[3].mxu0  ;;  %v708_v57 = vpop.f32.mrb[3].mxu1 }
  0xf3   : > { %1026 = vst [vmem:[%s1527_s7 + $0x10] sm:$0xff] %v962_v52  ;;  %1058 = vst [vmem:[%s1527_s7 + $0x110] sm:$0xff] %v994_v53  ;;  %v960_v58 = vsel %vm832_vm3, %v578_v44, %v896_v50  ;;  %v992_v59 = vsel %vm864_vm4, %v706_v45, %v928_v51  ;;  %v581_v60 = vadd.f32 %v1517_v37, %v580_v56 }
  0xf4   : > { %v709_v61 = vadd.f32 %v1517_v37, %v708_v57  ;;  %1024 = vst [vmem:[%s1527_s7] sm:$0xff] %v960_v58  ;;  %1056 = vst [vmem:[%s1527_s7 + $0x100] sm:$0xff] %v992_v59  ;;  %vm835_vm5 = vcmp.gt.f32.partialorder %v589_v54, 0.0  ;;  %v899_v62 = vmul.f32 0.2, %v589_v54  ;;  %vm867_vm6 = vcmp.gt.f32.partialorder %v717_v55, 0.0 }
  0xf5   : > { %v931_v63 = vmul.f32 0.2, %v717_v55  ;;  %vm833_vm7 = vcmp.gt.f32.partialorder %v581_v60, 0.0  ;;  %v897_v0 = vmul.f32 0.2, %v581_v60  ;;  %v1278_v4 = vpop.f32.mrb[4].mxu0 }
  0xf6   : > { %vm865_vm8 = vcmp.gt.f32.partialorder %v709_v61, 0.0  ;;  %v929_v1 = vmul.f32 0.2, %v709_v61  ;;  %v963_v2 = vsel %vm835_vm5, %v589_v54, %v899_v62  ;;  %v1310_v5 = vpop.f32.mrb[4].mxu1  ;;  %v602_v8 = vadd.f32 %v1278_v4, %v1517_v37  ;;  %v593_v10 = vpop.f32.mrb[5].mxu0 }
  0xf7   : > { %v995_v3 = vsel %vm867_vm6, %v717_v55, %v931_v63  ;;  %1027 = vst [vmem:[%s1527_s7 + $0x18] sm:$0xff] %v963_v2  ;;  %v961_v6 = vsel %vm833_vm7, %v581_v60, %v897_v0  ;;  %v730_v9 = vadd.f32 %v1310_v5, %v1517_v37  ;;  %v721_v11 = vpop.f32.mrb[5].mxu1  ;;  %v594_v12 = vadd.f32 %v1517_v37, %v593_v10  ;;  %v1279_v14 = vpop.f32.mrb[6].mxu0 }
  0xf8   : > { %1059 = vst [vmem:[%s1527_s7 + $0x118] sm:$0xff] %v995_v3  ;;  %v993_v7 = vsel %vm865_vm8, %v709_v61, %v929_v1  ;;  %1025 = vst [vmem:[%s1527_s7 + $0x8] sm:$0xff] %v961_v6  ;;  %v722_v13 = vadd.f32 %v1517_v37, %v721_v11  ;;  %v1311_v15 = vpop.f32.mrb[6].mxu1  ;;  %vm838_vm9 = vcmp.gt.f32.partialorder %v602_v8, 0.0  ;;  %v902_v16 = vmul.f32 0.2, %v602_v8 }
  0xf9   : > { %1057 = vst [vmem:[%s1527_s7 + $0x108] sm:$0xff] %v993_v7  ;;  %vm870_vm10 = vcmp.gt.f32.partialorder %v730_v9, 0.0  ;;  %v934_v17 = vmul.f32 0.2, %v730_v9  ;;  %vm836_vm11 = vcmp.gt.f32.partialorder %v594_v12, 0.0  ;;  %v605_v22 = vadd.f32 %v1279_v14, %v1517_v37  ;;  %v596_v24 = vpop.f32.mrb[7].mxu0 }
  0xfa   : > { %v900_v18 = vmul.f32 0.2, %v594_v12  ;;  %vm868_vm12 = vcmp.gt.f32.partialorder %v722_v13, 0.0  ;;  %v932_v19 = vmul.f32 0.2, %v722_v13  ;;  %v966_v20 = vsel %vm838_vm9, %v602_v8, %v902_v16  ;;  %v724_v25 = vpop.f32.mrb[7].mxu1 }
  0xfb   : > { %v998_v21 = vsel %vm870_vm10, %v730_v9, %v934_v17  ;;  %v733_v23 = vadd.f32 %v1311_v15, %v1517_v37  ;;  %1030 = vst [vmem:[%s1527_s7 + $0x30] sm:$0xff] %v966_v20  ;;  %v597_v28 = vadd.f32 %v1517_v37, %v596_v24  ;;  %v725_v29 = vadd.f32 %v1517_v37, %v724_v25 }
  0xfc   : > { %1062 = vst [vmem:[%s1527_s7 + $0x130] sm:$0xff] %v998_v21  ;;  %v964_v26 = vsel %vm836_vm11, %v594_v12, %v900_v18  ;;  %v996_v27 = vsel %vm868_vm12, %v722_v13, %v932_v19  ;;  %vm839_vm13 = vcmp.gt.f32.partialorder %v605_v22, 0.0  ;;  %v903_v30 = vmul.f32 0.2, %v605_v22 }
  0xfd   : > { %1028 = vst [vmem:[%s1527_s7 + $0x20] sm:$0xff] %v964_v26  ;;  %1060 = vst [vmem:[%s1527_s7 + $0x120] sm:$0xff] %v996_v27  ;;  %vm871_vm14 = vcmp.gt.f32.partialorder %v733_v23, 0.0  ;;  %v935_v31 = vmul.f32 0.2, %v733_v23  ;;  %vm837_vm15 = vcmp.gt.f32.partialorder %v597_v28, 0.0 }
  0xfe   : > { %v901_v32 = vmul.f32 0.2, %v597_v28  ;;  %vm869_vm0 = vcmp.gt.f32.partialorder %v725_v29, 0.0  ;;  %v933_v33 = vmul.f32 0.2, %v725_v29  ;;  %v967_v34 = vsel %vm839_vm13, %v605_v22, %v903_v30  ;;  %v1282_v36 = vpop.f32.mrb[8].mxu0 }
  0xff   : > { %v999_v35 = vsel %vm871_vm14, %v733_v23, %v935_v31  ;;  %v1314_v38 = vpop.f32.mrb[8].mxu1  ;;  %1031 = vst [vmem:[%s1527_s7 + $0x38] sm:$0xff] %v967_v34  ;;  %v618_v41 = vadd.f32 %v1282_v36, %v1517_v37  ;;  %v609_v43 = vpop.f32.mrb[9].mxu0 }
 0x100   : > { %1063 = vst [vmem:[%s1527_s7 + $0x138] sm:$0xff] %v999_v35  ;;  %v965_v39 = vsel %vm837_vm15, %v597_v28, %v901_v32  ;;  %v997_v40 = vsel %vm869_vm0, %v725_v29, %v933_v33  ;;  %v746_v42 = vadd.f32 %v1314_v38, %v1517_v37  ;;  %v737_v44 = vpop.f32.mrb[9].mxu1  ;;  %v610_v45 = vadd.f32 %v1517_v37, %v609_v43  ;;  %v1283_v47 = vpop.f32.mrb[10].mxu0 }
 0x101   : > { %1029 = vst [vmem:[%s1527_s7 + $0x28] sm:$0xff] %v965_v39  ;;  %1061 = vst [vmem:[%s1527_s7 + $0x128] sm:$0xff] %v997_v40  ;;  %v738_v46 = vadd.f32 %v1517_v37, %v737_v44  ;;  %v1315_v48 = vpop.f32.mrb[10].mxu1  ;;  %vm842_vm1 = vcmp.gt.f32.partialorder %v618_v41, 0.0  ;;  %v906_v49 = vmul.f32 0.2, %v618_v41  ;;  %v621_v55 = vadd.f32 %v1283_v47, %v1517_v37 }
 0x102   : > { %vm874_vm2 = vcmp.gt.f32.partialorder %v746_v42, 0.0  ;;  %v938_v50 = vmul.f32 0.2, %v746_v42  ;;  %vm840_vm3 = vcmp.gt.f32.partialorder %v610_v45, 0.0  ;;  %v904_v51 = vmul.f32 0.2, %v610_v45 }
 0x103   : > { %vm872_vm4 = vcmp.gt.f32.partialorder %v738_v46, 0.0  ;;  %v936_v52 = vmul.f32 0.2, %v738_v46  ;;  %v970_v53 = vsel %vm842_vm1, %v618_v41, %v906_v49  ;;  %v749_v56 = vadd.f32 %v1315_v48, %v1517_v37  ;;  %v612_v57 = vpop.f32.mrb[11].mxu0  ;;  %v740_v58 = vpop.f32.mrb[11].mxu1 }
 0x104   : > { %v1002_v54 = vsel %vm874_vm2, %v746_v42, %v938_v50  ;;  %1034 = vst [vmem:[%s1527_s7 + $0x50] sm:$0xff] %v970_v53  ;;  %v968_v59 = vsel %vm840_vm3, %v610_v45, %v904_v51  ;;  %v613_v61 = vadd.f32 %v1517_v37, %v612_v57  ;;  %v741_v62 = vadd.f32 %v1517_v37, %v740_v58 }
 0x105   : > { %1066 = vst [vmem:[%s1527_s7 + $0x150] sm:$0xff] %v1002_v54  ;;  %v1000_v60 = vsel %vm872_vm4, %v738_v46, %v936_v52  ;;  %v1286_v63 = vpop.f32.mrb[12].mxu0  ;;  %v1318_v0 = vpop.f32.mrb[12].mxu1  ;;  %1032 = vst [vmem:[%s1527_s7 + $0x40] sm:$0xff] %v968_v59  ;;  %vm843_vm5 = vcmp.gt.f32.partialorder %v621_v55, 0.0  ;;  %vm875_vm6 = vcmp.gt.f32.partialorder %v749_v56, 0.0 }
 0x106   : > { %1064 = vst [vmem:[%s1527_s7 + $0x140] sm:$0xff] %v1000_v60  ;;  %v907_v1 = vmul.f32 0.2, %v621_v55  ;;  %v939_v2 = vmul.f32 0.2, %v749_v56  ;;  %vm841_vm7 = vcmp.gt.f32.partialorder %v613_v61, 0.0  ;;  %v634_v7 = vadd.f32 %v1286_v63, %v1517_v37 }
 0x107   : > { %v905_v3 = vmul.f32 0.2, %v613_v61  ;;  %vm873_vm8 = vcmp.gt.f32.partialorder %v741_v62, 0.0  ;;  %v937_v4 = vmul.f32 0.2, %v741_v62  ;;  %v762_v8 = vadd.f32 %v1318_v0, %v1517_v37  ;;  %v625_v9 = vpop.f32.mrb[13].mxu0 }
 0x108   : > { %v971_v5 = vsel %vm843_vm5, %v621_v55, %v907_v1  ;;  %v1003_v6 = vsel %vm875_vm6, %v749_v56, %v939_v2  ;;  %v753_v10 = vpop.f32.mrb[13].mxu1  ;;  %v626_v13 = vadd.f32 %v1517_v37, %v625_v9  ;;  %v1287_v15 = vpop.f32.mrb[14].mxu0  ;;  %vm846_vm9 = vcmp.gt.f32.partialorder %v634_v7, 0.0 }
 0x109   : > { %1035 = vst [vmem:[%s1527_s7 + $0x58] sm:$0xff] %v971_v5  ;;  %1067 = vst [vmem:[%s1527_s7 + $0x158] sm:$0xff] %v1003_v6  ;;  %v969_v11 = vsel %vm841_vm7, %v613_v61, %v905_v3  ;;  %v1001_v12 = vsel %vm873_vm8, %v741_v62, %v937_v4  ;;  %v754_v14 = vadd.f32 %v1517_v37, %v753_v10  ;;  %v1319_v16 = vpop.f32.mrb[14].mxu1  ;;  %v910_v17 = vmul.f32 0.2, %v634_v7  ;;  %v628_v25 = vpop.f32.mrb[15].mxu0 }
 0x10a   : > { %1033 = vst [vmem:[%s1527_s7 + $0x48] sm:$0xff] %v969_v11  ;;  %1065 = vst [vmem:[%s1527_s7 + $0x148] sm:$0xff] %v1001_v12  ;;  %vm878_vm10 = vcmp.gt.f32.partialorder %v762_v8, 0.0  ;;  %v942_v18 = vmul.f32 0.2, %v762_v8  ;;  %vm844_vm11 = vcmp.gt.f32.partialorder %v626_v13, 0.0  ;;  %v637_v23 = vadd.f32 %v1287_v15, %v1517_v37 }
 0x10b   : > { %v908_v19 = vmul.f32 0.2, %v626_v13  ;;  %vm876_vm12 = vcmp.gt.f32.partialorder %v754_v14, 0.0  ;;  %v940_v20 = vmul.f32 0.2, %v754_v14  ;;  %v974_v21 = vsel %vm846_vm9, %v634_v7, %v910_v17  ;;  %v756_v26 = vpop.f32.mrb[15].mxu1 }
 0x10c   : > { %v1006_v22 = vsel %vm878_vm10, %v762_v8, %v942_v18  ;;  %v765_v24 = vadd.f32 %v1319_v16, %v1517_v37  ;;  %1038 = vst [vmem:[%s1527_s7 + $0x70] sm:$0xff] %v974_v21  ;;  %v629_v29 = vadd.f32 %v1517_v37, %v628_v25  ;;  %v757_v30 = vadd.f32 %v1517_v37, %v756_v26 }
 0x10d   : > { %1070 = vst [vmem:[%s1527_s7 + $0x170] sm:$0xff] %v1006_v22  ;;  %v972_v27 = vsel %vm844_vm11, %v626_v13, %v908_v19  ;;  %v1004_v28 = vsel %vm876_vm12, %v754_v14, %v940_v20  ;;  %v1290_v31 = vpop.f32.mrb[16].mxu0  ;;  %v1322_v32 = vpop.f32.mrb[16].mxu1  ;;  %vm847_vm13 = vcmp.gt.f32.partialorder %v637_v23, 0.0  ;;  %v911_v33 = vmul.f32 0.2, %v637_v23 }
 0x10e   : > { %1036 = vst [vmem:[%s1527_s7 + $0x60] sm:$0xff] %v972_v27  ;;  %1068 = vst [vmem:[%s1527_s7 + $0x160] sm:$0xff] %v1004_v28  ;;  %vm879_vm14 = vcmp.gt.f32.partialorder %v765_v24, 0.0  ;;  %v943_v34 = vmul.f32 0.2, %v765_v24  ;;  %vm845_vm15 = vcmp.gt.f32.partialorder %v629_v29, 0.0  ;;  %v650_v40 = vadd.f32 %v1290_v31, %v1517_v37 }
 0x10f   : > { %v909_v35 = vmul.f32 0.2, %v629_v29  ;;  %vm877_vm0 = vcmp.gt.f32.partialorder %v757_v30, 0.0  ;;  %v941_v36 = vmul.f32 0.2, %v757_v30  ;;  %v975_v38 = vsel %vm847_vm13, %v637_v23, %v911_v33  ;;  %v641_v42 = vpop.f32.mrb[17].mxu0 }
 0x110   : > { %v1007_v39 = vsel %vm879_vm14, %v765_v24, %v943_v34  ;;  %v778_v41 = vadd.f32 %v1322_v32, %v1517_v37  ;;  %v769_v43 = vpop.f32.mrb[17].mxu1  ;;  %1039 = vst [vmem:[%s1527_s7 + $0x78] sm:$0xff] %v975_v38  ;;  %v642_v46 = vadd.f32 %v1517_v37, %v641_v42  ;;  %v1291_v48 = vpop.f32.mrb[18].mxu0  ;;  %vm850_vm1 = vcmp.gt.f32.partialorder %v650_v40, 0.0 }
 0x111   : > { %1071 = vst [vmem:[%s1527_s7 + $0x178] sm:$0xff] %v1007_v39  ;;  %v973_v44 = vsel %vm845_vm15, %v629_v29, %v909_v35  ;;  %v1005_v45 = vsel %vm877_vm0, %v757_v30, %v941_v36  ;;  %v770_v47 = vadd.f32 %v1517_v37, %v769_v43  ;;  %v1323_v49 = vpop.f32.mrb[18].mxu1  ;;  %v914_v50 = vmul.f32 0.2, %v650_v40  ;;  %v644_v58 = vpop.f32.mrb[19].mxu0 }
 0x112   : > { %1037 = vst [vmem:[%s1527_s7 + $0x68] sm:$0xff] %v973_v44  ;;  %1069 = vst [vmem:[%s1527_s7 + $0x168] sm:$0xff] %v1005_v45  ;;  %vm882_vm2 = vcmp.gt.f32.partialorder %v778_v41, 0.0  ;;  %v946_v51 = vmul.f32 0.2, %v778_v41  ;;  %vm848_vm3 = vcmp.gt.f32.partialorder %v642_v46, 0.0  ;;  %v653_v56 = vadd.f32 %v1291_v48, %v1517_v37 }
 0x113   : > { %v912_v52 = vmul.f32 0.2, %v642_v46  ;;  %vm880_vm4 = vcmp.gt.f32.partialorder %v770_v47, 0.0  ;;  %v944_v53 = vmul.f32 0.2, %v770_v47  ;;  %v978_v54 = vsel %vm850_vm1, %v650_v40, %v914_v50  ;;  %v772_v59 = vpop.f32.mrb[19].mxu1 }
 0x114   : > { %v1010_v55 = vsel %vm882_vm2, %v778_v41, %v946_v51  ;;  %v781_v57 = vadd.f32 %v1323_v49, %v1517_v37  ;;  %1042 = vst [vmem:[%s1527_s7 + $0x90] sm:$0xff] %v978_v54  ;;  %v645_v62 = vadd.f32 %v1517_v37, %v644_v58  ;;  %v773_v63 = vadd.f32 %v1517_v37, %v772_v59 }
 0x115   : > { %1074 = vst [vmem:[%s1527_s7 + $0x190] sm:$0xff] %v1010_v55  ;;  %v976_v60 = vsel %vm848_vm3, %v642_v46, %v912_v52  ;;  %v1008_v61 = vsel %vm880_vm4, %v770_v47, %v944_v53  ;;  %v1294_v0 = vpop.f32.mrb[20].mxu0  ;;  %v1326_v1 = vpop.f32.mrb[20].mxu1  ;;  %vm851_vm5 = vcmp.gt.f32.partialorder %v653_v56, 0.0  ;;  %v915_v2 = vmul.f32 0.2, %v653_v56 }
 0x116   : > { %1040 = vst [vmem:[%s1527_s7 + $0x80] sm:$0xff] %v976_v60  ;;  %1072 = vst [vmem:[%s1527_s7 + $0x180] sm:$0xff] %v1008_v61  ;;  %vm883_vm6 = vcmp.gt.f32.partialorder %v781_v57, 0.0  ;;  %v947_v3 = vmul.f32 0.2, %v781_v57  ;;  %vm849_vm7 = vcmp.gt.f32.partialorder %v645_v62, 0.0  ;;  %v666_v8 = vadd.f32 %v1294_v0, %v1517_v37 }
 0x117   : > { %v913_v4 = vmul.f32 0.2, %v645_v62  ;;  %vm881_vm8 = vcmp.gt.f32.partialorder %v773_v63, 0.0  ;;  %v945_v5 = vmul.f32 0.2, %v773_v63  ;;  %v979_v6 = vsel %vm851_vm5, %v653_v56, %v915_v2  ;;  %v657_v10 = vpop.f32.mrb[21].mxu0 }
 0x118   : > { %v1011_v7 = vsel %vm883_vm6, %v781_v57, %v947_v3  ;;  %v794_v9 = vadd.f32 %v1326_v1, %v1517_v37  ;;  %v785_v11 = vpop.f32.mrb[21].mxu1  ;;  %1043 = vst [vmem:[%s1527_s7 + $0x98] sm:$0xff] %v979_v6  ;;  %v658_v14 = vadd.f32 %v1517_v37, %v657_v10  ;;  %v1295_v16 = vpop.f32.mrb[22].mxu0  ;;  %vm854_vm9 = vcmp.gt.f32.partialorder %v666_v8, 0.0 }
 0x119   : > { %1075 = vst [vmem:[%s1527_s7 + $0x198] sm:$0xff] %v1011_v7  ;;  %v977_v12 = vsel %vm849_vm7, %v645_v62, %v913_v4  ;;  %v1009_v13 = vsel %vm881_vm8, %v773_v63, %v945_v5  ;;  %v786_v15 = vadd.f32 %v1517_v37, %v785_v11  ;;  %v1327_v17 = vpop.f32.mrb[22].mxu1  ;;  %v918_v18 = vmul.f32 0.2, %v666_v8  ;;  %v660_v26 = vpop.f32.mrb[23].mxu0 }
 0x11a   : > { %1041 = vst [vmem:[%s1527_s7 + $0x88] sm:$0xff] %v977_v12  ;;  %1073 = vst [vmem:[%s1527_s7 + $0x188] sm:$0xff] %v1009_v13  ;;  %vm886_vm10 = vcmp.gt.f32.partialorder %v794_v9, 0.0  ;;  %v950_v19 = vmul.f32 0.2, %v794_v9  ;;  %vm852_vm11 = vcmp.gt.f32.partialorder %v658_v14, 0.0  ;;  %v669_v24 = vadd.f32 %v1295_v16, %v1517_v37 }
 0x11b   : > { %v916_v20 = vmul.f32 0.2, %v658_v14  ;;  %vm884_vm12 = vcmp.gt.f32.partialorder %v786_v15, 0.0  ;;  %v948_v21 = vmul.f32 0.2, %v786_v15  ;;  %v982_v22 = vsel %vm854_vm9, %v666_v8, %v918_v18  ;;  %v788_v27 = vpop.f32.mrb[23].mxu1 }
 0x11c   : > { %v1014_v23 = vsel %vm886_vm10, %v794_v9, %v950_v19  ;;  %v797_v25 = vadd.f32 %v1327_v17, %v1517_v37  ;;  %1046 = vst [vmem:[%s1527_s7 + $0xb0] sm:$0xff] %v982_v22  ;;  %v661_v30 = vadd.f32 %v1517_v37, %v660_v26  ;;  %v789_v31 = vadd.f32 %v1517_v37, %v788_v27 }
 0x11d   : > { %1078 = vst [vmem:[%s1527_s7 + $0x1b0] sm:$0xff] %v1014_v23  ;;  %v980_v28 = vsel %vm852_vm11, %v658_v14, %v916_v20  ;;  %v1012_v29 = vsel %vm884_vm12, %v786_v15, %v948_v21  ;;  %v1298_v32 = vpop.f32.mrb[24].mxu0  ;;  %v1330_v33 = vpop.f32.mrb[24].mxu1  ;;  %vm855_vm13 = vcmp.gt.f32.partialorder %v669_v24, 0.0  ;;  %v919_v34 = vmul.f32 0.2, %v669_v24 }
 0x11e   : > { %1044 = vst [vmem:[%s1527_s7 + $0xa0] sm:$0xff] %v980_v28  ;;  %1076 = vst [vmem:[%s1527_s7 + $0x1a0] sm:$0xff] %v1012_v29  ;;  %vm887_vm14 = vcmp.gt.f32.partialorder %v797_v25, 0.0  ;;  %v951_v35 = vmul.f32 0.2, %v797_v25  ;;  %vm853_vm15 = vcmp.gt.f32.partialorder %v661_v30, 0.0  ;;  %v682_v41 = vadd.f32 %v1298_v32, %v1517_v37 }
 0x11f   : > { %v917_v36 = vmul.f32 0.2, %v661_v30  ;;  %vm885_vm0 = vcmp.gt.f32.partialorder %v789_v31, 0.0  ;;  %v949_v38 = vmul.f32 0.2, %v789_v31  ;;  %v983_v39 = vsel %vm855_vm13, %v669_v24, %v919_v34  ;;  %v673_v43 = vpop.f32.mrb[25].mxu0 }
 0x120   : > { %v1015_v40 = vsel %vm887_vm14, %v797_v25, %v951_v35  ;;  %v810_v42 = vadd.f32 %v1330_v33, %v1517_v37  ;;  %v801_v44 = vpop.f32.mrb[25].mxu1  ;;  %1047 = vst [vmem:[%s1527_s7 + $0xb8] sm:$0xff] %v983_v39  ;;  %v674_v47 = vadd.f32 %v1517_v37, %v673_v43  ;;  %v1299_v49 = vpop.f32.mrb[26].mxu0  ;;  %vm858_vm1 = vcmp.gt.f32.partialorder %v682_v41, 0.0 }
 0x121   : > { %1079 = vst [vmem:[%s1527_s7 + $0x1b8] sm:$0xff] %v1015_v40  ;;  %v981_v45 = vsel %vm853_vm15, %v661_v30, %v917_v36  ;;  %v1013_v46 = vsel %vm885_vm0, %v789_v31, %v949_v38  ;;  %v802_v48 = vadd.f32 %v1517_v37, %v801_v44  ;;  %v1331_v50 = vpop.f32.mrb[26].mxu1  ;;  %v922_v51 = vmul.f32 0.2, %v682_v41  ;;  %v676_v59 = vpop.f32.mrb[27].mxu0 }
 0x122   : > { %1045 = vst [vmem:[%s1527_s7 + $0xa8] sm:$0xff] %v981_v45  ;;  %1077 = vst [vmem:[%s1527_s7 + $0x1a8] sm:$0xff] %v1013_v46  ;;  %vm890_vm2 = vcmp.gt.f32.partialorder %v810_v42, 0.0  ;;  %v954_v52 = vmul.f32 0.2, %v810_v42  ;;  %vm856_vm3 = vcmp.gt.f32.partialorder %v674_v47, 0.0  ;;  %v685_v57 = vadd.f32 %v1299_v49, %v1517_v37 }
 0x123   : > { %v920_v53 = vmul.f32 0.2, %v674_v47  ;;  %vm888_vm4 = vcmp.gt.f32.partialorder %v802_v48, 0.0  ;;  %v952_v54 = vmul.f32 0.2, %v802_v48  ;;  %v986_v55 = vsel %vm858_vm1, %v682_v41, %v922_v51  ;;  %v804_v60 = vpop.f32.mrb[27].mxu1 }
 0x124   : > { %v1018_v56 = vsel %vm890_vm2, %v810_v42, %v954_v52  ;;  %v813_v58 = vadd.f32 %v1331_v50, %v1517_v37  ;;  %1050 = vst [vmem:[%s1527_s7 + $0xd0] sm:$0xff] %v986_v55  ;;  %v677_v63 = vadd.f32 %v1517_v37, %v676_v59  ;;  %v805_v0 = vadd.f32 %v1517_v37, %v804_v60 }
 0x125   : > { %1082 = vst [vmem:[%s1527_s7 + $0x1d0] sm:$0xff] %v1018_v56  ;;  %v984_v61 = vsel %vm856_vm3, %v674_v47, %v920_v53  ;;  %v1016_v62 = vsel %vm888_vm4, %v802_v48, %v952_v54  ;;  %v1302_v1 = vpop.f32.mrb[28].mxu0  ;;  %v1334_v2 = vpop.f32.mrb[28].mxu1  ;;  %vm859_vm5 = vcmp.gt.f32.partialorder %v685_v57, 0.0  ;;  %v923_v3 = vmul.f32 0.2, %v685_v57 }
 0x126   : > { %1048 = vst [vmem:[%s1527_s7 + $0xc0] sm:$0xff] %v984_v61  ;;  %1080 = vst [vmem:[%s1527_s7 + $0x1c0] sm:$0xff] %v1016_v62  ;;  %vm891_vm6 = vcmp.gt.f32.partialorder %v813_v58, 0.0  ;;  %v955_v4 = vmul.f32 0.2, %v813_v58  ;;  %vm857_vm7 = vcmp.gt.f32.partialorder %v677_v63, 0.0  ;;  %v698_v9 = vadd.f32 %v1302_v1, %v1517_v37 }
 0x127   : > { %v921_v5 = vmul.f32 0.2, %v677_v63  ;;  %vm889_vm8 = vcmp.gt.f32.partialorder %v805_v0, 0.0  ;;  %v953_v6 = vmul.f32 0.2, %v805_v0  ;;  %v987_v7 = vsel %vm859_vm5, %v685_v57, %v923_v3  ;;  %v689_v11 = vpop.f32.mrb[29].mxu0 }
 0x128   : > { %v1019_v8 = vsel %vm891_vm6, %v813_v58, %v955_v4  ;;  %v826_v10 = vadd.f32 %v1334_v2, %v1517_v37  ;;  %v817_v12 = vpop.f32.mrb[29].mxu1  ;;  %1051 = vst [vmem:[%s1527_s7 + $0xd8] sm:$0xff] %v987_v7  ;;  %v690_v15 = vadd.f32 %v1517_v37, %v689_v11  ;;  %v1303_v17 = vpop.f32.mrb[30].mxu0  ;;  %vm862_vm9 = vcmp.gt.f32.partialorder %v698_v9, 0.0 }
 0x129   : > { %1083 = vst [vmem:[%s1527_s7 + $0x1d8] sm:$0xff] %v1019_v8  ;;  %v985_v13 = vsel %vm857_vm7, %v677_v63, %v921_v5  ;;  %v1017_v14 = vsel %vm889_vm8, %v805_v0, %v953_v6  ;;  %v818_v16 = vadd.f32 %v1517_v37, %v817_v12  ;;  %v1335_v18 = vpop.f32.mrb[30].mxu1  ;;  %v926_v19 = vmul.f32 0.2, %v698_v9  ;;  %v692_v27 = vpop.f32.mrb[31].mxu0 }
 0x12a   : > { %1049 = vst [vmem:[%s1527_s7 + $0xc8] sm:$0xff] %v985_v13  ;;  %1081 = vst [vmem:[%s1527_s7 + $0x1c8] sm:$0xff] %v1017_v14  ;;  %vm894_vm10 = vcmp.gt.f32.partialorder %v826_v10, 0.0  ;;  %v958_v20 = vmul.f32 0.2, %v826_v10  ;;  %vm860_vm11 = vcmp.gt.f32.partialorder %v690_v15, 0.0  ;;  %v701_v25 = vadd.f32 %v1303_v17, %v1517_v37 }
 0x12b   : > { %v924_v21 = vmul.f32 0.2, %v690_v15  ;;  %vm892_vm12 = vcmp.gt.f32.partialorder %v818_v16, 0.0  ;;  %v956_v22 = vmul.f32 0.2, %v818_v16  ;;  %v990_v23 = vsel %vm862_vm9, %v698_v9, %v926_v19  ;;  %v820_v28 = vpop.f32.mrb[31].mxu1 }
 0x12c   : > { %v1022_v24 = vsel %vm894_vm10, %v826_v10, %v958_v20  ;;  %v829_v26 = vadd.f32 %v1335_v18, %v1517_v37  ;;  %1054 = vst [vmem:[%s1527_s7 + $0xf0] sm:$0xff] %v990_v23  ;;  %v693_v31 = vadd.f32 %v1517_v37, %v692_v27  ;;  %v821_v32 = vadd.f32 %v1517_v37, %v820_v28 }
 0x12d   : > { %1086 = vst [vmem:[%s1527_s7 + $0x1f0] sm:$0xff] %v1022_v24  ;;  %v988_v29 = vsel %vm860_vm11, %v690_v15, %v924_v21  ;;  %v1020_v30 = vsel %vm892_vm12, %v818_v16, %v956_v22  ;;  %vm863_vm13 = vcmp.gt.f32.partialorder %v701_v25, 0.0  ;;  %v927_v33 = vmul.f32 0.2, %v701_v25 }
 0x12e   : > { %1052 = vst [vmem:[%s1527_s7 + $0xe0] sm:$0xff] %v988_v29  ;;  %1084 = vst [vmem:[%s1527_s7 + $0x1e0] sm:$0xff] %v1020_v30  ;;  %vm895_vm14 = vcmp.gt.f32.partialorder %v829_v26, 0.0  ;;  %v959_v34 = vmul.f32 0.2, %v829_v26  ;;  %vm861_vm15 = vcmp.gt.f32.partialorder %v693_v31, 0.0 }
 0x12f   : > { %v925_v35 = vmul.f32 0.2, %v693_v31  ;;  %vm893_vm0 = vcmp.gt.f32.partialorder %v821_v32, 0.0  ;;  %v957_v36 = vmul.f32 0.2, %v821_v32  ;;  %v991_v38 = vsel %vm863_vm13, %v701_v25, %v927_v33 }
 0x130   : > { %v1023_v39 = vsel %vm895_vm14, %v829_v26, %v959_v34  ;;  %1055 = vst [vmem:[%s1527_s7 + $0xf8] sm:$0xff] %v991_v38 }
 0x131   : > { %1087 = vst [vmem:[%s1527_s7 + $0x1f8] sm:$0xff] %v1023_v39  ;;  %v989_v40 = vsel %vm861_vm15, %v693_v31, %v925_v35  ;;  %v1021_v41 = vsel %vm893_vm0, %v821_v32, %v957_v36 }
 0x132   : > { %1053 = vst [vmem:[%s1527_s7 + $0xe8] sm:$0xff] %v989_v40  ;;  %1085 = vst [vmem:[%s1527_s7 + $0x1e8] sm:$0xff] %v1021_v41 }
 0x133 PF: > { %s13_s12 = sadd.s32 1, %s1397_s12  }
 0x134   : > { %p10_p4 = scmp.ge.s32.totalorder %s13_s12, 6  }
 0x136   :  { %12 = sbr.rel (!%p10_p4) target bundleno = 1 (0x1), region = 62 }

// kernel: discriminator_forward.6
= control target key start
LH: loop header
LB: loop body
LE: loop exit
PB: predicated region body
PF: predicated region fallthrough
CT: control target
= control target key end

     0   :  { %s1972_s18 = smov 0   ;;  %s2237_s0 = inlined_call_operand.vmem [shape: bf16[512,512], index: 0, kind: input, shape index: {}]   ;;  %s2238_s1 = inlined_call_operand.vmem [shape: bf16[512,128], index: 1, kind: input, shape index: {}]   ;;  %s2239_s2 = inlined_call_operand.vmem [shape: f32[1,128], index: 2, kind: input, shape index: {}]   ;;  %s2240_s3 = inlined_call_operand.vmem [shape: f32[512,128], index: 3, kind: output, shape index: {0}]   ;;  %s2241_s4 = inlined_call_operand.vmem [shape: f32[2,1,128], index: 4, kind: output, shape index: {1}]   ;;  %s2242_s5 = inlined_call_operand.vmem [shape: f32[2,1,128], index: 5, kind: output, shape index: {2}]  }
   0x1 LB: > { %s1978_s19 = sadd.s32 4294967295, %s1940_s18   ;;  %p1468_p0 = scmp.ge.s32.totalorder %s1940_s18, 1  ;;  %s1940_s18 = sphi %s1972_s18, %s16_s18  }
   0x2   : > { %p194_p1 = scmp.lt.s32.totalorder %s1940_s18, 3 }
   0x4   : > { %p195_p2 = pnand %p1468_p0, %p194_p1 }
   0x5   : > { %v1806_v0 = vld [vmem:[%s2238_s1 + $0x40] sm:$0xff] (!%p195_p2)   ;;  %v1810_v4 = vld [vmem:[%s2238_s1 + $0x48] sm:$0xff] (!%p195_p2)   ;;  %v1814_v8 = vld [vmem:[%s2238_s1 + $0x50] sm:$0xff] (!%p195_p2)   ;;  %s1469_s29 = sshll.u32 (!%p195_p2), %s1978_s19, 5  ;;  %p242_p4 = scmp.lt.s32.totalorder (!%p195_p2), %s1978_s19, 1 }
   0x6   : > { %198 = sbr.rel (%p195_p2) target bundleno = 397 (0x18d), region = 32  ;;  %v1807_v1 = vld [vmem:[%s2238_s1 + $0xc0] sm:$0xff] (!%p195_p2)   ;;  %1574 = vmatprep.subr.bf16.mxu0 (!%p195_p2), %v1806_v0  ;;  %v1811_v5 = vld [vmem:[%s2238_s1 + $0xc8] sm:$0xff] (!%p195_p2)   ;;  %v1815_v9 = vld [vmem:[%s2238_s1 + $0xd0] sm:$0xff] (!%p195_p2)   ;;  %p230_p3 = scmp.lt.s32.totalorder (!%p195_p2), %s1469_s29, 63 }
   0x7   : > { %v1808_v2 = vld [vmem:[%s2238_s1] sm:$0xff] (!%p195_p2)   ;;  %1686 = vmatprep.subr.bf16.mxu1 (!%p195_p2), %v1807_v1  ;;  %v1812_v6 = vld [vmem:[%s2238_s1 + $0x8] sm:$0xff] (!%p195_p2)   ;;  %v1816_v10 = vld [vmem:[%s2238_s1 + $0x10] sm:$0xff] (!%p195_p2)  }
   0x8   : > { %v1809_v3 = vld [vmem:[%s2238_s1 + $0x80] sm:$0xff] (!%p195_p2)   ;;  %1575 = vmatpush3.bf16.msra.mxu0 (!%p195_p2), %v1808_v2  ;;  %v1813_v7 = vld [vmem:[%s2238_s1 + $0x88] sm:$0xff] (!%p195_p2)   ;;  %v1817_v11 = vld [vmem:[%s2238_s1 + $0x90] sm:$0xff] (!%p195_p2)  }
   0x9   : > { %1687 = vmatpush3.bf16.msra.mxu1 (!%p195_p2), %v1809_v3  ;;  %1576 = vmatprep.subr.bf16.mxu0 (!%p195_p2), %v1810_v4  ;;  %v1818_v12 = vld [vmem:[%s2238_s1 + $0x58] sm:$0xff] (!%p195_p2)   ;;  %v1822_v16 = vld [vmem:[%s2238_s1 + $0x60] sm:$0xff] (!%p195_p2)   ;;  %v1826_v20 = vld [vmem:[%s2238_s1 + $0x68] sm:$0xff] (!%p195_p2)  }
   0xa   : > { %1688 = vmatprep.subr.bf16.mxu1 (!%p195_p2), %v1811_v5  ;;  %v1819_v13 = vld [vmem:[%s2238_s1 + $0xd8] sm:$0xff] (!%p195_p2)   ;;  %v1823_v17 = vld [vmem:[%s2238_s1 + $0xe0] sm:$0xff] (!%p195_p2)   ;;  %v1827_v21 = vld [vmem:[%s2238_s1 + $0xe8] sm:$0xff] (!%p195_p2)  }
   0xb   : > { %v1820_v14 = vld [vmem:[%s2238_s1 + $0x18] sm:$0xff] (!%p195_p2)   ;;  %v1824_v18 = vld [vmem:[%s2238_s1 + $0x20] sm:$0xff] (!%p195_p2)   ;;  %v1828_v22 = vld [vmem:[%s2238_s1 + $0x28] sm:$0xff] (!%p195_p2)  }
   0xc   : > { %1577 = vmatpush3.bf16.msra.mxu0 (!%p195_p2), %v1812_v6  ;;  %v1821_v15 = vld [vmem:[%s2238_s1 + $0x98] sm:$0xff] (!%p195_p2)   ;;  %v1825_v19 = vld [vmem:[%s2238_s1 + $0xa0] sm:$0xff] (!%p195_p2)   ;;  %v1829_v23 = vld [vmem:[%s2238_s1 + $0xa8] sm:$0xff] (!%p195_p2)  }
   0xd   : > { %1689 = vmatpush3.bf16.msra.mxu1 %v1813_v7  ;;  %1578 = vmatprep.subr.bf16.mxu0 %v1814_v8  ;;  %s2244_s29 = smov (!%p230_p3, %s1469_s29), 63  ;;  %v1830_v24 = vld [vmem:[%s2238_s1 + $0x70] sm:$0xff]   ;;  %v1834_v28 = vld [vmem:[%s2238_s1 + $0x78] sm:$0xff]   ;;  %s2246_s19 = smov (!%p242_p4, %s1978_s19), 1 }
   0xe   : > { %1690 = vmatprep.subr.bf16.mxu1 %v1815_v9  ;;  %v1831_v25 = vld [vmem:[%s2238_s1 + $0xf0] sm:$0xff]   ;;  %s1573_s30 = sshll.u32 %s2244_s29, 4  ;;  %v1835_v29 = vld [vmem:[%s2238_s1 + $0xf8] sm:$0xff]   ;;  %s1473_s23 = sshll.u32 %s2244_s29, 3 }
   0xf   : > { %v1832_v26 = vld [vmem:[%s2238_s1 + $0x30] sm:$0xff]   ;;  %s2079_s14 = scalar_lea.vmem %s2237_s0, %s1573_s30  ;;  %v1836_v30 = vld [vmem:[%s2238_s1 + $0x38] sm:$0xff]   ;;  %s2161_s26 = scalar_lea.vmem %s2240_s3, %s1473_s23 }
  0x10   : > { %1579 = vmatpush3.bf16.msra.mxu0 %v1816_v10  ;;  %v1833_v27 = vld [vmem:[%s2238_s1 + $0xb0] sm:$0xff]   ;;  %v1837_v31 = vld [vmem:[%s2238_s1 + $0xb8] sm:$0xff]   ;;  %s244_s28 = scalar_lea.vmem %s2241_s4, %s2246_s19  ;;  %s247_s7 = scalar_lea.vmem %s2242_s5, %s2246_s19 }
  0x11   : > { %1691 = vmatpush3.bf16.msra.mxu1 %v1817_v11  ;;  %1580 = vmatprep.subr.bf16.mxu0 %v1818_v12  ;;  %v1838_v32 = vld [vmem:[%s2079_s14] ss:$16 sps:$4 sm:$0xff]   ;;  %v1840_v33 = vld [vmem:[%s2079_s14 + $0x4] ss:$16 sps:$4 sm:$0xff]   ;;  %v1841_v34 = vld [vmem:[%s2079_s14 + $0x8] ss:$16 sps:$4 sm:$0xff]  }
  0x12   : > { %1692 = vmatprep.subr.bf16.mxu1 %v1819_v13  ;;  %v1843_v35 = vld [vmem:[%s2079_s14 + $0xc] ss:$16 sps:$4 sm:$0xff]   ;;  %928 = vmatprep.mubr.bf16.mxu0 %v1840_v33  ;;  %v1844_v36 = vld [vmem:[%s2079_s14 + $0x24] ss:$16 sps:$4 sm:$0xff]   ;;  %v1848_v38 = vld [vmem:[%s2079_s14 + $0x20] ss:$16 sps:$4 sm:$0xff]  }
  0x13   : > { %1089 = vmatprep.mubr.bf16.mxu1 %v1843_v35  ;;  %v1846_v37 = vld [vmem:[%s2079_s14 + $0x2c] ss:$16 sps:$4 sm:$0xff]   ;;  %v1849_v39 = vld [vmem:[%s2079_s14 + $0x28] ss:$16 sps:$4 sm:$0xff]   ;;  %v1850_v40 = vld [vmem:[%s2079_s14 + $0x44] ss:$16 sps:$4 sm:$0xff]  }
  0x14   : > { %1581 = vmatpush3.bf16.msra.mxu0 %v1820_v14  ;;  %v1852_v41 = vld [vmem:[%s2079_s14 + $0x4c] ss:$16 sps:$4 sm:$0xff]   ;;  %v1854_v42 = vld [vmem:[%s2079_s14 + $0x40] ss:$16 sps:$4 sm:$0xff]   ;;  %v1855_v43 = vld [vmem:[%s2079_s14 + $0x48] ss:$16 sps:$4 sm:$0xff]  }
  0x15   : > { %1693 = vmatpush3.bf16.msra.mxu1 %v1821_v15  ;;  %1582 = vmatprep.subr.bf16.mxu0 %v1822_v16  ;;  %v1856_v44 = vld [vmem:[%s2079_s14 + $0x64] ss:$16 sps:$4 sm:$0xff]   ;;  %v1858_v45 = vld [vmem:[%s2079_s14 + $0x6c] ss:$16 sps:$4 sm:$0xff]   ;;  %v1860_v46 = vld [vmem:[%s2079_s14 + $0x60] ss:$16 sps:$4 sm:$0xff]  }
  0x16   : > { %1694 = vmatprep.subr.bf16.mxu1 %v1823_v17  ;;  %v1861_v47 = vld [vmem:[%s2079_s14 + $0x68] ss:$16 sps:$4 sm:$0xff]   ;;  %v1862_v48 = vld [vmem:[%s2079_s14 + $0x84] ss:$16 sps:$4 sm:$0xff]   ;;  %v1864_v49 = vld [vmem:[%s2079_s14 + $0x8c] ss:$16 sps:$4 sm:$0xff]  }
  0x17   : > { %v1866_v50 = vld [vmem:[%s2079_s14 + $0x80] ss:$16 sps:$4 sm:$0xff]   ;;  %v1867_v51 = vld [vmem:[%s2079_s14 + $0x88] ss:$16 sps:$4 sm:$0xff]   ;;  %v1868_v52 = vld [vmem:[%s2079_s14 + $0xa4] ss:$16 sps:$4 sm:$0xff]  }
  0x18   : > { %1583 = vmatpush3.bf16.msra.mxu0 %v1824_v18  ;;  %v1870_v53 = vld [vmem:[%s2079_s14 + $0xac] ss:$16 sps:$4 sm:$0xff]   ;;  %v1872_v54 = vld [vmem:[%s2079_s14 + $0xa0] ss:$16 sps:$4 sm:$0xff]   ;;  %v1873_v55 = vld [vmem:[%s2079_s14 + $0xa8] ss:$16 sps:$4 sm:$0xff]  }
  0x19   : > { %1695 = vmatpush3.bf16.msra.mxu1 %v1825_v19  ;;  %1584 = vmatprep.subr.bf16.mxu0 %v1826_v20  ;;  %v1874_v56 = vld [vmem:[%s2079_s14 + $0xc4] ss:$16 sps:$4 sm:$0xff]   ;;  %v1876_v57 = vld [vmem:[%s2079_s14 + $0xcc] ss:$16 sps:$4 sm:$0xff]   ;;  %v1878_v58 = vld [vmem:[%s2079_s14 + $0xc0] ss:$16 sps:$4 sm:$0xff]  }
  0x1a   : > { %1696 = vmatprep.subr.bf16.mxu1 %v1827_v21  ;;  %v1879_v59 = vld [vmem:[%s2079_s14 + $0xc8] ss:$16 sps:$4 sm:$0xff]   ;;  %v1880_v60 = vld [vmem:[%s2079_s14 + $0xe4] ss:$16 sps:$4 sm:$0xff]   ;;  %v1882_v61 = vld [vmem:[%s2079_s14 + $0xec] ss:$16 sps:$4 sm:$0xff]  }
  0x1b   : > { %v1884_v62 = vld [vmem:[%s2079_s14 + $0xe0] ss:$16 sps:$4 sm:$0xff]   ;;  %v1885_v63 = vld [vmem:[%s2079_s14 + $0xe8] ss:$16 sps:$4 sm:$0xff]   ;;  %v1886_v0 = vld [vmem:[%s2079_s14 + $0x104] ss:$16 sps:$4 sm:$0xff]  }
  0x1c   : > { %1585 = vmatpush3.bf16.msra.mxu0 %v1828_v22  ;;  %v1888_v1 = vld [vmem:[%s2079_s14 + $0x10c] ss:$16 sps:$4 sm:$0xff]   ;;  %v1890_v2 = vld [vmem:[%s2079_s14 + $0x100] ss:$16 sps:$4 sm:$0xff]   ;;  %v1891_v3 = vld [vmem:[%s2079_s14 + $0x108] ss:$16 sps:$4 sm:$0xff]  }
  0x1d   : > { %1697 = vmatpush3.bf16.msra.mxu1 %v1829_v23  ;;  %1586 = vmatprep.subr.bf16.mxu0 %v1830_v24  ;;  %v1892_v4 = vld [vmem:[%s2079_s14 + $0x124] ss:$16 sps:$4 sm:$0xff]   ;;  %v1894_v5 = vld [vmem:[%s2079_s14 + $0x12c] ss:$16 sps:$4 sm:$0xff]   ;;  %v1896_v6 = vld [vmem:[%s2079_s14 + $0x120] ss:$16 sps:$4 sm:$0xff]  }
  0x1e   : > { %1698 = vmatprep.subr.bf16.mxu1 %v1831_v25  ;;  %v1897_v7 = vld [vmem:[%s2079_s14 + $0x128] ss:$16 sps:$4 sm:$0xff]   ;;  %v1898_v8 = vld [vmem:[%s2079_s14 + $0x144] ss:$16 sps:$4 sm:$0xff]   ;;  %v1900_v9 = vld [vmem:[%s2079_s14 + $0x14c] ss:$16 sps:$4 sm:$0xff]  }
  0x1f   : > { %v1902_v10 = vld [vmem:[%s2079_s14 + $0x140] ss:$16 sps:$4 sm:$0xff]   ;;  %v1903_v11 = vld [vmem:[%s2079_s14 + $0x148] ss:$16 sps:$4 sm:$0xff]   ;;  %v1904_v12 = vld [vmem:[%s2079_s14 + $0x164] ss:$16 sps:$4 sm:$0xff]  }
  0x20   : > { %1587 = vmatpush3.bf16.msra.mxu0 %v1832_v26  ;;  %v1906_v13 = vld [vmem:[%s2079_s14 + $0x16c] ss:$16 sps:$4 sm:$0xff]   ;;  %v1908_v14 = vld [vmem:[%s2079_s14 + $0x160] ss:$16 sps:$4 sm:$0xff]   ;;  %v1909_v15 = vld [vmem:[%s2079_s14 + $0x168] ss:$16 sps:$4 sm:$0xff]  }
  0x21   : > { %1699 = vmatpush3.bf16.msra.mxu1 %v1833_v27  ;;  %1588 = vmatprep.subr.bf16.mxu0 %v1834_v28  ;;  %v1910_v16 = vld [vmem:[%s2079_s14 + $0x184] ss:$16 sps:$4 sm:$0xff]   ;;  %v1912_v17 = vld [vmem:[%s2079_s14 + $0x18c] ss:$16 sps:$4 sm:$0xff]   ;;  %v1914_v18 = vld [vmem:[%s2079_s14 + $0x180] ss:$16 sps:$4 sm:$0xff]  }
  0x22   : > { %1700 = vmatprep.subr.bf16.mxu1 %v1835_v29  ;;  %v1915_v19 = vld [vmem:[%s2079_s14 + $0x188] ss:$16 sps:$4 sm:$0xff]   ;;  %v1916_v20 = vld [vmem:[%s2079_s14 + $0x1a4] ss:$16 sps:$4 sm:$0xff]   ;;  %v1918_v21 = vld [vmem:[%s2079_s14 + $0x1ac] ss:$16 sps:$4 sm:$0xff]  }
  0x23   : > { %v1920_v22 = vld [vmem:[%s2079_s14 + $0x1a0] ss:$16 sps:$4 sm:$0xff]   ;;  %v1921_v23 = vld [vmem:[%s2079_s14 + $0x1a8] ss:$16 sps:$4 sm:$0xff]   ;;  %v1922_v24 = vld [vmem:[%s2079_s14 + $0x1c4] ss:$16 sps:$4 sm:$0xff]  }
  0x24   : > { %1589 = vmatpush3.bf16.msra.mxu0 %v1836_v30  ;;  %v1924_v25 = vld [vmem:[%s2079_s14 + $0x1cc] ss:$16 sps:$4 sm:$0xff]   ;;  %v1926_v26 = vld [vmem:[%s2079_s14 + $0x1c0] ss:$16 sps:$4 sm:$0xff]   ;;  %v1927_v27 = vld [vmem:[%s2079_s14 + $0x1c8] ss:$16 sps:$4 sm:$0xff]  }
  0x25   : > { %1701 = vmatpush3.bf16.msra.mxu1 %v1837_v31  ;;  %v1928_v28 = vld [vmem:[%s2079_s14 + $0x1e4] ss:$16 sps:$4 sm:$0xff]   ;;  %v1930_v29 = vld [vmem:[%s2079_s14 + $0x1ec] ss:$16 sps:$4 sm:$0xff]   ;;  %v1932_v30 = vld [vmem:[%s2079_s14 + $0x1e0] ss:$16 sps:$4 sm:$0xff]  }
  0x26   : > { %v1933_v31 = vld [vmem:[%s2079_s14 + $0x1e8] ss:$16 sps:$4 sm:$0xff]  }
  0x27   : > { %929 = vmatmul.mubr.bf16.vlgmr.msra.gmra.mrb[0].mxu0 %v1838_v32 }
  0x28   : > { %1090 = vmatmul.mubr.bf16.vlgmr.msra.gmra.mrb[0].mxu1 %v1841_v34  ;;  %936 = vmatprep.mubr.bf16.mxu0 %v1844_v36  ;;  %v2154_v34 = vld [vmem:[%s2239_s2] ss:$0 sm:$0xff] }
  0x29   : > { %1097 = vmatprep.mubr.bf16.mxu1 %v1846_v37 }
  0x2f   : > { %937 = vmatmul.mubr.bf16.gmra.mrb[4].mxu0 %v1848_v38 }
  0x30   : > { %1098 = vmatmul.mubr.bf16.gmra.mrb[4].mxu1 %v1849_v39  ;;  %944 = vmatprep.mubr.bf16.mxu0 %v1850_v40 }
  0x31   : > { %1105 = vmatprep.mubr.bf16.mxu1 %v1852_v41 }
  0x37   : > { %945 = vmatmul.mubr.bf16.gmra.mrb[8].mxu0 %v1854_v42 }
  0x38   : > { %1106 = vmatmul.mubr.bf16.gmra.mrb[8].mxu1 %v1855_v43  ;;  %952 = vmatprep.mubr.bf16.mxu0 %v1856_v44 }
  0x39   : > { %1113 = vmatprep.mubr.bf16.mxu1 %v1858_v45 }
  0x3f   : > { %953 = vmatmul.mubr.bf16.gmra.mrb[12].mxu0 %v1860_v46 }
  0x40   : > { %1114 = vmatmul.mubr.bf16.gmra.mrb[12].mxu1 %v1861_v47  ;;  %960 = vmatprep.mubr.bf16.mxu0 %v1862_v48 }
  0x41   : > { %1121 = vmatprep.mubr.bf16.mxu1 %v1864_v49 }
  0x47   : > { %961 = vmatmul.mubr.bf16.gmra.mrb[16].mxu0 %v1866_v50 }
  0x48   : > { %1122 = vmatmul.mubr.bf16.gmra.mrb[16].mxu1 %v1867_v51  ;;  %968 = vmatprep.mubr.bf16.mxu0 %v1868_v52 }
  0x49   : > { %1129 = vmatprep.mubr.bf16.mxu1 %v1870_v53 }
  0x4f   : > { %969 = vmatmul.mubr.bf16.gmra.mrb[20].mxu0 %v1872_v54 }
  0x50   : > { %1130 = vmatmul.mubr.bf16.gmra.mrb[20].mxu1 %v1873_v55  ;;  %976 = vmatprep.mubr.bf16.mxu0 %v1874_v56 }
  0x51   : > { %1137 = vmatprep.mubr.bf16.mxu1 %v1876_v57 }
  0x57   : > { %977 = vmatmul.mubr.bf16.gmra.mrb[24].mxu0 %v1878_v58 }
  0x58   : > { %1138 = vmatmul.mubr.bf16.gmra.mrb[24].mxu1 %v1879_v59  ;;  %984 = vmatprep.mubr.bf16.mxu0 %v1880_v60 }
  0x59   : > { %1145 = vmatprep.mubr.bf16.mxu1 %v1882_v61 }
  0x5f   : > { %985 = vmatmul.mubr.bf16.gmra.mrb[28].mxu0 %v1884_v62 }
  0x60   : > { %1146 = vmatmul.mubr.bf16.gmra.mrb[28].mxu1 %v1885_v63  ;;  %992 = vmatprep.mubr.bf16.mxu0 %v1886_v0 }
  0x61   : > { %1153 = vmatprep.mubr.bf16.mxu1 %v1888_v1 }
  0x67   : > { %993 = vmatmul.mubr.bf16.gmra.mrb[32].mxu0 %v1890_v2 }
  0x68   : > { %1154 = vmatmul.mubr.bf16.gmra.mrb[32].mxu1 %v1891_v3  ;;  %1000 = vmatprep.mubr.bf16.mxu0 %v1892_v4 }
  0x69   : > { %1161 = vmatprep.mubr.bf16.mxu1 %v1894_v5 }
  0x6f   : > { %1001 = vmatmul.mubr.bf16.gmra.mrb[36].mxu0 %v1896_v6 }
  0x70   : > { %1162 = vmatmul.mubr.bf16.gmra.mrb[36].mxu1 %v1897_v7  ;;  %1008 = vmatprep.mubr.bf16.mxu0 %v1898_v8 }
  0x71   : > { %1169 = vmatprep.mubr.bf16.mxu1 %v1900_v9 }
  0x77   : > { %1009 = vmatmul.mubr.bf16.gmra.mrb[40].mxu0 %v1902_v10 }
  0x78   : > { %1170 = vmatmul.mubr.bf16.gmra.mrb[40].mxu1 %v1903_v11  ;;  %1016 = vmatprep.mubr.bf16.mxu0 %v1904_v12 }
  0x79   : > { %1177 = vmatprep.mubr.bf16.mxu1 %v1906_v13 }
  0x7f   : > { %1017 = vmatmul.mubr.bf16.gmra.mrb[44].mxu0 %v1908_v14 }
  0x80   : > { %1178 = vmatmul.mubr.bf16.gmra.mrb[44].mxu1 %v1909_v15  ;;  %1024 = vmatprep.mubr.bf16.mxu0 %v1910_v16 }
  0x81   : > { %1185 = vmatprep.mubr.bf16.mxu1 %v1912_v17 }
  0x87   : > { %1025 = vmatmul.mubr.bf16.gmra.mrb[48].mxu0 %v1914_v18 }
  0x88   : > { %1186 = vmatmul.mubr.bf16.gmra.mrb[48].mxu1 %v1915_v19  ;;  %1032 = vmatprep.mubr.bf16.mxu0 %v1916_v20 }
  0x89   : > { %1193 = vmatprep.mubr.bf16.mxu1 %v1918_v21 }
  0x8f   : > { %1033 = vmatmul.mubr.bf16.gmra.mrb[52].mxu0 %v1920_v22 }
  0x90   : > { %1194 = vmatmul.mubr.bf16.gmra.mrb[52].mxu1 %v1921_v23  ;;  %1040 = vmatprep.mubr.bf16.mxu0 %v1922_v24 }
  0x91   : > { %1201 = vmatprep.mubr.bf16.mxu1 %v1924_v25 }
  0x97   : > { %1041 = vmatmul.mubr.bf16.gmra.mrb[56].mxu0 %v1926_v26 }
  0x98   : > { %1202 = vmatmul.mubr.bf16.gmra.mrb[56].mxu1 %v1927_v27  ;;  %1048 = vmatprep.mubr.bf16.mxu0 %v1928_v28 }
  0x99   : > { %1209 = vmatprep.mubr.bf16.mxu1 %v1930_v29 }
  0x9f   : > { %1049 = vmatmul.mubr.bf16.gmra.mrb[60].mxu0 %v1932_v30 }
  0xa0   : > { %1210 = vmatmul.mubr.bf16.gmra.mrb[60].mxu1 %v1933_v31 }
  0xfa   : > { %v1590_v32 = vpop.f32.mrb[0].mxu0 }
  0xfb   : > { %v1702_v33 = vpop.f32.mrb[0].mxu1  ;;  %v1591_v35 = vpop.f32.mrb[1].mxu0 }
  0xfc   : > { %v1592_v36 = vadd.f32 %v1591_v35, %v1590_v32  ;;  %v1703_v37 = vpop.f32.mrb[1].mxu1  ;;  %v1593_v38 = vpop.f32.mrb[2].mxu0 }
  0xfd   : > { %v1704_v39 = vadd.f32 %v1703_v37, %v1702_v33  ;;  %v1705_v40 = vpop.f32.mrb[2].mxu1  ;;  %v1594_v41 = vpop.f32.mrb[3].mxu0 }
  0xfe   : > { %v931_v42 = vadd.f32 %v1592_v36, %v2154_v34  ;;  %v1595_v43 = vadd.f32 %v1594_v41, %v1593_v38  ;;  %v1706_v44 = vpop.f32.mrb[3].mxu1 }
  0xff   : > { %v1707_v45 = vadd.f32 %v1706_v44, %v1705_v40 }
 0x100   : > { %v1092_v46 = vadd.f32 %v1704_v39, %v931_v42  ;;  %v934_v47 = vadd.f32 %v1595_v43, %v2154_v34 }
 0x102   : > { %1326 = vst [vmem:[%s2161_s26] sm:$0xff] %v1092_v46  ;;  %v1095_v48 = vadd.f32 %v1707_v45, %v934_v47  ;;  %v1596_v49 = vpop.f32.mrb[4].mxu0  ;;  %v1256_v52 = vmul.f32 %v1092_v46, %v1092_v46 }
 0x103   : > { %v1708_v50 = vpop.f32.mrb[4].mxu1  ;;  %v1597_v51 = vpop.f32.mrb[5].mxu0 }
 0x104   : > { %v1218_v53 = vadd.f32 %v1095_v48, %v1092_v46  ;;  %v1257_v54 = vmul.f32 %v1095_v48, %v1095_v48  ;;  %1327 = vst [vmem:[%s2161_s26 + $0x8] sm:$0xff] %v1095_v48  ;;  %v1598_v55 = vadd.f32 %v1597_v51, %v1596_v49  ;;  %v1709_v56 = vpop.f32.mrb[5].mxu1  ;;  %v1599_v57 = vpop.f32.mrb[6].mxu0 }
 0x105   : > { %v1710_v58 = vadd.f32 %v1709_v56, %v1708_v50  ;;  %v1711_v59 = vpop.f32.mrb[6].mxu1  ;;  %v1600_v60 = vpop.f32.mrb[7].mxu0 }
 0x106   : > { %v1288_v61 = vadd.f32 %v1257_v54, %v1256_v52  ;;  %v939_v62 = vadd.f32 %v1598_v55, %v2154_v34  ;;  %v1601_v63 = vadd.f32 %v1600_v60, %v1599_v57  ;;  %v1712_v0 = vpop.f32.mrb[7].mxu1 }
 0x107   : > { %v1713_v1 = vadd.f32 %v1712_v0, %v1711_v59 }
 0x108   : > { %v1100_v2 = vadd.f32 %v1710_v58, %v939_v62  ;;  %v942_v3 = vadd.f32 %v1601_v63, %v2154_v34 }
 0x10a   : > { %v1219_v4 = vadd.f32 %v1218_v53, %v1100_v2  ;;  %v1258_v5 = vmul.f32 %v1100_v2, %v1100_v2  ;;  %1328 = vst [vmem:[%s2161_s26 + $0x10] sm:$0xff] %v1100_v2  ;;  %v1103_v6 = vadd.f32 %v1713_v1, %v942_v3  ;;  %v1602_v7 = vpop.f32.mrb[8].mxu0 }
 0x10b   : > { %v1714_v8 = vpop.f32.mrb[8].mxu1  ;;  %v1603_v9 = vpop.f32.mrb[9].mxu0 }
 0x10c   : > { %v1289_v10 = vadd.f32 %v1288_v61, %v1258_v5  ;;  %v1220_v11 = vadd.f32 %v1219_v4, %v1103_v6  ;;  %v1259_v12 = vmul.f32 %v1103_v6, %v1103_v6  ;;  %1329 = vst [vmem:[%s2161_s26 + $0x18] sm:$0xff] %v1103_v6  ;;  %v1604_v13 = vadd.f32 %v1603_v9, %v1602_v7  ;;  %v1715_v14 = vpop.f32.mrb[9].mxu1  ;;  %v1605_v15 = vpop.f32.mrb[10].mxu0 }
 0x10d   : > { %v1716_v16 = vadd.f32 %v1715_v14, %v1714_v8  ;;  %v1717_v17 = vpop.f32.mrb[10].mxu1  ;;  %v1606_v18 = vpop.f32.mrb[11].mxu0 }
 0x10e   : > { %v1290_v19 = vadd.f32 %v1289_v10, %v1259_v12  ;;  %v947_v20 = vadd.f32 %v1604_v13, %v2154_v34  ;;  %v1607_v21 = vadd.f32 %v1606_v18, %v1605_v15  ;;  %v1718_v22 = vpop.f32.mrb[11].mxu1 }
 0x10f   : > { %v1719_v23 = vadd.f32 %v1718_v22, %v1717_v17 }
 0x110   : > { %v1108_v24 = vadd.f32 %v1716_v16, %v947_v20  ;;  %v950_v25 = vadd.f32 %v1607_v21, %v2154_v34 }
 0x112   : > { %v1221_v26 = vadd.f32 %v1220_v11, %v1108_v24  ;;  %v1260_v27 = vmul.f32 %v1108_v24, %v1108_v24  ;;  %1330 = vst [vmem:[%s2161_s26 + $0x20] sm:$0xff] %v1108_v24  ;;  %v1111_v28 = vadd.f32 %v1719_v23, %v950_v25  ;;  %v1608_v29 = vpop.f32.mrb[12].mxu0 }
 0x113   : > { %v1720_v30 = vpop.f32.mrb[12].mxu1  ;;  %v1609_v31 = vpop.f32.mrb[13].mxu0 }
 0x114   : > { %v1291_v32 = vadd.f32 %v1290_v19, %v1260_v27  ;;  %v1222_v33 = vadd.f32 %v1221_v26, %v1111_v28  ;;  %v1261_v35 = vmul.f32 %v1111_v28, %v1111_v28  ;;  %1331 = vst [vmem:[%s2161_s26 + $0x28] sm:$0xff] %v1111_v28  ;;  %v1610_v36 = vadd.f32 %v1609_v31, %v1608_v29  ;;  %v1721_v37 = vpop.f32.mrb[13].mxu1  ;;  %v1611_v38 = vpop.f32.mrb[14].mxu0 }
 0x115   : > { %v1722_v39 = vadd.f32 %v1721_v37, %v1720_v30  ;;  %v1723_v40 = vpop.f32.mrb[14].mxu1  ;;  %v1612_v41 = vpop.f32.mrb[15].mxu0 }
 0x116   : > { %v1292_v42 = vadd.f32 %v1291_v32, %v1261_v35  ;;  %v955_v43 = vadd.f32 %v1610_v36, %v2154_v34  ;;  %v1613_v44 = vadd.f32 %v1612_v41, %v1611_v38  ;;  %v1724_v45 = vpop.f32.mrb[15].mxu1 }
 0x117   : > { %v1725_v46 = vadd.f32 %v1724_v45, %v1723_v40 }
 0x118   : > { %v1116_v47 = vadd.f32 %v1722_v39, %v955_v43  ;;  %v958_v48 = vadd.f32 %v1613_v44, %v2154_v34 }
 0x11a   : > { %v1223_v49 = vadd.f32 %v1222_v33, %v1116_v47  ;;  %v1262_v50 = vmul.f32 %v1116_v47, %v1116_v47  ;;  %1332 = vst [vmem:[%s2161_s26 + $0x30] sm:$0xff] %v1116_v47  ;;  %v1119_v51 = vadd.f32 %v1725_v46, %v958_v48  ;;  %v1614_v52 = vpop.f32.mrb[16].mxu0 }
 0x11b   : > { %v1726_v53 = vpop.f32.mrb[16].mxu1  ;;  %v1615_v54 = vpop.f32.mrb[17].mxu0 }
 0x11c   : > { %v1293_v55 = vadd.f32 %v1292_v42, %v1262_v50  ;;  %v1224_v56 = vadd.f32 %v1223_v49, %v1119_v51  ;;  %v1263_v57 = vmul.f32 %v1119_v51, %v1119_v51  ;;  %1333 = vst [vmem:[%s2161_s26 + $0x38] sm:$0xff] %v1119_v51  ;;  %v1616_v58 = vadd.f32 %v1615_v54, %v1614_v52  ;;  %v1727_v59 = vpop.f32.mrb[17].mxu1  ;;  %v1617_v60 = vpop.f32.mrb[18].mxu0 }
 0x11d   : > { %v1728_v61 = vadd.f32 %v1727_v59, %v1726_v53  ;;  %v1729_v62 = vpop.f32.mrb[18].mxu1  ;;  %v1618_v63 = vpop.f32.mrb[19].mxu0 }
 0x11e   : > { %v1294_v0 = vadd.f32 %v1293_v55, %v1263_v57  ;;  %v963_v1 = vadd.f32 %v1616_v58, %v2154_v34  ;;  %v1619_v2 = vadd.f32 %v1618_v63, %v1617_v60  ;;  %v1730_v3 = vpop.f32.mrb[19].mxu1 }
 0x11f   : > { %v1731_v4 = vadd.f32 %v1730_v3, %v1729_v62 }
 0x120   : > { %v1124_v5 = vadd.f32 %v1728_v61, %v963_v1  ;;  %v966_v6 = vadd.f32 %v1619_v2, %v2154_v34 }
 0x122   : > { %v1225_v7 = vadd.f32 %v1224_v56, %v1124_v5  ;;  %v1264_v8 = vmul.f32 %v1124_v5, %v1124_v5  ;;  %1334 = vst [vmem:[%s2161_s26 + $0x40] sm:$0xff] %v1124_v5  ;;  %v1127_v9 = vadd.f32 %v1731_v4, %v966_v6  ;;  %v1620_v10 = vpop.f32.mrb[20].mxu0 }
 0x123   : > { %v1732_v11 = vpop.f32.mrb[20].mxu1  ;;  %v1621_v12 = vpop.f32.mrb[21].mxu0 }
 0x124   : > { %v1295_v13 = vadd.f32 %v1294_v0, %v1264_v8  ;;  %v1226_v14 = vadd.f32 %v1225_v7, %v1127_v9  ;;  %v1265_v15 = vmul.f32 %v1127_v9, %v1127_v9  ;;  %1335 = vst [vmem:[%s2161_s26 + $0x48] sm:$0xff] %v1127_v9  ;;  %v1622_v16 = vadd.f32 %v1621_v12, %v1620_v10  ;;  %v1733_v17 = vpop.f32.mrb[21].mxu1  ;;  %v1623_v18 = vpop.f32.mrb[22].mxu0 }
 0x125   : > { %v1734_v19 = vadd.f32 %v1733_v17, %v1732_v11  ;;  %v1735_v20 = vpop.f32.mrb[22].mxu1  ;;  %v1624_v21 = vpop.f32.mrb[23].mxu0 }
 0x126   : > { %v1296_v22 = vadd.f32 %v1295_v13, %v1265_v15  ;;  %v971_v23 = vadd.f32 %v1622_v16, %v2154_v34  ;;  %v1625_v24 = vadd.f32 %v1624_v21, %v1623_v18  ;;  %v1736_v25 = vpop.f32.mrb[23].mxu1 }
 0x127   : > { %v1737_v26 = vadd.f32 %v1736_v25, %v1735_v20 }
 0x128   : > { %v1132_v27 = vadd.f32 %v1734_v19, %v971_v23  ;;  %v974_v28 = vadd.f32 %v1625_v24, %v2154_v34 }
 0x12a   : > { %v1227_v29 = vadd.f32 %v1226_v14, %v1132_v27  ;;  %v1266_v30 = vmul.f32 %v1132_v27, %v1132_v27  ;;  %1336 = vst [vmem:[%s2161_s26 + $0x50] sm:$0xff] %v1132_v27  ;;  %v1135_v31 = vadd.f32 %v1737_v26, %v974_v28  ;;  %v1626_v32 = vpop.f32.mrb[24].mxu0 }
 0x12b   : > { %v1738_v33 = vpop.f32.mrb[24].mxu1  ;;  %v1627_v35 = vpop.f32.mrb[25].mxu0 }
 0x12c   : > { %v1297_v36 = vadd.f32 %v1296_v22, %v1266_v30  ;;  %v1228_v37 = vadd.f32 %v1227_v29, %v1135_v31  ;;  %v1267_v38 = vmul.f32 %v1135_v31, %v1135_v31  ;;  %1337 = vst [vmem:[%s2161_s26 + $0x58] sm:$0xff] %v1135_v31  ;;  %v1628_v39 = vadd.f32 %v1627_v35, %v1626_v32  ;;  %v1739_v40 = vpop.f32.mrb[25].mxu1  ;;  %v1629_v41 = vpop.f32.mrb[26].mxu0 }
 0x12d   : > { %v1740_v42 = vadd.f32 %v1739_v40, %v1738_v33  ;;  %v1741_v43 = vpop.f32.mrb[26].mxu1  ;;  %v1630_v44 = vpop.f32.mrb[27].mxu0 }
 0x12e   : > { %v1298_v45 = vadd.f32 %v1297_v36, %v1267_v38  ;;  %v979_v46 = vadd.f32 %v1628_v39, %v2154_v34  ;;  %v1631_v47 = vadd.f32 %v1630_v44, %v1629_v41  ;;  %v1742_v48 = vpop.f32.mrb[27].mxu1 }
 0x12f   : > { %v1743_v49 = vadd.f32 %v1742_v48, %v1741_v43 }
 0x130   : > { %v1140_v50 = vadd.f32 %v1740_v42, %v979_v46  ;;  %v982_v51 = vadd.f32 %v1631_v47, %v2154_v34 }
 0x132   : > { %v1229_v52 = vadd.f32 %v1228_v37, %v1140_v50  ;;  %v1268_v53 = vmul.f32 %v1140_v50, %v1140_v50  ;;  %1338 = vst [vmem:[%s2161_s26 + $0x60] sm:$0xff] %v1140_v50  ;;  %v1143_v54 = vadd.f32 %v1743_v49, %v982_v51  ;;  %v1632_v55 = vpop.f32.mrb[28].mxu0 }
 0x133   : > { %v1744_v56 = vpop.f32.mrb[28].mxu1  ;;  %v1633_v57 = vpop.f32.mrb[29].mxu0 }
 0x134   : > { %v1299_v58 = vadd.f32 %v1298_v45, %v1268_v53  ;;  %v1230_v59 = vadd.f32 %v1229_v52, %v1143_v54  ;;  %v1269_v60 = vmul.f32 %v1143_v54, %v1143_v54  ;;  %1339 = vst [vmem:[%s2161_s26 + $0x68] sm:$0xff] %v1143_v54  ;;  %v1634_v61 = vadd.f32 %v1633_v57, %v1632_v55  ;;  %v1745_v62 = vpop.f32.mrb[29].mxu1  ;;  %v1635_v63 = vpop.f32.mrb[30].mxu0 }
 0x135   : > { %v1746_v0 = vadd.f32 %v1745_v62, %v1744_v56  ;;  %v1747_v1 = vpop.f32.mrb[30].mxu1  ;;  %v1636_v2 = vpop.f32.mrb[31].mxu0 }
 0x136   : > { %v1300_v3 = vadd.f32 %v1299_v58, %v1269_v60  ;;  %v987_v4 = vadd.f32 %v1634_v61, %v2154_v34  ;;  %v1637_v5 = vadd.f32 %v1636_v2, %v1635_v63  ;;  %v1748_v6 = vpop.f32.mrb[31].mxu1 }
 0x137   : > { %v1749_v7 = vadd.f32 %v1748_v6, %v1747_v1 }
 0x138   : > { %v1148_v8 = vadd.f32 %v1746_v0, %v987_v4  ;;  %v990_v9 = vadd.f32 %v1637_v5, %v2154_v34 }
 0x13a   : > { %v1231_v10 = vadd.f32 %v1230_v59, %v1148_v8  ;;  %v1270_v11 = vmul.f32 %v1148_v8, %v1148_v8  ;;  %1340 = vst [vmem:[%s2161_s26 + $0x70] sm:$0xff] %v1148_v8  ;;  %v1151_v12 = vadd.f32 %v1749_v7, %v990_v9  ;;  %v1638_v13 = vpop.f32.mrb[32].mxu0 }
 0x13b   : > { %v1750_v14 = vpop.f32.mrb[32].mxu1  ;;  %v1639_v15 = vpop.f32.mrb[33].mxu0 }
 0x13c   : > { %v1301_v16 = vadd.f32 %v1300_v3, %v1270_v11  ;;  %v1232_v17 = vadd.f32 %v1231_v10, %v1151_v12  ;;  %v1271_v18 = vmul.f32 %v1151_v12, %v1151_v12  ;;  %1341 = vst [vmem:[%s2161_s26 + $0x78] sm:$0xff] %v1151_v12  ;;  %v1640_v19 = vadd.f32 %v1639_v15, %v1638_v13  ;;  %v1751_v20 = vpop.f32.mrb[33].mxu1  ;;  %v1641_v21 = vpop.f32.mrb[34].mxu0 }
 0x13d   : > { %v1752_v22 = vadd.f32 %v1751_v20, %v1750_v14  ;;  %v1753_v23 = vpop.f32.mrb[34].mxu1  ;;  %v1642_v24 = vpop.f32.mrb[35].mxu0 }
 0x13e   : > { %v1302_v25 = vadd.f32 %v1301_v16, %v1271_v18  ;;  %v995_v26 = vadd.f32 %v1640_v19, %v2154_v34  ;;  %v1643_v27 = vadd.f32 %v1642_v24, %v1641_v21  ;;  %v1754_v28 = vpop.f32.mrb[35].mxu1 }
 0x13f   : > { %v1755_v29 = vadd.f32 %v1754_v28, %v1753_v23 }
 0x140   : > { %v1156_v30 = vadd.f32 %v1752_v22, %v995_v26  ;;  %v998_v31 = vadd.f32 %v1643_v27, %v2154_v34 }
 0x142   : > { %v1233_v32 = vadd.f32 %v1232_v17, %v1156_v30  ;;  %v1272_v33 = vmul.f32 %v1156_v30, %v1156_v30  ;;  %1342 = vst [vmem:[%s2161_s26 + $0x80] sm:$0xff] %v1156_v30  ;;  %v1159_v35 = vadd.f32 %v1755_v29, %v998_v31  ;;  %v1644_v36 = vpop.f32.mrb[36].mxu0 }
 0x143   : > { %v1756_v37 = vpop.f32.mrb[36].mxu1  ;;  %v1645_v38 = vpop.f32.mrb[37].mxu0 }
 0x144   : > { %v1303_v39 = vadd.f32 %v1302_v25, %v1272_v33  ;;  %v1234_v40 = vadd.f32 %v1233_v32, %v1159_v35  ;;  %v1273_v41 = vmul.f32 %v1159_v35, %v1159_v35  ;;  %1343 = vst [vmem:[%s2161_s26 + $0x88] sm:$0xff] %v1159_v35  ;;  %v1646_v42 = vadd.f32 %v1645_v38, %v1644_v36  ;;  %v1757_v43 = vpop.f32.mrb[37].mxu1  ;;  %v1647_v44 = vpop.f32.mrb[38].mxu0 }
 0x145   : > { %v1758_v45 = vadd.f32 %v1757_v43, %v1756_v37  ;;  %v1759_v46 = vpop.f32.mrb[38].mxu1  ;;  %v1648_v47 = vpop.f32.mrb[39].mxu0 }
 0x146   : > { %v1304_v48 = vadd.f32 %v1303_v39, %v1273_v41  ;;  %v1003_v49 = vadd.f32 %v1646_v42, %v2154_v34  ;;  %v1649_v50 = vadd.f32 %v1648_v47, %v1647_v44  ;;  %v1760_v51 = vpop.f32.mrb[39].mxu1 }
 0x147   : > { %v1761_v52 = vadd.f32 %v1760_v51, %v1759_v46 }
 0x148   : > { %v1164_v53 = vadd.f32 %v1758_v45, %v1003_v49  ;;  %v1006_v54 = vadd.f32 %v1649_v50, %v2154_v34 }
 0x14a   : > { %v1235_v55 = vadd.f32 %v1234_v40, %v1164_v53  ;;  %v1274_v56 = vmul.f32 %v1164_v53, %v1164_v53  ;;  %1344 = vst [vmem:[%s2161_s26 + $0x90] sm:$0xff] %v1164_v53  ;;  %v1167_v57 = vadd.f32 %v1761_v52, %v1006_v54  ;;  %v1650_v58 = vpop.f32.mrb[40].mxu0 }
 0x14b   : > { %v1762_v59 = vpop.f32.mrb[40].mxu1  ;;  %v1651_v60 = vpop.f32.mrb[41].mxu0 }
 0x14c   : > { %v1305_v61 = vadd.f32 %v1304_v48, %v1274_v56  ;;  %v1236_v62 = vadd.f32 %v1235_v55, %v1167_v57  ;;  %v1275_v63 = vmul.f32 %v1167_v57, %v1167_v57  ;;  %1345 = vst [vmem:[%s2161_s26 + $0x98] sm:$0xff] %v1167_v57  ;;  %v1652_v0 = vadd.f32 %v1651_v60, %v1650_v58  ;;  %v1763_v1 = vpop.f32.mrb[41].mxu1  ;;  %v1653_v2 = vpop.f32.mrb[42].mxu0 }
 0x14d   : > { %v1764_v3 = vadd.f32 %v1763_v1, %v1762_v59  ;;  %v1765_v4 = vpop.f32.mrb[42].mxu1  ;;  %v1654_v5 = vpop.f32.mrb[43].mxu0 }
 0x14e   : > { %v1306_v6 = vadd.f32 %v1305_v61, %v1275_v63  ;;  %v1011_v7 = vadd.f32 %v1652_v0, %v2154_v34  ;;  %v1655_v8 = vadd.f32 %v1654_v5, %v1653_v2  ;;  %v1766_v9 = vpop.f32.mrb[43].mxu1 }
 0x14f   : > { %v1767_v10 = vadd.f32 %v1766_v9, %v1765_v4 }
 0x150   : > { %v1172_v11 = vadd.f32 %v1764_v3, %v1011_v7  ;;  %v1014_v12 = vadd.f32 %v1655_v8, %v2154_v34 }
 0x152   : > { %v1237_v13 = vadd.f32 %v1236_v62, %v1172_v11  ;;  %v1276_v14 = vmul.f32 %v1172_v11, %v1172_v11  ;;  %1346 = vst [vmem:[%s2161_s26 + $0xa0] sm:$0xff] %v1172_v11  ;;  %v1175_v15 = vadd.f32 %v1767_v10, %v1014_v12  ;;  %v1656_v16 = vpop.f32.mrb[44].mxu0 }
 0x153   : > { %v1768_v17 = vpop.f32.mrb[44].mxu1  ;;  %v1657_v18 = vpop.f32.mrb[45].mxu0 }
 0x154   : > { %v1307_v19 = vadd.f32 %v1306_v6, %v1276_v14  ;;  %v1238_v20 = vadd.f32 %v1237_v13, %v1175_v15  ;;  %v1277_v21 = vmul.f32 %v1175_v15, %v1175_v15  ;;  %1347 = vst [vmem:[%s2161_s26 + $0xa8] sm:$0xff] %v1175_v15  ;;  %v1658_v22 = vadd.f32 %v1657_v18, %v1656_v16  ;;  %v1769_v23 = vpop.f32.mrb[45].mxu1  ;;  %v1659_v24 = vpop.f32.mrb[46].mxu0 }
 0x155   : > { %v1770_v25 = vadd.f32 %v1769_v23, %v1768_v17  ;;  %v1771_v26 = vpop.f32.mrb[46].mxu1  ;;  %v1660_v27 = vpop.f32.mrb[47].mxu0 }
 0x156   : > { %v1308_v28 = vadd.f32 %v1307_v19, %v1277_v21  ;;  %v1019_v29 = vadd.f32 %v1658_v22, %v2154_v34  ;;  %v1661_v30 = vadd.f32 %v1660_v27, %v1659_v24  ;;  %v1772_v31 = vpop.f32.mrb[47].mxu1 }
 0x157   : > { %v1773_v32 = vadd.f32 %v1772_v31, %v1771_v26 }
 0x158   : > { %v1180_v33 = vadd.f32 %v1770_v25, %v1019_v29  ;;  %v1022_v35 = vadd.f32 %v1661_v30, %v2154_v34 }
 0x15a   : > { %v1239_v36 = vadd.f32 %v1238_v20, %v1180_v33  ;;  %v1278_v37 = vmul.f32 %v1180_v33, %v1180_v33  ;;  %1348 = vst [vmem:[%s2161_s26 + $0xb0] sm:$0xff] %v1180_v33  ;;  %v1183_v38 = vadd.f32 %v1773_v32, %v1022_v35  ;;  %v1662_v39 = vpop.f32.mrb[48].mxu0 }
 0x15b   : > { %v1774_v40 = vpop.f32.mrb[48].mxu1  ;;  %v1663_v41 = vpop.f32.mrb[49].mxu0 }
 0x15c   : > { %v1309_v42 = vadd.f32 %v1308_v28, %v1278_v37  ;;  %v1240_v43 = vadd.f32 %v1239_v36, %v1183_v38  ;;  %v1279_v44 = vmul.f32 %v1183_v38, %v1183_v38  ;;  %1349 = vst [vmem:[%s2161_s26 + $0xb8] sm:$0xff] %v1183_v38  ;;  %v1664_v45 = vadd.f32 %v1663_v41, %v1662_v39  ;;  %v1775_v46 = vpop.f32.mrb[49].mxu1  ;;  %v1665_v47 = vpop.f32.mrb[50].mxu0 }
 0x15d   : > { %v1776_v48 = vadd.f32 %v1775_v46, %v1774_v40  ;;  %v1777_v49 = vpop.f32.mrb[50].mxu1  ;;  %v1666_v50 = vpop.f32.mrb[51].mxu0 }
 0x15e   : > { %v1310_v51 = vadd.f32 %v1309_v42, %v1279_v44  ;;  %v1027_v52 = vadd.f32 %v1664_v45, %v2154_v34  ;;  %v1667_v53 = vadd.f32 %v1666_v50, %v1665_v47  ;;  %v1778_v54 = vpop.f32.mrb[51].mxu1 }
 0x15f   : > { %v1779_v55 = vadd.f32 %v1778_v54, %v1777_v49 }
 0x160   : > { %v1188_v56 = vadd.f32 %v1776_v48, %v1027_v52  ;;  %v1030_v57 = vadd.f32 %v1667_v53, %v2154_v34 }
 0x162   : > { %v1241_v58 = vadd.f32 %v1240_v43, %v1188_v56  ;;  %v1280_v59 = vmul.f32 %v1188_v56, %v1188_v56  ;;  %1350 = vst [vmem:[%s2161_s26 + $0xc0] sm:$0xff] %v1188_v56  ;;  %v1191_v60 = vadd.f32 %v1779_v55, %v1030_v57  ;;  %v1668_v61 = vpop.f32.mrb[52].mxu0 }
 0x163   : > { %v1780_v62 = vpop.f32.mrb[52].mxu1  ;;  %v1669_v63 = vpop.f32.mrb[53].mxu0 }
 0x164   : > { %v1311_v0 = vadd.f32 %v1310_v51, %v1280_v59  ;;  %v1242_v1 = vadd.f32 %v1241_v58, %v1191_v60  ;;  %v1281_v2 = vmul.f32 %v1191_v60, %v1191_v60  ;;  %1351 = vst [vmem:[%s2161_s26 + $0xc8] sm:$0xff] %v1191_v60  ;;  %v1670_v3 = vadd.f32 %v1669_v63, %v1668_v61  ;;  %v1781_v4 = vpop.f32.mrb[53].mxu1  ;;  %v1671_v5 = vpop.f32.mrb[54].mxu0 }
 0x165   : > { %v1782_v6 = vadd.f32 %v1781_v4, %v1780_v62  ;;  %v1783_v7 = vpop.f32.mrb[54].mxu1  ;;  %v1672_v8 = vpop.f32.mrb[55].mxu0 }
 0x166   : > { %v1312_v9 = vadd.f32 %v1311_v0, %v1281_v2  ;;  %v1035_v10 = vadd.f32 %v1670_v3, %v2154_v34  ;;  %v1673_v11 = vadd.f32 %v1672_v8, %v1671_v5  ;;  %v1784_v12 = vpop.f32.mrb[55].mxu1 }
 0x167   : > { %v1785_v13 = vadd.f32 %v1784_v12, %v1783_v7 }
 0x168   : > { %v1196_v14 = vadd.f32 %v1782_v6, %v1035_v10  ;;  %v1038_v15 = vadd.f32 %v1673_v11, %v2154_v34 }
 0x16a   : > { %v1243_v16 = vadd.f32 %v1242_v1, %v1196_v14  ;;  %v1282_v17 = vmul.f32 %v1196_v14, %v1196_v14  ;;  %1352 = vst [vmem:[%s2161_s26 + $0xd0] sm:$0xff] %v1196_v14  ;;  %v1199_v18 = vadd.f32 %v1785_v13, %v1038_v15  ;;  %v1674_v19 = vpop.f32.mrb[56].mxu0 }
 0x16b   : > { %v1786_v20 = vpop.f32.mrb[56].mxu1  ;;  %v1675_v21 = vpop.f32.mrb[57].mxu0 }
 0x16c   : > { %v1313_v22 = vadd.f32 %v1312_v9, %v1282_v17  ;;  %v1244_v23 = vadd.f32 %v1243_v16, %v1199_v18  ;;  %v1283_v24 = vmul.f32 %v1199_v18, %v1199_v18  ;;  %1353 = vst [vmem:[%s2161_s26 + $0xd8] sm:$0xff] %v1199_v18  ;;  %v1676_v25 = vadd.f32 %v1675_v21, %v1674_v19  ;;  %v1787_v26 = vpop.f32.mrb[57].mxu1  ;;  %v1677_v27 = vpop.f32.mrb[58].mxu0 }
 0x16d   : > { %v1788_v28 = vadd.f32 %v1787_v26, %v1786_v20  ;;  %v1789_v29 = vpop.f32.mrb[58].mxu1  ;;  %v1678_v30 = vpop.f32.mrb[59].mxu0 }
 0x16e   : > { %v1314_v31 = vadd.f32 %v1313_v22, %v1283_v24  ;;  %v1043_v32 = vadd.f32 %v1676_v25, %v2154_v34  ;;  %v1679_v33 = vadd.f32 %v1678_v30, %v1677_v27  ;;  %v1790_v35 = vpop.f32.mrb[59].mxu1 }
 0x16f   : > { %v1791_v36 = vadd.f32 %v1790_v35, %v1789_v29 }
 0x170   : > { %v1204_v37 = vadd.f32 %v1788_v28, %v1043_v32  ;;  %v1046_v38 = vadd.f32 %v1679_v33, %v2154_v34 }
 0x172   : > { %v1245_v39 = vadd.f32 %v1244_v23, %v1204_v37  ;;  %v1284_v40 = vmul.f32 %v1204_v37, %v1204_v37  ;;  %1354 = vst [vmem:[%s2161_s26 + $0xe0] sm:$0xff] %v1204_v37  ;;  %v1207_v41 = vadd.f32 %v1791_v36, %v1046_v38  ;;  %v1680_v42 = vpop.f32.mrb[60].mxu0 }
 0x173   : > { %v1792_v43 = vpop.f32.mrb[60].mxu1  ;;  %v1681_v44 = vpop.f32.mrb[61].mxu0 }
 0x174   : > { %v1315_v45 = vadd.f32 %v1314_v31, %v1284_v40  ;;  %v1246_v46 = vadd.f32 %v1245_v39, %v1207_v41  ;;  %v1285_v47 = vmul.f32 %v1207_v41, %v1207_v41  ;;  %1355 = vst [vmem:[%s2161_s26 + $0xe8] sm:$0xff] %v1207_v41  ;;  %v1682_v48 = vadd.f32 %v1681_v44, %v1680_v42  ;;  %v1793_v49 = vpop.f32.mrb[61].mxu1  ;;  %v1683_v50 = vpop.f32.mrb[62].mxu0 }
 0x175   : > { %v1794_v51 = vadd.f32 %v1793_v49, %v1792_v43  ;;  %v1795_v52 = vpop.f32.mrb[62].mxu1  ;;  %v1684_v53 = vpop.f32.mrb[63].mxu0 }
 0x176   : > { %v1316_v54 = vadd.f32 %v1315_v45, %v1285_v47  ;;  %v1051_v55 = vadd.f32 %v1682_v48, %v2154_v34  ;;  %v1685_v56 = vadd.f32 %v1684_v53, %v1683_v50  ;;  %v1796_v57 = vpop.f32.mrb[63].mxu1 }
 0x177   : > { %v1797_v58 = vadd.f32 %v1796_v57, %v1795_v52 }
 0x178   : > { %v1212_v59 = vadd.f32 %v1794_v51, %v1051_v55  ;;  %v1054_v60 = vadd.f32 %v1685_v56, %v2154_v34 }
 0x17a   : > { %v1247_v61 = vadd.f32 %v1246_v46, %v1212_v59  ;;  %v1286_v62 = vmul.f32 %v1212_v59, %v1212_v59  ;;  %1356 = vst [vmem:[%s2161_s26 + $0xf0] sm:$0xff] %v1212_v59  ;;  %v1215_v63 = vadd.f32 %v1797_v58, %v1054_v60 }
 0x17c   : > { %v1317_v0 = vadd.f32 %v1316_v54, %v1286_v62  ;;  %v1248_v1 = vadd.f32 %v1247_v61, %v1215_v63  ;;  %v1287_v2 = vmul.f32 %v1215_v63, %v1215_v63  ;;  %1357 = vst [vmem:[%s2161_s26 + $0xf8] sm:$0xff] %v1215_v63 }
 0x17e   : > { %v1249_v3 = vrot.slane %v1248_v1, 4  ;;  %v1318_v4 = vadd.f32 %v1317_v0, %v1287_v2 }
 0x180   : > { %v1250_v5 = vadd.f32 %v1249_v3, %v1248_v1  ;;  %v1319_v6 = vrot.slane %v1318_v4, 4 }
 0x182   : > { %v1251_v7 = vrot.slane %v1250_v5, 2  ;;  %v1320_v8 = vadd.f32 %v1319_v6, %v1318_v4 }
 0x184   : > { %v1252_v9 = vadd.f32 %v1251_v7, %v1250_v5  ;;  %v1321_v10 = vrot.slane %v1320_v8, 2 }
 0x186   : > { %v1253_v34 = vrot.slane %v1252_v9, 1  ;;  %v1322_v11 = vadd.f32 %v1321_v10, %v1320_v8 }
 0x188   : > { %v1254_v12 = vadd.f32 %v1253_v34, %v1252_v9  ;;  %v1323_v13 = vrot.slane %v1322_v11, 1 }
 0x18a   : > { %1255 = vst [vmem:[%s244_s28] sm:$0x1] %v1254_v12  ;;  %v1324_v14 = vadd.f32 %v1323_v13, %v1322_v11 }
 0x18c   : > { %1325 = vst [vmem:[%s247_s7] sm:$0x1] %v1324_v14 }
 0x18d PF: > { %s16_s18 = sadd.s32 1, %s1940_s18  }
 0x18e   : > { %p13_p5 = scmp.ge.s32.totalorder %s16_s18, 4  }
 0x190   :  { %15 = sbr.rel (!%p13_p5) target bundleno = 1 (0x1), region = 86 }

// kernel: discriminator_forward.7
= control target key start
LH: loop header
LB: loop body
LE: loop exit
PB: predicated region body
PF: predicated region fallthrough
CT: control target
= control target key end

     0   :  { %s1750_s18 = smov 0   ;;  %s2042_s0 = inlined_call_operand.vmem [shape: bf16[128,1024], index: 0, kind: input, shape index: {}]   ;;  %s2043_s1 = inlined_call_operand.vmem [shape: bf16[1024,128], index: 1, kind: input, shape index: {}]   ;;  %s2044_s2 = inlined_call_operand.vmem [shape: f32[1,128], index: 2, kind: input, shape index: {}]   ;;  %s2045_s3 = inlined_call_operand.vmem [shape: f32[128,128], index: 3, kind: output, shape index: {0}]   ;;  %s2046_s4 = inlined_call_operand.vmem [shape: f32[2,1,128], index: 4, kind: output, shape index: {1}]   ;;  %s2047_s5 = inlined_call_operand.vmem [shape: f32[2,1,128], index: 5, kind: output, shape index: {2}]  }
   0x1 LB: > { %s1756_s19 = sadd.s32 4294967295, %s1718_s18   ;;  %p1374_p0 = scmp.ge.s32.totalorder %s1718_s18, 1  ;;  %s1718_s18 = sphi %s1750_s18, %s16_s18  }
   0x2   : > { %p194_p1 = scmp.lt.s32.totalorder %s1718_s18, 3 }
   0x4   : > { %p195_p2 = pnand %p1374_p0, %p194_p1 }
   0x5   : > { %v1648_v0 = vld [vmem:[%s2043_s1 + $0x40] sm:$0xff] (!%p195_p2)   ;;  %v1652_v4 = vld [vmem:[%s2043_s1 + $0x48] sm:$0xff] (!%p195_p2)   ;;  %v1656_v8 = vld [vmem:[%s2043_s1 + $0x50] sm:$0xff] (!%p195_p2)   ;;  %s1375_s29 = sshll.u32 (!%p195_p2), %s1756_s19, 3  ;;  %p242_p4 = scmp.lt.s32.totalorder (!%p195_p2), %s1756_s19, 1 }
   0x6   : > { %198 = sbr.rel (%p195_p2) target bundleno = 333 (0x14d), region = 32  ;;  %v1649_v1 = vld [vmem:[%s2043_s1 + $0xc0] sm:$0xff] (!%p195_p2)   ;;  %1480 = vmatprep.subr.bf16.mxu0 (!%p195_p2), %v1648_v0  ;;  %v1653_v5 = vld [vmem:[%s2043_s1 + $0xc8] sm:$0xff] (!%p195_p2)   ;;  %v1657_v9 = vld [vmem:[%s2043_s1 + $0xd0] sm:$0xff] (!%p195_p2)   ;;  %p230_p3 = scmp.lt.s32.totalorder (!%p195_p2), %s1375_s29, 15 }
   0x7   : > { %v1650_v2 = vld [vmem:[%s2043_s1] sm:$0xff] (!%p195_p2)   ;;  %1520 = vmatprep.subr.bf16.mxu1 (!%p195_p2), %v1649_v1  ;;  %v1654_v6 = vld [vmem:[%s2043_s1 + $0x8] sm:$0xff] (!%p195_p2)   ;;  %v1658_v10 = vld [vmem:[%s2043_s1 + $0x10] sm:$0xff] (!%p195_p2)  }
   0x8   : > { %v1651_v3 = vld [vmem:[%s2043_s1 + $0x80] sm:$0xff] (!%p195_p2)   ;;  %1481 = vmatpush3.bf16.msra.mxu0 (!%p195_p2), %v1650_v2  ;;  %v1655_v7 = vld [vmem:[%s2043_s1 + $0x88] sm:$0xff] (!%p195_p2)   ;;  %v1659_v11 = vld [vmem:[%s2043_s1 + $0x90] sm:$0xff] (!%p195_p2)  }
   0x9   : > { %1521 = vmatpush3.bf16.msra.mxu1 (!%p195_p2), %v1651_v3  ;;  %1482 = vmatprep.subr.bf16.mxu0 (!%p195_p2), %v1652_v4  ;;  %v1660_v12 = vld [vmem:[%s2043_s1 + $0x58] sm:$0xff] (!%p195_p2)   ;;  %v1664_v16 = vld [vmem:[%s2043_s1 + $0x60] sm:$0xff] (!%p195_p2)   ;;  %v1668_v20 = vld [vmem:[%s2043_s1 + $0x68] sm:$0xff] (!%p195_p2)  }
   0xa   : > { %1522 = vmatprep.subr.bf16.mxu1 (!%p195_p2), %v1653_v5  ;;  %v1661_v13 = vld [vmem:[%s2043_s1 + $0xd8] sm:$0xff] (!%p195_p2)   ;;  %v1665_v17 = vld [vmem:[%s2043_s1 + $0xe0] sm:$0xff] (!%p195_p2)   ;;  %v1669_v21 = vld [vmem:[%s2043_s1 + $0xe8] sm:$0xff] (!%p195_p2)  }
   0xb   : > { %v1662_v14 = vld [vmem:[%s2043_s1 + $0x18] sm:$0xff] (!%p195_p2)   ;;  %v1666_v18 = vld [vmem:[%s2043_s1 + $0x20] sm:$0xff] (!%p195_p2)   ;;  %v1670_v22 = vld [vmem:[%s2043_s1 + $0x28] sm:$0xff] (!%p195_p2)  }
   0xc   : > { %1483 = vmatpush3.bf16.msra.mxu0 (!%p195_p2), %v1654_v6  ;;  %v1663_v15 = vld [vmem:[%s2043_s1 + $0x98] sm:$0xff] (!%p195_p2)   ;;  %v1667_v19 = vld [vmem:[%s2043_s1 + $0xa0] sm:$0xff] (!%p195_p2)   ;;  %v1671_v23 = vld [vmem:[%s2043_s1 + $0xa8] sm:$0xff] (!%p195_p2)  }
   0xd   : > { %1523 = vmatpush3.bf16.msra.mxu1 %v1655_v7  ;;  %1484 = vmatprep.subr.bf16.mxu0 %v1656_v8  ;;  %s2049_s29 = smov (!%p230_p3, %s1375_s29), 15  ;;  %v1672_v24 = vld [vmem:[%s2043_s1 + $0x70] sm:$0xff]   ;;  %v1676_v28 = vld [vmem:[%s2043_s1 + $0x78] sm:$0xff]   ;;  %v1680_v40 = vld [vmem:[%s2043_s1 + $0x140] sm:$0xff]   ;;  %s2051_s19 = smov (!%p242_p4, %s1756_s19), 1 }
   0xe   : > { %1524 = vmatprep.subr.bf16.mxu1 %v1657_v9  ;;  %v1673_v25 = vld [vmem:[%s2043_s1 + $0xf0] sm:$0xff]   ;;  %s1479_s30 = sshll.u32 %s2049_s29, 5  ;;  %v1677_v29 = vld [vmem:[%s2043_s1 + $0xf8] sm:$0xff]   ;;  %v1681_v41 = vld [vmem:[%s2043_s1 + $0x1c0] sm:$0xff]   ;;  %s244_s28 = scalar_lea.vmem %s2046_s4, %s2051_s19 }
   0xf   : > { %v1674_v26 = vld [vmem:[%s2043_s1 + $0x30] sm:$0xff]   ;;  %s1857_s14 = scalar_lea.vmem %s2042_s0, %s1479_s30  ;;  %v1678_v30 = vld [vmem:[%s2043_s1 + $0x38] sm:$0xff]   ;;  %v1682_v42 = vld [vmem:[%s2043_s1 + $0x100] sm:$0xff]   ;;  %s247_s7 = scalar_lea.vmem %s2047_s5, %s2051_s19 }
  0x10   : > { %1485 = vmatpush3.bf16.msra.mxu0 %v1658_v10  ;;  %v1675_v27 = vld [vmem:[%s2043_s1 + $0xb0] sm:$0xff]   ;;  %v1679_v31 = vld [vmem:[%s2043_s1 + $0xb8] sm:$0xff]   ;;  %v249_v32 = vld [vmem:[%s1857_s14] sm:$0xff] }
  0x11   : > { %1525 = vmatpush3.bf16.msra.mxu1 %v1659_v11  ;;  %1486 = vmatprep.subr.bf16.mxu0 %v1660_v12  ;;  %v253_v33 = vld [vmem:[%s1857_s14 + $0x20] sm:$0xff]  ;;  %v250_v34 = vld [vmem:[%s1857_s14 + $0x8] sm:$0xff]  ;;  %v1688_v56 = vld [vmem:[%s2043_s1 + $0x150] sm:$0xff]  }
  0x12   : > { %1526 = vmatprep.subr.bf16.mxu1 %v1661_v13  ;;  %v1381_v35 = vcombine.low %v249_v32, %v253_v33  ;;  %v1382_v36 = vcombine.high %v249_v32, %v253_v33  ;;  %v254_v37 = vld [vmem:[%s1857_s14 + $0x28] sm:$0xff]  ;;  %v1683_v43 = vld [vmem:[%s2043_s1 + $0x180] sm:$0xff]   ;;  %v1689_v57 = vld [vmem:[%s2043_s1 + $0x1d0] sm:$0xff]  }
  0x13   : > { %v1383_v38 = vcombine.low %v250_v34, %v254_v37  ;;  %v1384_v39 = vcombine.high %v250_v34, %v254_v37  ;;  %v1684_v44 = vld [vmem:[%s2043_s1 + $0x148] sm:$0xff]   ;;  %v257_v48 = vld [vmem:[%s1857_s14 + $0x40] sm:$0xff]  ;;  %v1690_v58 = vld [vmem:[%s2043_s1 + $0x110] sm:$0xff]  }
  0x14   : > { %1487 = vmatpush3.bf16.msra.mxu0 %v1662_v14  ;;  %992 = vmatprep.mubr.bf16.mxu0 %v1382_v36  ;;  %v1685_v45 = vld [vmem:[%s2043_s1 + $0x1c8] sm:$0xff]   ;;  %v261_v49 = vld [vmem:[%s1857_s14 + $0x60] sm:$0xff]  ;;  %v1691_v59 = vld [vmem:[%s2043_s1 + $0x190] sm:$0xff]  }
  0x15   : > { %1527 = vmatpush3.bf16.msra.mxu1 %v1663_v15  ;;  %1488 = vmatprep.subr.bf16.mxu0 %v1664_v16  ;;  %v1686_v46 = vld [vmem:[%s2043_s1 + $0x108] sm:$0xff]   ;;  %v1390_v50 = vcombine.high %v257_v48, %v261_v49  ;;  %v1389_v53 = vcombine.low %v257_v48, %v261_v49  ;;  %v1692_v60 = vld [vmem:[%s2043_s1 + $0x158] sm:$0xff]   ;;  %v265_v0 = vld [vmem:[%s1857_s14 + $0x80] sm:$0xff] }
  0x16   : > { %1528 = vmatprep.subr.bf16.mxu1 %v1665_v17  ;;  %1057 = vmatprep.mubr.bf16.mxu1 %v1384_v39  ;;  %v1687_v47 = vld [vmem:[%s2043_s1 + $0x188] sm:$0xff]   ;;  %v1693_v61 = vld [vmem:[%s2043_s1 + $0x1d8] sm:$0xff]   ;;  %v269_v1 = vld [vmem:[%s1857_s14 + $0xa0] sm:$0xff] }
  0x17   : > { %v258_v51 = vld [vmem:[%s1857_s14 + $0x48] sm:$0xff]  ;;  %v1694_v62 = vld [vmem:[%s2043_s1 + $0x118] sm:$0xff]   ;;  %v1398_v4 = vcombine.high %v265_v0, %v269_v1  ;;  %v1397_v6 = vcombine.low %v265_v0, %v269_v1  ;;  %v1696_v8 = vld [vmem:[%s2043_s1 + $0x160] sm:$0xff]  }
  0x18   : > { %1489 = vmatpush3.bf16.msra.mxu0 %v1666_v18  ;;  %v262_v52 = vld [vmem:[%s1857_s14 + $0x68] sm:$0xff]  ;;  %v1695_v63 = vld [vmem:[%s2043_s1 + $0x198] sm:$0xff]   ;;  %v1697_v9 = vld [vmem:[%s2043_s1 + $0x1e0] sm:$0xff]  }
  0x19   : > { %1529 = vmatpush3.bf16.msra.mxu1 %v1667_v19  ;;  %1490 = vmatprep.subr.bf16.mxu0 %v1668_v20  ;;  %v1392_v54 = vcombine.high %v258_v51, %v262_v52  ;;  %v1391_v55 = vcombine.low %v258_v51, %v262_v52  ;;  %v266_v2 = vld [vmem:[%s1857_s14 + $0x88] sm:$0xff]  ;;  %v1698_v10 = vld [vmem:[%s2043_s1 + $0x120] sm:$0xff]   ;;  %v251_v32 = vld [vmem:[%s1857_s14 + $0x10] sm:$0xff] }
  0x1a   : > { %1530 = vmatprep.subr.bf16.mxu1 %v1669_v21  ;;  %v270_v3 = vld [vmem:[%s1857_s14 + $0xa8] sm:$0xff]  ;;  %v1699_v11 = vld [vmem:[%s2043_s1 + $0x1a0] sm:$0xff]   ;;  %v255_v33 = vld [vmem:[%s1857_s14 + $0x30] sm:$0xff] }
  0x1b   : > { %v1400_v5 = vcombine.high %v266_v2, %v270_v3  ;;  %v1399_v7 = vcombine.low %v266_v2, %v270_v3  ;;  %v1700_v12 = vld [vmem:[%s2043_s1 + $0x168] sm:$0xff]   ;;  %v273_v16 = vld [vmem:[%s1857_s14 + $0xc0] sm:$0xff]  ;;  %v1385_v34 = vcombine.low %v251_v32, %v255_v33  ;;  %v252_v36 = vld [vmem:[%s1857_s14 + $0x18] sm:$0xff] }
  0x1c   : > { %1491 = vmatpush3.bf16.msra.mxu0 %v1670_v22  ;;  %v1701_v13 = vld [vmem:[%s2043_s1 + $0x1e8] sm:$0xff]   ;;  %v277_v17 = vld [vmem:[%s1857_s14 + $0xe0] sm:$0xff]  ;;  %v256_v37 = vld [vmem:[%s1857_s14 + $0x38] sm:$0xff] }
  0x1d   : > { %1531 = vmatpush3.bf16.msra.mxu1 %v1671_v23  ;;  %1492 = vmatprep.subr.bf16.mxu0 %v1672_v24  ;;  %v1702_v14 = vld [vmem:[%s2043_s1 + $0x128] sm:$0xff]   ;;  %v1406_v19 = vcombine.high %v273_v16, %v277_v17  ;;  %v1405_v21 = vcombine.low %v273_v16, %v277_v17  ;;  %v1704_v24 = vld [vmem:[%s2043_s1 + $0x170] sm:$0xff]   ;;  %v1387_v39 = vcombine.low %v252_v36, %v256_v37  ;;  %v268_v48 = vld [vmem:[%s1857_s14 + $0x98] sm:$0xff] }
  0x1e   : > { %1532 = vmatprep.subr.bf16.mxu1 %v1673_v25  ;;  %v1703_v15 = vld [vmem:[%s2043_s1 + $0x1a8] sm:$0xff]   ;;  %v1705_v25 = vld [vmem:[%s2043_s1 + $0x1f0] sm:$0xff]   ;;  %v272_v49 = vld [vmem:[%s1857_s14 + $0xb8] sm:$0xff] }
  0x1f   : > { %v274_v18 = vld [vmem:[%s1857_s14 + $0xc8] sm:$0xff]  ;;  %v1380_v2 = vld [vmem:[%s2044_s2] ss:$0 sm:$0xff] }
  0x20   : > { %1493 = vmatpush3.bf16.msra.mxu0 %v1674_v26  ;;  %v278_v20 = vld [vmem:[%s1857_s14 + $0xe8] sm:$0xff]  ;;  %v1706_v26 = vld [vmem:[%s2043_s1 + $0x130] sm:$0xff]  }
  0x21   : > { %1533 = vmatpush3.bf16.msra.mxu1 %v1675_v27  ;;  %1494 = vmatprep.subr.bf16.mxu0 %v1676_v28  ;;  %v1408_v22 = vcombine.high %v274_v18, %v278_v20  ;;  %v1407_v23 = vcombine.low %v274_v18, %v278_v20  ;;  %v1707_v27 = vld [vmem:[%s2043_s1 + $0x1b0] sm:$0xff]   ;;  %v1708_v28 = vld [vmem:[%s2043_s1 + $0x178] sm:$0xff]  }
  0x22   : > { %1534 = vmatprep.subr.bf16.mxu1 %v1677_v29  ;;  %v1709_v29 = vld [vmem:[%s2043_s1 + $0x1f8] sm:$0xff]  }
  0x24   : > { %1495 = vmatpush3.bf16.msra.mxu0 %v1678_v30  ;;  %v1710_v30 = vld [vmem:[%s2043_s1 + $0x138] sm:$0xff]  }
  0x25   : > { %1535 = vmatpush3.bf16.msra.mxu1 %v1679_v31  ;;  %1560 = vmatprep.subr.bf16.mxu0 %v1680_v40  ;;  %v1711_v31 = vld [vmem:[%s2043_s1 + $0x1b8] sm:$0xff]   ;;  %v1388_v40 = vcombine.high %v252_v36, %v256_v37 }
  0x26   : > { %1600 = vmatprep.subr.bf16.mxu1 %v1681_v41  ;;  %v263_v41 = vld [vmem:[%s1857_s14 + $0x70] sm:$0xff] }
  0x27   : > { %993 = vmatmul.mubr.bf16.vlgmr.msra.gmra.mrb[0].mxu0 %v1381_v35  ;;  %v1386_v35 = vcombine.high %v251_v32, %v255_v33 }
  0x28   : > { %1058 = vmatmul.mubr.bf16.vlgmr.msra.gmra.mrb[0].mxu1 %v1383_v38  ;;  %1561 = vmatpush3.bf16.msra.mxu0 %v1682_v42  ;;  %v259_v38 = vld [vmem:[%s1857_s14 + $0x50] sm:$0xff]  ;;  %v260_v42 = vld [vmem:[%s1857_s14 + $0x58] sm:$0xff] }
  0x29   : > { %1601 = vmatpush3.bf16.msra.mxu1 %v1683_v43  ;;  %1562 = vmatprep.subr.bf16.mxu0 %v1684_v44  ;;  %v264_v43 = vld [vmem:[%s1857_s14 + $0x78] sm:$0xff]  ;;  %v1394_v44 = vcombine.high %v259_v38, %v263_v41 }
  0x2a   : > { %1602 = vmatprep.subr.bf16.mxu1 %v1685_v45  ;;  %1000 = vmatprep.mubr.bf16.mxu0 %v1390_v50  ;;  %v1396_v45 = vcombine.high %v260_v42, %v264_v43  ;;  %v1393_v50 = vcombine.low %v259_v38, %v263_v41  ;;  %v1395_v51 = vcombine.low %v260_v42, %v264_v43 }
  0x2b   : > { %1065 = vmatprep.mubr.bf16.mxu1 %v1392_v54  ;;  %v275_v54 = vld [vmem:[%s1857_s14 + $0xd0] sm:$0xff] }
  0x2c   : > { %1563 = vmatpush3.bf16.msra.mxu0 %v1686_v46  ;;  %v267_v46 = vld [vmem:[%s1857_s14 + $0x90] sm:$0xff] }
  0x2d   : > { %1603 = vmatpush3.bf16.msra.mxu1 %v1687_v47  ;;  %1564 = vmatprep.subr.bf16.mxu0 %v1688_v56  ;;  %v271_v47 = vld [vmem:[%s1857_s14 + $0xb0] sm:$0xff]  ;;  %v276_v56 = vld [vmem:[%s1857_s14 + $0xd8] sm:$0xff] }
  0x2e   : > { %1604 = vmatprep.subr.bf16.mxu1 %v1689_v57  ;;  %v1402_v52 = vcombine.high %v267_v46, %v271_v47  ;;  %v280_v57 = vld [vmem:[%s1857_s14 + $0xf8] sm:$0xff] }
  0x2f   : > { %1001 = vmatmul.mubr.bf16.gmra.mrb[4].mxu0 %v1389_v53  ;;  %v1404_v53 = vcombine.high %v268_v48, %v272_v49 }
  0x30   : > { %1066 = vmatmul.mubr.bf16.gmra.mrb[4].mxu1 %v1391_v55  ;;  %1565 = vmatpush3.bf16.msra.mxu0 %v1690_v58  ;;  %v279_v55 = vld [vmem:[%s1857_s14 + $0xf0] sm:$0xff]  ;;  %v1401_v58 = vcombine.low %v267_v46, %v271_v47  ;;  %s1379_s14 = sshll.u32 %s2049_s29, 3 }
  0x31   : > { %1605 = vmatpush3.bf16.msra.mxu1 %v1691_v59  ;;  %1566 = vmatprep.subr.bf16.mxu0 %v1692_v60  ;;  %v1403_v59 = vcombine.low %v268_v48, %v272_v49  ;;  %v1410_v60 = vcombine.high %v275_v54, %v279_v55  ;;  %s2014_s26 = scalar_lea.vmem %s2045_s3, %s1379_s14 }
  0x32   : > { %1606 = vmatprep.subr.bf16.mxu1 %v1693_v61  ;;  %1008 = vmatprep.mubr.bf16.mxu0 %v1398_v4  ;;  %v1412_v61 = vcombine.high %v276_v56, %v280_v57 }
  0x33   : > { %1073 = vmatprep.mubr.bf16.mxu1 %v1400_v5 }
  0x34   : > { %1567 = vmatpush3.bf16.msra.mxu0 %v1694_v62  ;;  %v1409_v62 = vcombine.low %v275_v54, %v279_v55 }
  0x35   : > { %1607 = vmatpush3.bf16.msra.mxu1 %v1695_v63  ;;  %1568 = vmatprep.subr.bf16.mxu0 %v1696_v8  ;;  %v1411_v63 = vcombine.low %v276_v56, %v280_v57 }
  0x36   : > { %1608 = vmatprep.subr.bf16.mxu1 %v1697_v9 }
  0x37   : > { %1009 = vmatmul.mubr.bf16.gmra.mrb[8].mxu0 %v1397_v6 }
  0x38   : > { %1074 = vmatmul.mubr.bf16.gmra.mrb[8].mxu1 %v1399_v7  ;;  %1569 = vmatpush3.bf16.msra.mxu0 %v1698_v10 }
  0x39   : > { %1609 = vmatpush3.bf16.msra.mxu1 %v1699_v11  ;;  %1570 = vmatprep.subr.bf16.mxu0 %v1700_v12 }
  0x3a   : > { %1610 = vmatprep.subr.bf16.mxu1 %v1701_v13  ;;  %1016 = vmatprep.mubr.bf16.mxu0 %v1406_v19 }
  0x3b   : > { %1081 = vmatprep.mubr.bf16.mxu1 %v1408_v22 }
  0x3c   : > { %1571 = vmatpush3.bf16.msra.mxu0 %v1702_v14 }
  0x3d   : > { %1611 = vmatpush3.bf16.msra.mxu1 %v1703_v15  ;;  %1572 = vmatprep.subr.bf16.mxu0 %v1704_v24 }
  0x3e   : > { %1612 = vmatprep.subr.bf16.mxu1 %v1705_v25 }
  0x3f   : > { %1017 = vmatmul.mubr.bf16.gmra.mrb[12].mxu0 %v1405_v21 }
  0x40   : > { %1082 = vmatmul.mubr.bf16.gmra.mrb[12].mxu1 %v1407_v23  ;;  %1573 = vmatpush3.bf16.msra.mxu0 %v1706_v26 }
  0x41   : > { %1613 = vmatpush3.bf16.msra.mxu1 %v1707_v27  ;;  %1574 = vmatprep.subr.bf16.mxu0 %v1708_v28 }
  0x42   : > { %1614 = vmatprep.subr.bf16.mxu1 %v1709_v29  ;;  %1122 = vmatprep.mubr.bf16.mxu0 %v1386_v35 }
  0x43   : > { %1187 = vmatprep.mubr.bf16.mxu1 %v1388_v40 }
  0x44   : > { %1575 = vmatpush3.bf16.msra.mxu0 %v1710_v30 }
  0x45   : > { %1615 = vmatpush3.bf16.msra.mxu1 %v1711_v31 }
  0x47   : > { %1123 = vmatmul.mubr.bf16.vlgmr.msra.gmra.mrb[16].mxu0 %v1385_v34 }
  0x48   : > { %1188 = vmatmul.mubr.bf16.vlgmr.msra.gmra.mrb[16].mxu1 %v1387_v39  ;;  %1130 = vmatprep.mubr.bf16.mxu0 %v1394_v44 }
  0x49   : > { %1195 = vmatprep.mubr.bf16.mxu1 %v1396_v45 }
  0x4f   : > { %1131 = vmatmul.mubr.bf16.gmra.mrb[20].mxu0 %v1393_v50 }
  0x50   : > { %1196 = vmatmul.mubr.bf16.gmra.mrb[20].mxu1 %v1395_v51  ;;  %1138 = vmatprep.mubr.bf16.mxu0 %v1402_v52 }
  0x51   : > { %1203 = vmatprep.mubr.bf16.mxu1 %v1404_v53 }
  0x57   : > { %1139 = vmatmul.mubr.bf16.gmra.mrb[24].mxu0 %v1401_v58 }
  0x58   : > { %1204 = vmatmul.mubr.bf16.gmra.mrb[24].mxu1 %v1403_v59  ;;  %1146 = vmatprep.mubr.bf16.mxu0 %v1410_v60 }
  0x59   : > { %1211 = vmatprep.mubr.bf16.mxu1 %v1412_v61 }
  0x5f   : > { %1147 = vmatmul.mubr.bf16.gmra.mrb[28].mxu0 %v1409_v62 }
  0x60   : > { %1212 = vmatmul.mubr.bf16.gmra.mrb[28].mxu1 %v1411_v63 }
  0xfa   : > { %v1496_v0 = vpop.f32.mrb[0].mxu0 }
  0xfb   : > { %v1536_v1 = vpop.f32.mrb[0].mxu1  ;;  %v1497_v3 = vpop.f32.mrb[1].mxu0 }
  0xfc   : > { %v1498_v4 = vadd.f32 %v1497_v3, %v1496_v0  ;;  %v1537_v5 = vpop.f32.mrb[1].mxu1  ;;  %v1499_v6 = vpop.f32.mrb[2].mxu0 }
  0xfd   : > { %v1538_v7 = vadd.f32 %v1537_v5, %v1536_v1  ;;  %v1539_v8 = vpop.f32.mrb[2].mxu1  ;;  %v1500_v9 = vpop.f32.mrb[3].mxu0 }
  0xfe   : > { %v995_v10 = vadd.f32 %v1498_v4, %v1380_v2  ;;  %v1501_v11 = vadd.f32 %v1500_v9, %v1499_v6  ;;  %v1540_v12 = vpop.f32.mrb[3].mxu1 }
  0xff   : > { %v1541_v13 = vadd.f32 %v1540_v12, %v1539_v8 }
 0x100   : > { %v1060_v14 = vadd.f32 %v1538_v7, %v995_v10  ;;  %v998_v15 = vadd.f32 %v1501_v11, %v1380_v2 }
 0x102   : > { %v1996_v16 = vadd.f32 %v1541_v13, %v998_v15  ;;  %v1502_v17 = vpop.f32.mrb[4].mxu0 }
 0x103   : > { %v1542_v18 = vpop.f32.mrb[4].mxu1  ;;  %v1503_v19 = vpop.f32.mrb[5].mxu0 }
 0x104   : > { %v1504_v20 = vadd.f32 %v1503_v19, %v1502_v17  ;;  %v1543_v21 = vpop.f32.mrb[5].mxu1  ;;  %v1505_v22 = vpop.f32.mrb[6].mxu0 }
 0x105   : > { %v1544_v23 = vadd.f32 %v1543_v21, %v1542_v18  ;;  %v1545_v24 = vpop.f32.mrb[6].mxu1  ;;  %v1506_v25 = vpop.f32.mrb[7].mxu0 }
 0x106   : > { %v1003_v26 = vadd.f32 %v1504_v20, %v1380_v2  ;;  %v1507_v27 = vadd.f32 %v1506_v25, %v1505_v22  ;;  %v1546_v28 = vpop.f32.mrb[7].mxu1 }
 0x107   : > { %v1547_v29 = vadd.f32 %v1546_v28, %v1545_v24 }
 0x108   : > { %v1998_v30 = vadd.f32 %v1544_v23, %v1003_v26  ;;  %v1006_v31 = vadd.f32 %v1507_v27, %v1380_v2 }
 0x10a   : > { %v2000_v32 = vadd.f32 %v1547_v29, %v1006_v31  ;;  %v1508_v33 = vpop.f32.mrb[8].mxu0 }
 0x10b   : > { %v1548_v34 = vpop.f32.mrb[8].mxu1  ;;  %v1509_v35 = vpop.f32.mrb[9].mxu0 }
 0x10c   : > { %v1549_v36 = vpop.f32.mrb[9].mxu1  ;;  %v1510_v37 = vadd.f32 %v1509_v35, %v1508_v33  ;;  %v1511_v39 = vpop.f32.mrb[10].mxu0 }
 0x10d   : > { %v1550_v38 = vadd.f32 %v1549_v36, %v1548_v34  ;;  %v1551_v40 = vpop.f32.mrb[10].mxu1  ;;  %v1512_v41 = vpop.f32.mrb[11].mxu0 }
 0x10e   : > { %v1552_v42 = vpop.f32.mrb[11].mxu1  ;;  %v1011_v43 = vadd.f32 %v1510_v37, %v1380_v2  ;;  %v1513_v44 = vadd.f32 %v1512_v41, %v1511_v39 }
 0x10f   : > { %v1553_v45 = vadd.f32 %v1552_v42, %v1551_v40 }
 0x110   : > { %v2002_v46 = vadd.f32 %v1550_v38, %v1011_v43  ;;  %v1014_v47 = vadd.f32 %v1513_v44, %v1380_v2 }
 0x112   : > { %v2004_v48 = vadd.f32 %v1553_v45, %v1014_v47  ;;  %v1514_v49 = vpop.f32.mrb[12].mxu0 }
 0x113   : > { %v1554_v50 = vpop.f32.mrb[12].mxu1  ;;  %v1515_v51 = vpop.f32.mrb[13].mxu0 }
 0x114   : > { %v1516_v52 = vadd.f32 %v1515_v51, %v1514_v49  ;;  %v1555_v53 = vpop.f32.mrb[13].mxu1  ;;  %v1517_v54 = vpop.f32.mrb[14].mxu0 }
 0x115   : > { %v1556_v55 = vadd.f32 %v1555_v53, %v1554_v50  ;;  %v1557_v56 = vpop.f32.mrb[14].mxu1  ;;  %v1518_v57 = vpop.f32.mrb[15].mxu0 }
 0x116   : > { %v1019_v58 = vadd.f32 %v1516_v52, %v1380_v2  ;;  %v1519_v59 = vadd.f32 %v1518_v57, %v1517_v54  ;;  %v1558_v60 = vpop.f32.mrb[15].mxu1 }
 0x117   : > { %v1559_v61 = vadd.f32 %v1558_v60, %v1557_v56 }
 0x118   : > { %v2006_v62 = vadd.f32 %v1556_v55, %v1019_v58  ;;  %v1022_v63 = vadd.f32 %v1519_v59, %v1380_v2 }
 0x11a   : > { %v2008_v0 = vadd.f32 %v1559_v61, %v1022_v63  ;;  %v1576_v1 = vpop.f32.mrb[16].mxu0 }
 0x11b   : > { %v1616_v3 = vpop.f32.mrb[16].mxu1  ;;  %v1577_v4 = vpop.f32.mrb[17].mxu0 }
 0x11c   : > { %v1578_v5 = vadd.f32 %v1577_v4, %v1576_v1  ;;  %v1617_v6 = vpop.f32.mrb[17].mxu1  ;;  %v1579_v7 = vpop.f32.mrb[18].mxu0 }
 0x11d   : > { %v1618_v8 = vadd.f32 %v1617_v6, %v1616_v3  ;;  %v1619_v9 = vpop.f32.mrb[18].mxu1  ;;  %v1580_v10 = vpop.f32.mrb[19].mxu0 }
 0x11e   : > { %v1125_v11 = vadd.f32 %v1578_v5, %v1060_v14  ;;  %v1581_v12 = vadd.f32 %v1580_v10, %v1579_v7  ;;  %v1620_v13 = vpop.f32.mrb[19].mxu1 }
 0x11f   : > { %v1621_v2 = vadd.f32 %v1620_v13, %v1619_v9 }
 0x120   : > { %v1190_v15 = vadd.f32 %v1618_v8, %v1125_v11  ;;  %v1128_v17 = vadd.f32 %v1581_v12, %v1996_v16 }
 0x122   : > { %1256 = vst [vmem:[%s2014_s26] sm:$0xff] %v1190_v15  ;;  %v1193_v18 = vadd.f32 %v1621_v2, %v1128_v17  ;;  %v1582_v19 = vpop.f32.mrb[20].mxu0  ;;  %v1234_v22 = vmul.f32 %v1190_v15, %v1190_v15 }
 0x123   : > { %v1622_v20 = vpop.f32.mrb[20].mxu1  ;;  %v1583_v21 = vpop.f32.mrb[21].mxu0 }
 0x124   : > { %v1220_v14 = vadd.f32 %v1193_v18, %v1190_v15  ;;  %v1235_v23 = vmul.f32 %v1193_v18, %v1193_v18  ;;  %1257 = vst [vmem:[%s2014_s26 + $0x8] sm:$0xff] %v1193_v18  ;;  %v1584_v24 = vadd.f32 %v1583_v21, %v1582_v19  ;;  %v1623_v25 = vpop.f32.mrb[21].mxu1  ;;  %v1585_v26 = vpop.f32.mrb[22].mxu0 }
 0x125   : > { %v1624_v27 = vadd.f32 %v1623_v25, %v1622_v20  ;;  %v1625_v28 = vpop.f32.mrb[22].mxu1  ;;  %v1586_v29 = vpop.f32.mrb[23].mxu0 }
 0x126   : > { %v1242_v31 = vadd.f32 %v1235_v23, %v1234_v22  ;;  %v1133_v33 = vadd.f32 %v1584_v24, %v1998_v30  ;;  %v1587_v16 = vadd.f32 %v1586_v29, %v1585_v26  ;;  %v1626_v34 = vpop.f32.mrb[23].mxu1 }
 0x127   : > { %v1627_v35 = vadd.f32 %v1626_v34, %v1625_v28 }
 0x128   : > { %v1198_v36 = vadd.f32 %v1624_v27, %v1133_v33  ;;  %v1136_v37 = vadd.f32 %v1587_v16, %v2000_v32 }
 0x12a   : > { %v1221_v38 = vadd.f32 %v1220_v14, %v1198_v36  ;;  %v1236_v39 = vmul.f32 %v1198_v36, %v1198_v36  ;;  %1258 = vst [vmem:[%s2014_s26 + $0x10] sm:$0xff] %v1198_v36  ;;  %v1201_v40 = vadd.f32 %v1627_v35, %v1136_v37  ;;  %v1588_v41 = vpop.f32.mrb[24].mxu0 }
 0x12b   : > { %v1628_v42 = vpop.f32.mrb[24].mxu1  ;;  %v1589_v43 = vpop.f32.mrb[25].mxu0 }
 0x12c   : > { %v1243_v44 = vadd.f32 %v1242_v31, %v1236_v39  ;;  %v1222_v45 = vadd.f32 %v1221_v38, %v1201_v40  ;;  %v1237_v47 = vmul.f32 %v1201_v40, %v1201_v40  ;;  %1259 = vst [vmem:[%s2014_s26 + $0x18] sm:$0xff] %v1201_v40  ;;  %v1590_v30 = vadd.f32 %v1589_v43, %v1588_v41  ;;  %v1629_v49 = vpop.f32.mrb[25].mxu1  ;;  %v1591_v50 = vpop.f32.mrb[26].mxu0 }
 0x12d   : > { %v1630_v51 = vadd.f32 %v1629_v49, %v1628_v42  ;;  %v1631_v52 = vpop.f32.mrb[26].mxu1  ;;  %v1592_v53 = vpop.f32.mrb[27].mxu0 }
 0x12e   : > { %v1244_v54 = vadd.f32 %v1243_v44, %v1237_v47  ;;  %v1141_v32 = vadd.f32 %v1590_v30, %v2002_v46  ;;  %v1593_v55 = vadd.f32 %v1592_v53, %v1591_v50  ;;  %v1632_v56 = vpop.f32.mrb[27].mxu1 }
 0x12f   : > { %v1633_v57 = vadd.f32 %v1632_v56, %v1631_v52 }
 0x130   : > { %v1206_v58 = vadd.f32 %v1630_v51, %v1141_v32  ;;  %v1144_v59 = vadd.f32 %v1593_v55, %v2004_v48 }
 0x132   : > { %v1223_v60 = vadd.f32 %v1222_v45, %v1206_v58  ;;  %v1238_v61 = vmul.f32 %v1206_v58, %v1206_v58  ;;  %1260 = vst [vmem:[%s2014_s26 + $0x20] sm:$0xff] %v1206_v58  ;;  %v1209_v63 = vadd.f32 %v1633_v57, %v1144_v59  ;;  %v1594_v1 = vpop.f32.mrb[28].mxu0 }
 0x133   : > { %v1634_v3 = vpop.f32.mrb[28].mxu1  ;;  %v1595_v4 = vpop.f32.mrb[29].mxu0 }
 0x134   : > { %v1245_v5 = vadd.f32 %v1244_v54, %v1238_v61  ;;  %v1224_v6 = vadd.f32 %v1223_v60, %v1209_v63  ;;  %v1239_v7 = vmul.f32 %v1209_v63, %v1209_v63  ;;  %1261 = vst [vmem:[%s2014_s26 + $0x28] sm:$0xff] %v1209_v63  ;;  %v1596_v46 = vadd.f32 %v1595_v4, %v1594_v1  ;;  %v1635_v8 = vpop.f32.mrb[29].mxu1  ;;  %v1597_v9 = vpop.f32.mrb[30].mxu0 }
 0x135   : > { %v1636_v10 = vadd.f32 %v1635_v8, %v1634_v3  ;;  %v1637_v11 = vpop.f32.mrb[30].mxu1  ;;  %v1598_v12 = vpop.f32.mrb[31].mxu0 }
 0x136   : > { %v1246_v48 = vadd.f32 %v1245_v5, %v1239_v7  ;;  %v1149_v13 = vadd.f32 %v1596_v46, %v2006_v62  ;;  %v1599_v2 = vadd.f32 %v1598_v12, %v1597_v9  ;;  %v1638_v15 = vpop.f32.mrb[31].mxu1 }
 0x137   : > { %v1639_v17 = vadd.f32 %v1638_v15, %v1637_v11 }
 0x138   : > { %v1214_v18 = vadd.f32 %v1636_v10, %v1149_v13  ;;  %v1152_v19 = vadd.f32 %v1599_v2, %v2008_v0 }
 0x13a   : > { %v1225_v20 = vadd.f32 %v1224_v6, %v1214_v18  ;;  %v1240_v21 = vmul.f32 %v1214_v18, %v1214_v18  ;;  %1262 = vst [vmem:[%s2014_s26 + $0x30] sm:$0xff] %v1214_v18  ;;  %v1217_v22 = vadd.f32 %v1639_v17, %v1152_v19 }
 0x13c   : > { %v1247_v14 = vadd.f32 %v1246_v48, %v1240_v21  ;;  %v1226_v23 = vadd.f32 %v1225_v20, %v1217_v22  ;;  %v1241_v24 = vmul.f32 %v1217_v22, %v1217_v22  ;;  %1263 = vst [vmem:[%s2014_s26 + $0x38] sm:$0xff] %v1217_v22 }
 0x13e   : > { %v1227_v25 = vrot.slane %v1226_v23, 4  ;;  %v1248_v26 = vadd.f32 %v1247_v14, %v1241_v24 }
 0x140   : > { %v1228_v62 = vadd.f32 %v1227_v25, %v1226_v23  ;;  %v1249_v27 = vrot.slane %v1248_v26, 4 }
 0x142   : > { %v1229_v28 = vrot.slane %v1228_v62, 2  ;;  %v1250_v29 = vadd.f32 %v1249_v27, %v1248_v26 }
 0x144   : > { %v1230_v31 = vadd.f32 %v1229_v28, %v1228_v62  ;;  %v1251_v33 = vrot.slane %v1250_v29, 2 }
 0x146   : > { %v1231_v0 = vrot.slane %v1230_v31, 1  ;;  %v1252_v16 = vadd.f32 %v1251_v33, %v1250_v29 }
 0x148   : > { %v1232_v34 = vadd.f32 %v1231_v0, %v1230_v31  ;;  %v1253_v35 = vrot.slane %v1252_v16, 1 }
 0x14a   : > { %1233 = vst [vmem:[%s244_s28] sm:$0x1] %v1232_v34  ;;  %v1254_v36 = vadd.f32 %v1253_v35, %v1252_v16 }
 0x14c   : > { %1255 = vst [vmem:[%s247_s7] sm:$0x1] %v1254_v36 }
 0x14d PF: > { %s16_s18 = sadd.s32 1, %s1718_s18  }
 0x14e   : > { %p13_p5 = scmp.ge.s32.totalorder %s16_s18, 4  }
 0x150   :  { %15 = sbr.rel (!%p13_p5) target bundleno = 1 (0x1), region = 86 }

// kernel: discriminator_forward.8
= control target key start
LH: loop header
LB: loop body
LE: loop exit
PB: predicated region body
PF: predicated region fallthrough
CT: control target
= control target key end

     0   :  { %s3193_s18 = smov 0   ;;  %s4064_s0 = inlined_call_operand.vmem [shape: bf16[32,2048], index: 0, kind: input, shape index: {}]   ;;  %s4065_s1 = inlined_call_operand.vmem [shape: bf16[2048,256], index: 1, kind: input, shape index: {}]   ;;  %s4066_s2 = inlined_call_operand.vmem [shape: f32[1,256], index: 2, kind: input, shape index: {}]   ;;  %s4067_s3 = inlined_call_operand.vmem [shape: f32[32,256], index: 3, kind: output, shape index: {0}]   ;;  %s4068_s4 = inlined_call_operand.vmem [shape: f32[2,1,256], index: 4, kind: output, shape index: {1}]   ;;  %s4069_s5 = inlined_call_operand.vmem [shape: f32[2,1,256], index: 5, kind: output, shape index: {2}]  }
   0x1 LB: > { %s3199_s19 = sadd.s32 4294967295, %s3160_s18   ;;  %p2444_p0 = scmp.ge.s32.totalorder %s3160_s18, 1  ;;  %s3160_s18 = sphi %s3193_s18, %s16_s18  }
   0x2   : > { %p194_p1 = scmp.lt.s32.totalorder %s3160_s18, 3 }
   0x4   : > { %p195_p2 = pnand %p2444_p0, %p194_p1 }
   0x5   : > { %v2770_v0 = vld [vmem:[%s4065_s1 + $0x4] ss:$8 sps:$4 sm:$0xff] (!%p195_p2)   ;;  %v2774_v2 = vld [vmem:[%s4065_s1] ss:$8 sps:$4 sm:$0xff] (!%p195_p2)   ;;  %v2776_v4 = vld [vmem:[%s4065_s1 + $0x14] ss:$8 sps:$4 sm:$0xff] (!%p195_p2)  }
   0x6   : > { %198 = sbr.rel (%p195_p2) target bundleno = 504 (0x1f8), region = 32  ;;  %v2772_v1 = vld [vmem:[%s4065_s1 + $0x404] ss:$8 sps:$4 sm:$0xff] (!%p195_p2)   ;;  %1898 = vmatprep.subr.bf16.mxu1 (!%p195_p2), %v2770_v0  ;;  %v2775_v3 = vld [vmem:[%s4065_s1 + $0x400] ss:$8 sps:$4 sm:$0xff] (!%p195_p2)   ;;  %s2445_s9 = sshll.u32 (!%p195_p2), %s3199_s19, 1 }
   0x7   : > { %2070 = vmatprep.subr.bf16.mxu0 (!%p195_p2), %v2772_v1  ;;  %1899 = vmatpush1.bf16.msra.mxu1 (!%p195_p2), %v2774_v2  ;;  %v2778_v5 = vld [vmem:[%s4065_s1 + $0x414] ss:$8 sps:$4 sm:$0xff] (!%p195_p2)   ;;  %v2780_v6 = vld [vmem:[%s4065_s1 + $0x10] ss:$8 sps:$4 sm:$0xff] (!%p195_p2)   ;;  %v2782_v8 = vld [vmem:[%s4065_s1 + $0x24] ss:$8 sps:$4 sm:$0xff] (!%p195_p2)  }
   0x8   : > { %2071 = vmatpush1.bf16.msra.mxu0 (!%p195_p2), %v2775_v3  ;;  %1900 = vmatprep.subr.bf16.mxu1 (!%p195_p2), %v2776_v4  ;;  %v2781_v7 = vld [vmem:[%s4065_s1 + $0x410] ss:$8 sps:$4 sm:$0xff] (!%p195_p2)   ;;  %v2784_v9 = vld [vmem:[%s4065_s1 + $0x424] ss:$8 sps:$4 sm:$0xff] (!%p195_p2)   ;;  %v2786_v10 = vld [vmem:[%s4065_s1 + $0x20] ss:$8 sps:$4 sm:$0xff] (!%p195_p2)  }
   0x9   : > { %2072 = vmatprep.subr.bf16.mxu0 (!%p195_p2), %v2778_v5  ;;  %v2787_v11 = vld [vmem:[%s4065_s1 + $0x420] ss:$8 sps:$4 sm:$0xff] (!%p195_p2)   ;;  %v2788_v12 = vld [vmem:[%s4065_s1 + $0x34] ss:$8 sps:$4 sm:$0xff] (!%p195_p2)   ;;  %v2792_v14 = vld [vmem:[%s4065_s1 + $0x30] ss:$8 sps:$4 sm:$0xff] (!%p195_p2)  }
   0xa   : > { %v2790_v13 = vld [vmem:[%s4065_s1 + $0x434] ss:$8 sps:$4 sm:$0xff] (!%p195_p2)   ;;  %v2793_v15 = vld [vmem:[%s4065_s1 + $0x430] ss:$8 sps:$4 sm:$0xff] (!%p195_p2)   ;;  %v2794_v16 = vld [vmem:[%s4065_s1 + $0x44] ss:$8 sps:$4 sm:$0xff] (!%p195_p2)  }
   0xb   : > { %1901 = vmatpush1.bf16.msra.mxu1 (!%p195_p2), %v2780_v6  ;;  %v2796_v17 = vld [vmem:[%s4065_s1 + $0x444] ss:$8 sps:$4 sm:$0xff] (!%p195_p2)   ;;  %v2798_v18 = vld [vmem:[%s4065_s1 + $0x40] ss:$8 sps:$4 sm:$0xff] (!%p195_p2)   ;;  %v2800_v20 = vld [vmem:[%s4065_s1 + $0x54] ss:$8 sps:$4 sm:$0xff] (!%p195_p2)  }
   0xc   : > { %2073 = vmatpush1.bf16.msra.mxu0 (!%p195_p2), %v2781_v7  ;;  %1902 = vmatprep.subr.bf16.mxu1 (!%p195_p2), %v2782_v8  ;;  %v2799_v19 = vld [vmem:[%s4065_s1 + $0x440] ss:$8 sps:$4 sm:$0xff] (!%p195_p2)   ;;  %v2802_v21 = vld [vmem:[%s4065_s1 + $0x454] ss:$8 sps:$4 sm:$0xff] (!%p195_p2)   ;;  %v2804_v22 = vld [vmem:[%s4065_s1 + $0x50] ss:$8 sps:$4 sm:$0xff] (!%p195_p2)  }
   0xd   : > { %2074 = vmatprep.subr.bf16.mxu0 %v2784_v9  ;;  %v2805_v23 = vld [vmem:[%s4065_s1 + $0x450] ss:$8 sps:$4 sm:$0xff]   ;;  %v2806_v24 = vld [vmem:[%s4065_s1 + $0x64] ss:$8 sps:$4 sm:$0xff]   ;;  %v2810_v26 = vld [vmem:[%s4065_s1 + $0x60] ss:$8 sps:$4 sm:$0xff]  }
   0xe   : > { %v2808_v25 = vld [vmem:[%s4065_s1 + $0x464] ss:$8 sps:$4 sm:$0xff]   ;;  %v2811_v27 = vld [vmem:[%s4065_s1 + $0x460] ss:$8 sps:$4 sm:$0xff]   ;;  %v2812_v28 = vld [vmem:[%s4065_s1 + $0x74] ss:$8 sps:$4 sm:$0xff]  }
   0xf   : > { %1903 = vmatpush1.bf16.msra.mxu1 %v2786_v10  ;;  %v2814_v29 = vld [vmem:[%s4065_s1 + $0x474] ss:$8 sps:$4 sm:$0xff]   ;;  %v2816_v30 = vld [vmem:[%s4065_s1 + $0x70] ss:$8 sps:$4 sm:$0xff]   ;;  %v2818_v32 = vld [vmem:[%s4065_s1 + $0x84] ss:$8 sps:$4 sm:$0xff]  }
  0x10   : > { %2075 = vmatpush1.bf16.msra.mxu0 %v2787_v11  ;;  %1904 = vmatprep.subr.bf16.mxu1 %v2788_v12  ;;  %v2817_v31 = vld [vmem:[%s4065_s1 + $0x470] ss:$8 sps:$4 sm:$0xff]   ;;  %p233_p3 = scmp.lt.s32.totalorder %s2445_s9, 3  ;;  %v2820_v33 = vld [vmem:[%s4065_s1 + $0x484] ss:$8 sps:$4 sm:$0xff]   ;;  %p246_p4 = scmp.lt.s32.totalorder %s3199_s19, 1 }
  0x11   : > { %2076 = vmatprep.subr.bf16.mxu0 %v2790_v13  ;;  %v2822_v34 = vld [vmem:[%s4065_s1 + $0x80] ss:$8 sps:$4 sm:$0xff]   ;;  %v2824_v36 = vld [vmem:[%s4065_s1 + $0x94] ss:$8 sps:$4 sm:$0xff]   ;;  %v2828_v38 = vld [vmem:[%s4065_s1 + $0x90] ss:$8 sps:$4 sm:$0xff]  }
  0x12   : > { %v2823_v35 = vld [vmem:[%s4065_s1 + $0x480] ss:$8 sps:$4 sm:$0xff]   ;;  %s4071_s9 = smov (!%p233_p3, %s2445_s9), 3  ;;  %v2826_v37 = vld [vmem:[%s4065_s1 + $0x494] ss:$8 sps:$4 sm:$0xff]   ;;  %s4073_s19 = smov (!%p246_p4, %s3199_s19), 1 }
  0x13   : > { %1905 = vmatpush1.bf16.msra.mxu1 %v2792_v14  ;;  %v2829_v39 = vld [vmem:[%s4065_s1 + $0x490] ss:$8 sps:$4 sm:$0xff]   ;;  %v2830_v40 = vld [vmem:[%s4065_s1 + $0xa4] ss:$8 sps:$4 sm:$0xff]   ;;  %s2727_s10 = sshll.u32 %s4071_s9, 6  ;;  %s2728_s22 = sshll.u32 %s4071_s9, 4 }
  0x14   : > { %2077 = vmatpush1.bf16.msra.mxu0 %v2793_v15  ;;  %1906 = vmatprep.subr.bf16.mxu1 %v2794_v16  ;;  %v2832_v41 = vld [vmem:[%s4065_s1 + $0x4a4] ss:$8 sps:$4 sm:$0xff]   ;;  %v2834_v42 = vld [vmem:[%s4065_s1 + $0xa0] ss:$8 sps:$4 sm:$0xff]   ;;  %s3342_s21 = scalar_lea.vmem %s4064_s0, %s2727_s10  ;;  %v2836_v44 = vld [vmem:[%s4065_s1 + $0xb4] ss:$8 sps:$4 sm:$0xff]   ;;  %s244_s25 = scalar_lea.vmem %s4067_s3, %s2728_s22 }
  0x15   : > { %2078 = vmatprep.subr.bf16.mxu0 %v2796_v17  ;;  %v2835_v43 = vld [vmem:[%s4065_s1 + $0x4a0] ss:$8 sps:$4 sm:$0xff]   ;;  %v2838_v45 = vld [vmem:[%s4065_s1 + $0x4b4] ss:$8 sps:$4 sm:$0xff]   ;;  %v2840_v46 = vld [vmem:[%s4065_s1 + $0xb0] ss:$8 sps:$4 sm:$0xff]  }
  0x16   : > { %v2841_v47 = vld [vmem:[%s4065_s1 + $0x4b0] ss:$8 sps:$4 sm:$0xff]   ;;  %v254_v48 = vld [vmem:[%s3342_s21] sm:$0xff]  ;;  %v2848_v58 = vld [vmem:[%s4065_s1 + $0xd4] ss:$8 sps:$4 sm:$0xff]   ;;  %s2451_s9 = sshll.u32 %s4073_s19, 1 }
  0x17   : > { %1907 = vmatpush1.bf16.msra.mxu1 %v2798_v18  ;;  %v262_v49 = vld [vmem:[%s3342_s21 + $0x40] sm:$0xff]  ;;  %v2850_v59 = vld [vmem:[%s4065_s1 + $0x4d4] ss:$8 sps:$4 sm:$0xff]   ;;  %v2852_v60 = vld [vmem:[%s4065_s1 + $0xd0] ss:$8 sps:$4 sm:$0xff]   ;;  %s249_s28 = scalar_lea.vmem %s4068_s4, %s2451_s9  ;;  %s253_s6 = scalar_lea.vmem %s4069_s5, %s2451_s9 }
  0x18   : > { %2079 = vmatpush1.bf16.msra.mxu0 %v2799_v19  ;;  %1908 = vmatprep.subr.bf16.mxu1 %v2800_v20  ;;  %v2842_v50 = vld [vmem:[%s4065_s1 + $0xc4] ss:$8 sps:$4 sm:$0xff]   ;;  %v2454_v52 = vcombine.high %v254_v48, %v262_v49  ;;  %v2846_v56 = vld [vmem:[%s4065_s1 + $0xc0] ss:$8 sps:$4 sm:$0xff]   ;;  %v2853_v61 = vld [vmem:[%s4065_s1 + $0x4d0] ss:$8 sps:$4 sm:$0xff]   ;;  %v2453_v8 = vcombine.low %v254_v48, %v262_v49 }
  0x19   : > { %2080 = vmatprep.subr.bf16.mxu0 %v2802_v21  ;;  %v2844_v51 = vld [vmem:[%s4065_s1 + $0x4c4] ss:$8 sps:$4 sm:$0xff]   ;;  %v2847_v57 = vld [vmem:[%s4065_s1 + $0x4c0] ss:$8 sps:$4 sm:$0xff]   ;;  %v2860_v2 = vld [vmem:[%s4065_s1 + $0xf4] ss:$8 sps:$4 sm:$0xff]  }
  0x1a   : > { %v258_v53 = vld [vmem:[%s3342_s21 + $0x20] sm:$0xff]  ;;  %1930 = vmatprep.mubr.bf16.mxu1 %v2454_v52  ;;  %v2862_v3 = vld [vmem:[%s4065_s1 + $0x4f4] ss:$8 sps:$4 sm:$0xff]   ;;  %v2864_v4 = vld [vmem:[%s4065_s1 + $0xf0] ss:$8 sps:$4 sm:$0xff]  }
  0x1b   : > { %1909 = vmatpush1.bf16.msra.mxu1 %v2804_v22  ;;  %v266_v54 = vld [vmem:[%s3342_s21 + $0x60] sm:$0xff]  ;;  %v2865_v5 = vld [vmem:[%s4065_s1 + $0x4f0] ss:$8 sps:$4 sm:$0xff]   ;;  %v2874_v12 = vld [vmem:[%s4065_s1 + $0x114] ss:$8 sps:$4 sm:$0xff]  }
  0x1c   : > { %2081 = vmatpush1.bf16.msra.mxu0 %v2805_v23  ;;  %1910 = vmatprep.subr.bf16.mxu1 %v2806_v24  ;;  %v2462_v55 = vcombine.high %v258_v53, %v266_v54  ;;  %v2854_v62 = vld [vmem:[%s4065_s1 + $0xe4] ss:$8 sps:$4 sm:$0xff]   ;;  %v2858_v0 = vld [vmem:[%s4065_s1 + $0xe0] ss:$8 sps:$4 sm:$0xff]   ;;  %v2461_v10 = vcombine.low %v258_v53, %v266_v54  ;;  %v2877_v13 = vld [vmem:[%s4065_s1 + $0x514] ss:$8 sps:$4 sm:$0xff]  }
  0x1d   : > { %2082 = vmatprep.subr.bf16.mxu0 %v2808_v25  ;;  %v2856_v63 = vld [vmem:[%s4065_s1 + $0x4e4] ss:$8 sps:$4 sm:$0xff]   ;;  %v2859_v1 = vld [vmem:[%s4065_s1 + $0x4e0] ss:$8 sps:$4 sm:$0xff]   ;;  %v2872_v14 = vld [vmem:[%s4065_s1 + $0x110] ss:$8 sps:$4 sm:$0xff]  }
  0x1e   : > { %2102 = vmatprep.mubr.bf16.mxu0 %v2462_v55  ;;  %v2868_v6 = vld [vmem:[%s4065_s1 + $0x104] ss:$8 sps:$4 sm:$0xff]   ;;  %v2866_v9 = vld [vmem:[%s4065_s1 + $0x100] ss:$8 sps:$4 sm:$0xff]   ;;  %v2875_v15 = vld [vmem:[%s4065_s1 + $0x510] ss:$8 sps:$4 sm:$0xff]  }
  0x1f   : > { %1911 = vmatpush1.bf16.msra.mxu1 %v2810_v26  ;;  %v2871_v7 = vld [vmem:[%s4065_s1 + $0x504] ss:$8 sps:$4 sm:$0xff]   ;;  %v2869_v11 = vld [vmem:[%s4065_s1 + $0x500] ss:$8 sps:$4 sm:$0xff]   ;;  %v2886_v20 = vld [vmem:[%s4065_s1 + $0x134] ss:$8 sps:$4 sm:$0xff]  }
  0x20   : > { %2083 = vmatpush1.bf16.msra.mxu0 %v2811_v27  ;;  %1912 = vmatprep.subr.bf16.mxu1 %v2812_v28  ;;  %v2880_v16 = vld [vmem:[%s4065_s1 + $0x124] ss:$8 sps:$4 sm:$0xff]   ;;  %v2878_v18 = vld [vmem:[%s4065_s1 + $0x120] ss:$8 sps:$4 sm:$0xff]   ;;  %v2889_v21 = vld [vmem:[%s4065_s1 + $0x534] ss:$8 sps:$4 sm:$0xff]  }
  0x21   : > { %2084 = vmatprep.subr.bf16.mxu0 %v2814_v29  ;;  %v2883_v17 = vld [vmem:[%s4065_s1 + $0x524] ss:$8 sps:$4 sm:$0xff]   ;;  %v2881_v19 = vld [vmem:[%s4065_s1 + $0x520] ss:$8 sps:$4 sm:$0xff]   ;;  %v2884_v22 = vld [vmem:[%s4065_s1 + $0x130] ss:$8 sps:$4 sm:$0xff]  }
  0x22   : > { %v2887_v23 = vld [vmem:[%s4065_s1 + $0x530] ss:$8 sps:$4 sm:$0xff]   ;;  %v2892_v24 = vld [vmem:[%s4065_s1 + $0x144] ss:$8 sps:$4 sm:$0xff]   ;;  %v2890_v26 = vld [vmem:[%s4065_s1 + $0x140] ss:$8 sps:$4 sm:$0xff]  }
  0x23   : > { %1913 = vmatpush1.bf16.msra.mxu1 %v2816_v30  ;;  %v2895_v25 = vld [vmem:[%s4065_s1 + $0x544] ss:$8 sps:$4 sm:$0xff]   ;;  %v2893_v27 = vld [vmem:[%s4065_s1 + $0x540] ss:$8 sps:$4 sm:$0xff]   ;;  %v2898_v28 = vld [vmem:[%s4065_s1 + $0x154] ss:$8 sps:$4 sm:$0xff]  }
  0x24   : > { %2085 = vmatpush1.bf16.msra.mxu0 %v2817_v31  ;;  %1914 = vmatprep.subr.bf16.mxu1 %v2818_v32  ;;  %v2901_v29 = vld [vmem:[%s4065_s1 + $0x554] ss:$8 sps:$4 sm:$0xff]   ;;  %v2896_v30 = vld [vmem:[%s4065_s1 + $0x150] ss:$8 sps:$4 sm:$0xff]   ;;  %v2904_v32 = vld [vmem:[%s4065_s1 + $0x164] ss:$8 sps:$4 sm:$0xff]  }
  0x25   : > { %2086 = vmatprep.subr.bf16.mxu0 %v2820_v33  ;;  %v2899_v31 = vld [vmem:[%s4065_s1 + $0x550] ss:$8 sps:$4 sm:$0xff]   ;;  %v2907_v33 = vld [vmem:[%s4065_s1 + $0x564] ss:$8 sps:$4 sm:$0xff]   ;;  %v2914_v48 = vld [vmem:[%s4065_s1 + $0x180] ss:$8 sps:$4 sm:$0xff]  }
  0x26   : > { %v2917_v49 = vld [vmem:[%s4065_s1 + $0x580] ss:$8 sps:$4 sm:$0xff]   ;;  %v2920_v52 = vld [vmem:[%s4065_s1 + $0x190] ss:$8 sps:$4 sm:$0xff]   ;;  %v2928_v54 = vld [vmem:[%s4065_s1 + $0x1a4] ss:$8 sps:$4 sm:$0xff]  }
  0x27   : > { %1915 = vmatpush1.bf16.msra.mxu1 %v2822_v34  ;;  %v2902_v34 = vld [vmem:[%s4065_s1 + $0x160] ss:$8 sps:$4 sm:$0xff]   ;;  %v2923_v53 = vld [vmem:[%s4065_s1 + $0x590] ss:$8 sps:$4 sm:$0xff]   ;;  %v2931_v55 = vld [vmem:[%s4065_s1 + $0x5a4] ss:$8 sps:$4 sm:$0xff]  }
  0x28   : > { %2087 = vmatpush1.bf16.msra.mxu0 %v2823_v35  ;;  %1916 = vmatprep.subr.bf16.mxu1 %v2824_v36  ;;  %v2905_v35 = vld [vmem:[%s4065_s1 + $0x560] ss:$8 sps:$4 sm:$0xff]  }
  0x29   : > { %2088 = vmatprep.subr.bf16.mxu0 %v2826_v37  ;;  %v3493_v36 = vld [vmem:[%s3342_s21 + $0x8] sm:$0xff] }
  0x2a   : > { %v3496_v37 = vld [vmem:[%s3342_s21 + $0x48] sm:$0xff] }
  0x2b   : > { %1917 = vmatpush1.bf16.msra.mxu1 %v2828_v38  ;;  %v2910_v38 = vld [vmem:[%s4065_s1 + $0x174] ss:$8 sps:$4 sm:$0xff]  }
  0x2c   : > { %2089 = vmatpush1.bf16.msra.mxu0 %v2829_v39  ;;  %1918 = vmatprep.subr.bf16.mxu1 %v2830_v40  ;;  %v2913_v39 = vld [vmem:[%s4065_s1 + $0x574] ss:$8 sps:$4 sm:$0xff]   ;;  %v2456_v40 = vcombine.high %v3493_v36, %v3496_v37 }
  0x2d   : > { %2090 = vmatprep.subr.bf16.mxu0 %v2832_v41  ;;  %v3507_v41 = vld [vmem:[%s3342_s21 + $0x28] sm:$0xff] }
  0x2f   : > { %1919 = vmatpush1.bf16.msra.mxu1 %v2834_v42  ;;  %v3510_v42 = vld [vmem:[%s3342_s21 + $0x68] sm:$0xff] }
  0x30   : > { %2091 = vmatpush1.bf16.msra.mxu0 %v2835_v43  ;;  %1920 = vmatprep.subr.bf16.mxu1 %v2836_v44  ;;  %v2464_v43 = vcombine.high %v3507_v41, %v3510_v42  ;;  %v2908_v44 = vld [vmem:[%s4065_s1 + $0x170] ss:$8 sps:$4 sm:$0xff]  }
  0x31   : > { %2092 = vmatprep.subr.bf16.mxu0 %v2838_v45  ;;  %v2911_v45 = vld [vmem:[%s4065_s1 + $0x570] ss:$8 sps:$4 sm:$0xff]  }
  0x33   : > { %1921 = vmatpush1.bf16.msra.mxu1 %v2840_v46  ;;  %v2916_v46 = vld [vmem:[%s4065_s1 + $0x184] ss:$8 sps:$4 sm:$0xff]  }
  0x34   : > { %2093 = vmatpush1.bf16.msra.mxu0 %v2841_v47  ;;  %1922 = vmatprep.subr.bf16.mxu1 %v2842_v50  ;;  %v2919_v47 = vld [vmem:[%s4065_s1 + $0x584] ss:$8 sps:$4 sm:$0xff]   ;;  %v2922_v50 = vld [vmem:[%s4065_s1 + $0x194] ss:$8 sps:$4 sm:$0xff]  }
  0x35   : > { %2094 = vmatprep.subr.bf16.mxu0 %v2844_v51  ;;  %v2925_v51 = vld [vmem:[%s4065_s1 + $0x594] ss:$8 sps:$4 sm:$0xff]  }
  0x37   : > { %1923 = vmatpush1.bf16.msra.mxu1 %v2846_v56  ;;  %v2926_v56 = vld [vmem:[%s4065_s1 + $0x1a0] ss:$8 sps:$4 sm:$0xff]  }
  0x38   : > { %2095 = vmatpush1.bf16.msra.mxu0 %v2847_v57  ;;  %1924 = vmatprep.subr.bf16.mxu1 %v2848_v58  ;;  %v2929_v57 = vld [vmem:[%s4065_s1 + $0x5a0] ss:$8 sps:$4 sm:$0xff]   ;;  %v2934_v58 = vld [vmem:[%s4065_s1 + $0x1b4] ss:$8 sps:$4 sm:$0xff]  }
  0x39   : > { %2096 = vmatprep.subr.bf16.mxu0 %v2850_v59  ;;  %v2937_v59 = vld [vmem:[%s4065_s1 + $0x5b4] ss:$8 sps:$4 sm:$0xff]  }
  0x3b   : > { %1925 = vmatpush1.bf16.msra.mxu1 %v2852_v60  ;;  %v2932_v60 = vld [vmem:[%s4065_s1 + $0x1b0] ss:$8 sps:$4 sm:$0xff]  }
  0x3c   : > { %2097 = vmatpush1.bf16.msra.mxu0 %v2853_v61  ;;  %1926 = vmatprep.subr.bf16.mxu1 %v2854_v62  ;;  %v2935_v61 = vld [vmem:[%s4065_s1 + $0x5b0] ss:$8 sps:$4 sm:$0xff]   ;;  %v2940_v62 = vld [vmem:[%s4065_s1 + $0x1c4] ss:$8 sps:$4 sm:$0xff]  }
  0x3d   : > { %2098 = vmatprep.subr.bf16.mxu0 %v2856_v63  ;;  %v2943_v63 = vld [vmem:[%s4065_s1 + $0x5c4] ss:$8 sps:$4 sm:$0xff]  }
  0x3f   : > { %1927 = vmatpush1.bf16.msra.mxu1 %v2858_v0  ;;  %v2938_v0 = vld [vmem:[%s4065_s1 + $0x1c0] ss:$8 sps:$4 sm:$0xff]  }
  0x40   : > { %2099 = vmatpush1.bf16.msra.mxu0 %v2859_v1  ;;  %1928 = vmatprep.subr.bf16.mxu1 %v2860_v2  ;;  %v2941_v1 = vld [vmem:[%s4065_s1 + $0x5c0] ss:$8 sps:$4 sm:$0xff]   ;;  %v2946_v2 = vld [vmem:[%s4065_s1 + $0x1d4] ss:$8 sps:$4 sm:$0xff]  }
  0x41   : > { %2100 = vmatprep.subr.bf16.mxu0 %v2862_v3  ;;  %v2949_v3 = vld [vmem:[%s4065_s1 + $0x5d4] ss:$8 sps:$4 sm:$0xff]  }
  0x43   : > { %1929 = vmatpush1.bf16.msra.mxu1 %v2864_v4  ;;  %v2944_v4 = vld [vmem:[%s4065_s1 + $0x1d0] ss:$8 sps:$4 sm:$0xff]  }
  0x44   : > { %2101 = vmatpush1.bf16.msra.mxu0 %v2865_v5  ;;  %1941 = vmatprep.subr.bf16.mxu1 %v2868_v6  ;;  %v2947_v5 = vld [vmem:[%s4065_s1 + $0x5d0] ss:$8 sps:$4 sm:$0xff]   ;;  %v2952_v6 = vld [vmem:[%s4065_s1 + $0x1e4] ss:$8 sps:$4 sm:$0xff]  }
  0x45   : > { %2113 = vmatprep.subr.bf16.mxu0 %v2871_v7  ;;  %v2955_v7 = vld [vmem:[%s4065_s1 + $0x5e4] ss:$8 sps:$4 sm:$0xff]  }
  0x46   : > { %1931 = vmatmul.mubr.bf16.vlgmr.msra.gmra.mrb[0].mxu1 %v2453_v8  ;;  %v2950_v8 = vld [vmem:[%s4065_s1 + $0x1e0] ss:$8 sps:$4 sm:$0xff]  }
  0x47   : > { %2103 = vmatmul.mubr.bf16.vlgmr.msra.gmra.mrb[0].mxu0 %v2461_v10  ;;  %1942 = vmatpush1.bf16.msra.mxu1 %v2866_v9  ;;  %v2953_v9 = vld [vmem:[%s4065_s1 + $0x5e0] ss:$8 sps:$4 sm:$0xff]   ;;  %v2958_v10 = vld [vmem:[%s4065_s1 + $0x1f4] ss:$8 sps:$4 sm:$0xff]  }
  0x48   : > { %2114 = vmatpush1.bf16.msra.mxu0 %v2869_v11  ;;  %1943 = vmatprep.subr.bf16.mxu1 %v2874_v12  ;;  %v2961_v11 = vld [vmem:[%s4065_s1 + $0x5f4] ss:$8 sps:$4 sm:$0xff]   ;;  %v2956_v12 = vld [vmem:[%s4065_s1 + $0x1f0] ss:$8 sps:$4 sm:$0xff]  }
  0x49   : > { %2115 = vmatprep.subr.bf16.mxu0 %v2877_v13  ;;  %1973 = vmatprep.mubr.bf16.mxu1 %v2456_v40  ;;  %v2959_v13 = vld [vmem:[%s4065_s1 + $0x5f0] ss:$8 sps:$4 sm:$0xff]   ;;  %v2986_v40 = vld [vmem:[%s4065_s1 + $0x240] ss:$8 sps:$4 sm:$0xff]  }
  0x4a   : > { %2145 = vmatprep.mubr.bf16.mxu0 %v2464_v43  ;;  %v2997_v43 = vld [vmem:[%s4065_s1 + $0x654] ss:$8 sps:$4 sm:$0xff]  }
  0x4b   : > { %1944 = vmatpush1.bf16.msra.mxu1 %v2872_v14  ;;  %v2964_v14 = vld [vmem:[%s4065_s1 + $0x204] ss:$8 sps:$4 sm:$0xff]  }
  0x4c   : > { %2116 = vmatpush1.bf16.msra.mxu0 %v2875_v15  ;;  %1945 = vmatprep.subr.bf16.mxu1 %v2880_v16  ;;  %v2967_v15 = vld [vmem:[%s4065_s1 + $0x604] ss:$8 sps:$4 sm:$0xff]   ;;  %v2455_v16 = vcombine.low %v3493_v36, %v3496_v37  ;;  %v2980_v36 = vld [vmem:[%s4065_s1 + $0x230] ss:$8 sps:$4 sm:$0xff]  }
  0x4d   : > { %2117 = vmatprep.subr.bf16.mxu0 %v2883_v17  ;;  %v2962_v17 = vld [vmem:[%s4065_s1 + $0x200] ss:$8 sps:$4 sm:$0xff]   ;;  %v2983_v37 = vld [vmem:[%s4065_s1 + $0x630] ss:$8 sps:$4 sm:$0xff]  }
  0x4f   : > { %1946 = vmatpush1.bf16.msra.mxu1 %v2878_v18  ;;  %v2463_v18 = vcombine.low %v3507_v41, %v3510_v42  ;;  %v2989_v41 = vld [vmem:[%s4065_s1 + $0x640] ss:$8 sps:$4 sm:$0xff]   ;;  %v2994_v42 = vld [vmem:[%s4065_s1 + $0x254] ss:$8 sps:$4 sm:$0xff]  }
  0x50   : > { %2118 = vmatpush1.bf16.msra.mxu0 %v2881_v19  ;;  %1947 = vmatprep.subr.bf16.mxu1 %v2886_v20  ;;  %v2965_v19 = vld [vmem:[%s4065_s1 + $0x600] ss:$8 sps:$4 sm:$0xff]   ;;  %v2970_v20 = vld [vmem:[%s4065_s1 + $0x214] ss:$8 sps:$4 sm:$0xff]  }
  0x51   : > { %2119 = vmatprep.subr.bf16.mxu0 %v2889_v21  ;;  %v2973_v21 = vld [vmem:[%s4065_s1 + $0x614] ss:$8 sps:$4 sm:$0xff]  }
  0x53   : > { %1948 = vmatpush1.bf16.msra.mxu1 %v2884_v22  ;;  %v2968_v22 = vld [vmem:[%s4065_s1 + $0x210] ss:$8 sps:$4 sm:$0xff]  }
  0x54   : > { %2120 = vmatpush1.bf16.msra.mxu0 %v2887_v23  ;;  %1949 = vmatprep.subr.bf16.mxu1 %v2892_v24  ;;  %v2971_v23 = vld [vmem:[%s4065_s1 + $0x610] ss:$8 sps:$4 sm:$0xff]  }
  0x55   : > { %2121 = vmatprep.subr.bf16.mxu0 %v2895_v25  ;;  %v3645_v24 = vld [vmem:[%s3342_s21 + $0x10] sm:$0xff] }
  0x56   : > { %v3648_v25 = vld [vmem:[%s3342_s21 + $0x50] sm:$0xff] }
  0x57   : > { %1950 = vmatpush1.bf16.msra.mxu1 %v2890_v26  ;;  %v2976_v26 = vld [vmem:[%s4065_s1 + $0x224] ss:$8 sps:$4 sm:$0xff]  }
  0x58   : > { %2122 = vmatpush1.bf16.msra.mxu0 %v2893_v27  ;;  %1951 = vmatprep.subr.bf16.mxu1 %v2898_v28  ;;  %v2979_v27 = vld [vmem:[%s4065_s1 + $0x624] ss:$8 sps:$4 sm:$0xff]   ;;  %v2458_v28 = vcombine.high %v3645_v24, %v3648_v25 }
  0x59   : > { %2123 = vmatprep.subr.bf16.mxu0 %v2901_v29  ;;  %v3659_v29 = vld [vmem:[%s3342_s21 + $0x30] sm:$0xff] }
  0x5b   : > { %1952 = vmatpush1.bf16.msra.mxu1 %v2896_v30  ;;  %v3662_v30 = vld [vmem:[%s3342_s21 + $0x70] sm:$0xff] }
  0x5c   : > { %2124 = vmatpush1.bf16.msra.mxu0 %v2899_v31  ;;  %1953 = vmatprep.subr.bf16.mxu1 %v2904_v32  ;;  %v2466_v31 = vcombine.high %v3659_v29, %v3662_v30  ;;  %v2974_v32 = vld [vmem:[%s4065_s1 + $0x220] ss:$8 sps:$4 sm:$0xff]  }
  0x5d   : > { %2125 = vmatprep.subr.bf16.mxu0 %v2907_v33  ;;  %v2977_v33 = vld [vmem:[%s4065_s1 + $0x620] ss:$8 sps:$4 sm:$0xff]  }
  0x5f   : > { %1954 = vmatpush1.bf16.msra.mxu1 %v2902_v34  ;;  %v2982_v34 = vld [vmem:[%s4065_s1 + $0x234] ss:$8 sps:$4 sm:$0xff]  }
  0x60   : > { %2126 = vmatpush1.bf16.msra.mxu0 %v2905_v35  ;;  %1955 = vmatprep.subr.bf16.mxu1 %v2910_v38  ;;  %v2985_v35 = vld [vmem:[%s4065_s1 + $0x634] ss:$8 sps:$4 sm:$0xff]   ;;  %v2988_v38 = vld [vmem:[%s4065_s1 + $0x244] ss:$8 sps:$4 sm:$0xff]  }
  0x61   : > { %2127 = vmatprep.subr.bf16.mxu0 %v2913_v39  ;;  %v2991_v39 = vld [vmem:[%s4065_s1 + $0x644] ss:$8 sps:$4 sm:$0xff]  }
  0x63   : > { %1956 = vmatpush1.bf16.msra.mxu1 %v2908_v44  ;;  %v2992_v44 = vld [vmem:[%s4065_s1 + $0x250] ss:$8 sps:$4 sm:$0xff]  }
  0x64   : > { %2128 = vmatpush1.bf16.msra.mxu0 %v2911_v45  ;;  %1957 = vmatprep.subr.bf16.mxu1 %v2916_v46  ;;  %v2995_v45 = vld [vmem:[%s4065_s1 + $0x650] ss:$8 sps:$4 sm:$0xff]   ;;  %v3000_v46 = vld [vmem:[%s4065_s1 + $0x264] ss:$8 sps:$4 sm:$0xff]  }
  0x65   : > { %2129 = vmatprep.subr.bf16.mxu0 %v2919_v47  ;;  %v3003_v47 = vld [vmem:[%s4065_s1 + $0x664] ss:$8 sps:$4 sm:$0xff]  }
  0x67   : > { %1958 = vmatpush1.bf16.msra.mxu1 %v2914_v48  ;;  %v2998_v48 = vld [vmem:[%s4065_s1 + $0x260] ss:$8 sps:$4 sm:$0xff]  }
  0x68   : > { %2130 = vmatpush1.bf16.msra.mxu0 %v2917_v49  ;;  %1959 = vmatprep.subr.bf16.mxu1 %v2922_v50  ;;  %v3001_v49 = vld [vmem:[%s4065_s1 + $0x660] ss:$8 sps:$4 sm:$0xff]   ;;  %v3006_v50 = vld [vmem:[%s4065_s1 + $0x274] ss:$8 sps:$4 sm:$0xff]  }
  0x69   : > { %2131 = vmatprep.subr.bf16.mxu0 %v2925_v51  ;;  %v3009_v51 = vld [vmem:[%s4065_s1 + $0x674] ss:$8 sps:$4 sm:$0xff]  }
  0x6b   : > { %1960 = vmatpush1.bf16.msra.mxu1 %v2920_v52  ;;  %v3004_v52 = vld [vmem:[%s4065_s1 + $0x270] ss:$8 sps:$4 sm:$0xff]  }
  0x6c   : > { %2132 = vmatpush1.bf16.msra.mxu0 %v2923_v53  ;;  %1961 = vmatprep.subr.bf16.mxu1 %v2928_v54  ;;  %v3007_v53 = vld [vmem:[%s4065_s1 + $0x670] ss:$8 sps:$4 sm:$0xff]   ;;  %v3012_v54 = vld [vmem:[%s4065_s1 + $0x284] ss:$8 sps:$4 sm:$0xff]  }
  0x6d   : > { %2133 = vmatprep.subr.bf16.mxu0 %v2931_v55  ;;  %v3015_v55 = vld [vmem:[%s4065_s1 + $0x684] ss:$8 sps:$4 sm:$0xff]  }
  0x6f   : > { %1962 = vmatpush1.bf16.msra.mxu1 %v2926_v56  ;;  %v3010_v56 = vld [vmem:[%s4065_s1 + $0x280] ss:$8 sps:$4 sm:$0xff]  }
  0x70   : > { %2134 = vmatpush1.bf16.msra.mxu0 %v2929_v57  ;;  %1963 = vmatprep.subr.bf16.mxu1 %v2934_v58  ;;  %v3013_v57 = vld [vmem:[%s4065_s1 + $0x680] ss:$8 sps:$4 sm:$0xff]   ;;  %v3018_v58 = vld [vmem:[%s4065_s1 + $0x294] ss:$8 sps:$4 sm:$0xff]  }
  0x71   : > { %2135 = vmatprep.subr.bf16.mxu0 %v2937_v59  ;;  %v3021_v59 = vld [vmem:[%s4065_s1 + $0x694] ss:$8 sps:$4 sm:$0xff]  }
  0x73   : > { %1964 = vmatpush1.bf16.msra.mxu1 %v2932_v60  ;;  %v3016_v60 = vld [vmem:[%s4065_s1 + $0x290] ss:$8 sps:$4 sm:$0xff]  }
  0x74   : > { %2136 = vmatpush1.bf16.msra.mxu0 %v2935_v61  ;;  %1965 = vmatprep.subr.bf16.mxu1 %v2940_v62  ;;  %v3019_v61 = vld [vmem:[%s4065_s1 + $0x690] ss:$8 sps:$4 sm:$0xff]   ;;  %v3024_v62 = vld [vmem:[%s4065_s1 + $0x2a4] ss:$8 sps:$4 sm:$0xff]  }
  0x75   : > { %2137 = vmatprep.subr.bf16.mxu0 %v2943_v63  ;;  %v3027_v63 = vld [vmem:[%s4065_s1 + $0x6a4] ss:$8 sps:$4 sm:$0xff]  }
  0x77   : > { %1966 = vmatpush1.bf16.msra.mxu1 %v2938_v0  ;;  %v3022_v0 = vld [vmem:[%s4065_s1 + $0x2a0] ss:$8 sps:$4 sm:$0xff]  }
  0x78   : > { %2138 = vmatpush1.bf16.msra.mxu0 %v2941_v1  ;;  %1967 = vmatprep.subr.bf16.mxu1 %v2946_v2  ;;  %v3025_v1 = vld [vmem:[%s4065_s1 + $0x6a0] ss:$8 sps:$4 sm:$0xff]   ;;  %v3030_v2 = vld [vmem:[%s4065_s1 + $0x2b4] ss:$8 sps:$4 sm:$0xff]  }
  0x79   : > { %2139 = vmatprep.subr.bf16.mxu0 %v2949_v3  ;;  %v3033_v3 = vld [vmem:[%s4065_s1 + $0x6b4] ss:$8 sps:$4 sm:$0xff]  }
  0x7b   : > { %1968 = vmatpush1.bf16.msra.mxu1 %v2944_v4  ;;  %v3028_v4 = vld [vmem:[%s4065_s1 + $0x2b0] ss:$8 sps:$4 sm:$0xff]  }
  0x7c   : > { %2140 = vmatpush1.bf16.msra.mxu0 %v2947_v5  ;;  %1969 = vmatprep.subr.bf16.mxu1 %v2952_v6  ;;  %v3031_v5 = vld [vmem:[%s4065_s1 + $0x6b0] ss:$8 sps:$4 sm:$0xff]   ;;  %v3036_v6 = vld [vmem:[%s4065_s1 + $0x2c4] ss:$8 sps:$4 sm:$0xff]  }
  0x7d   : > { %2141 = vmatprep.subr.bf16.mxu0 %v2955_v7  ;;  %v3039_v7 = vld [vmem:[%s4065_s1 + $0x6c4] ss:$8 sps:$4 sm:$0xff]  }
  0x7f   : > { %1970 = vmatpush1.bf16.msra.mxu1 %v2950_v8  ;;  %v3034_v8 = vld [vmem:[%s4065_s1 + $0x2c0] ss:$8 sps:$4 sm:$0xff]  }
  0x80   : > { %2142 = vmatpush1.bf16.msra.mxu0 %v2953_v9  ;;  %1971 = vmatprep.subr.bf16.mxu1 %v2958_v10  ;;  %v3037_v9 = vld [vmem:[%s4065_s1 + $0x6c0] ss:$8 sps:$4 sm:$0xff]   ;;  %v3042_v10 = vld [vmem:[%s4065_s1 + $0x2d4] ss:$8 sps:$4 sm:$0xff]  }
  0x81   : > { %2143 = vmatprep.subr.bf16.mxu0 %v2961_v11  ;;  %v3045_v11 = vld [vmem:[%s4065_s1 + $0x6d4] ss:$8 sps:$4 sm:$0xff]  }
  0x83   : > { %1972 = vmatpush1.bf16.msra.mxu1 %v2956_v12  ;;  %v3040_v12 = vld [vmem:[%s4065_s1 + $0x2d0] ss:$8 sps:$4 sm:$0xff]  }
  0x84   : > { %2144 = vmatpush1.bf16.msra.mxu0 %v2959_v13  ;;  %1984 = vmatprep.subr.bf16.mxu1 %v2964_v14  ;;  %v3043_v13 = vld [vmem:[%s4065_s1 + $0x6d0] ss:$8 sps:$4 sm:$0xff]   ;;  %v3048_v14 = vld [vmem:[%s4065_s1 + $0x2e4] ss:$8 sps:$4 sm:$0xff]  }
  0x85   : > { %2156 = vmatprep.subr.bf16.mxu0 %v2967_v15  ;;  %v3051_v15 = vld [vmem:[%s4065_s1 + $0x6e4] ss:$8 sps:$4 sm:$0xff]  }
  0x86   : > { %1974 = vmatmul.mubr.bf16.vlgmr.msra.gmra.mrb[0].mxu1 %v2455_v16  ;;  %v3046_v16 = vld [vmem:[%s4065_s1 + $0x2e0] ss:$8 sps:$4 sm:$0xff]  }
  0x87   : > { %2146 = vmatmul.mubr.bf16.vlgmr.msra.gmra.mrb[0].mxu0 %v2463_v18  ;;  %1985 = vmatpush1.bf16.msra.mxu1 %v2962_v17  ;;  %v3049_v17 = vld [vmem:[%s4065_s1 + $0x6e0] ss:$8 sps:$4 sm:$0xff]   ;;  %v3054_v18 = vld [vmem:[%s4065_s1 + $0x2f4] ss:$8 sps:$4 sm:$0xff]  }
  0x88   : > { %2157 = vmatpush1.bf16.msra.mxu0 %v2965_v19  ;;  %1986 = vmatprep.subr.bf16.mxu1 %v2970_v20  ;;  %v3057_v19 = vld [vmem:[%s4065_s1 + $0x6f4] ss:$8 sps:$4 sm:$0xff]   ;;  %v3052_v20 = vld [vmem:[%s4065_s1 + $0x2f0] ss:$8 sps:$4 sm:$0xff]  }
  0x89   : > { %2158 = vmatprep.subr.bf16.mxu0 %v2973_v21  ;;  %2016 = vmatprep.mubr.bf16.mxu1 %v2458_v28  ;;  %v3055_v21 = vld [vmem:[%s4065_s1 + $0x6f0] ss:$8 sps:$4 sm:$0xff]   ;;  %v2465_v28 = vcombine.low %v3659_v29, %v3662_v30 }
  0x8a   : > { %2188 = vmatprep.mubr.bf16.mxu0 %v2466_v31  ;;  %v3842_v31 = vld [vmem:[%s3342_s21 + $0x58] sm:$0xff] }
  0x8b   : > { %1987 = vmatpush1.bf16.msra.mxu1 %v2968_v22  ;;  %v3060_v22 = vld [vmem:[%s4065_s1 + $0x304] ss:$8 sps:$4 sm:$0xff]  }
  0x8c   : > { %2159 = vmatpush1.bf16.msra.mxu0 %v2971_v23  ;;  %1988 = vmatprep.subr.bf16.mxu1 %v2976_v26  ;;  %v3063_v23 = vld [vmem:[%s4065_s1 + $0x704] ss:$8 sps:$4 sm:$0xff]   ;;  %v3835_v26 = vld [vmem:[%s3342_s21 + $0x18] sm:$0xff] }
  0x8d   : > { %2160 = vmatprep.subr.bf16.mxu0 %v2979_v27  ;;  %v2457_v27 = vcombine.low %v3645_v24, %v3648_v25  ;;  %v3066_v24 = vld [vmem:[%s4065_s1 + $0x314] ss:$8 sps:$4 sm:$0xff]   ;;  %v2460_v29 = vcombine.high %v3835_v26, %v3842_v31 }
  0x8e   : > { %v3069_v25 = vld [vmem:[%s4065_s1 + $0x714] ss:$8 sps:$4 sm:$0xff]  }
  0x8f   : > { %1989 = vmatpush1.bf16.msra.mxu1 %v2974_v32  ;;  %v3845_v32 = vld [vmem:[%s3342_s21 + $0x38] sm:$0xff] }
  0x90   : > { %2161 = vmatpush1.bf16.msra.mxu0 %v2977_v33  ;;  %1990 = vmatprep.subr.bf16.mxu1 %v2982_v34  ;;  %v3848_v33 = vld [vmem:[%s3342_s21 + $0x78] sm:$0xff]  ;;  %v3058_v34 = vld [vmem:[%s4065_s1 + $0x300] ss:$8 sps:$4 sm:$0xff]  }
  0x91   : > { %2162 = vmatprep.subr.bf16.mxu0 %v2985_v35  ;;  %v3061_v35 = vld [vmem:[%s4065_s1 + $0x700] ss:$8 sps:$4 sm:$0xff]   ;;  %v2468_v30 = vcombine.high %v3845_v32, %v3848_v33 }
  0x93   : > { %1991 = vmatpush1.bf16.msra.mxu1 %v2980_v36  ;;  %v3064_v36 = vld [vmem:[%s4065_s1 + $0x310] ss:$8 sps:$4 sm:$0xff]  }
  0x94   : > { %2163 = vmatpush1.bf16.msra.mxu0 %v2983_v37  ;;  %1992 = vmatprep.subr.bf16.mxu1 %v2988_v38  ;;  %v3067_v37 = vld [vmem:[%s4065_s1 + $0x710] ss:$8 sps:$4 sm:$0xff]   ;;  %v3072_v38 = vld [vmem:[%s4065_s1 + $0x324] ss:$8 sps:$4 sm:$0xff]  }
  0x95   : > { %2164 = vmatprep.subr.bf16.mxu0 %v2991_v39  ;;  %v3075_v39 = vld [vmem:[%s4065_s1 + $0x724] ss:$8 sps:$4 sm:$0xff]  }
  0x97   : > { %1993 = vmatpush1.bf16.msra.mxu1 %v2986_v40  ;;  %v3070_v40 = vld [vmem:[%s4065_s1 + $0x320] ss:$8 sps:$4 sm:$0xff]  }
  0x98   : > { %2165 = vmatpush1.bf16.msra.mxu0 %v2989_v41  ;;  %1994 = vmatprep.subr.bf16.mxu1 %v2994_v42  ;;  %v3073_v41 = vld [vmem:[%s4065_s1 + $0x720] ss:$8 sps:$4 sm:$0xff]   ;;  %v3078_v42 = vld [vmem:[%s4065_s1 + $0x334] ss:$8 sps:$4 sm:$0xff]  }
  0x99   : > { %2166 = vmatprep.subr.bf16.mxu0 %v2997_v43  ;;  %v3081_v43 = vld [vmem:[%s4065_s1 + $0x734] ss:$8 sps:$4 sm:$0xff]  }
  0x9b   : > { %1995 = vmatpush1.bf16.msra.mxu1 %v2992_v44  ;;  %v3076_v44 = vld [vmem:[%s4065_s1 + $0x330] ss:$8 sps:$4 sm:$0xff]  }
  0x9c   : > { %2167 = vmatpush1.bf16.msra.mxu0 %v2995_v45  ;;  %1996 = vmatprep.subr.bf16.mxu1 %v3000_v46  ;;  %v3079_v45 = vld [vmem:[%s4065_s1 + $0x730] ss:$8 sps:$4 sm:$0xff]   ;;  %v3084_v46 = vld [vmem:[%s4065_s1 + $0x344] ss:$8 sps:$4 sm:$0xff]  }
  0x9d   : > { %2168 = vmatprep.subr.bf16.mxu0 %v3003_v47  ;;  %v3087_v47 = vld [vmem:[%s4065_s1 + $0x744] ss:$8 sps:$4 sm:$0xff]  }
  0x9f   : > { %1997 = vmatpush1.bf16.msra.mxu1 %v2998_v48  ;;  %v3082_v48 = vld [vmem:[%s4065_s1 + $0x340] ss:$8 sps:$4 sm:$0xff]  }
  0xa0   : > { %2169 = vmatpush1.bf16.msra.mxu0 %v3001_v49  ;;  %1998 = vmatprep.subr.bf16.mxu1 %v3006_v50  ;;  %v3085_v49 = vld [vmem:[%s4065_s1 + $0x740] ss:$8 sps:$4 sm:$0xff]   ;;  %v3090_v50 = vld [vmem:[%s4065_s1 + $0x354] ss:$8 sps:$4 sm:$0xff]  }
  0xa1   : > { %2170 = vmatprep.subr.bf16.mxu0 %v3009_v51  ;;  %v3093_v51 = vld [vmem:[%s4065_s1 + $0x754] ss:$8 sps:$4 sm:$0xff]  }
  0xa3   : > { %1999 = vmatpush1.bf16.msra.mxu1 %v3004_v52  ;;  %v3088_v52 = vld [vmem:[%s4065_s1 + $0x350] ss:$8 sps:$4 sm:$0xff]  }
  0xa4   : > { %2171 = vmatpush1.bf16.msra.mxu0 %v3007_v53  ;;  %2000 = vmatprep.subr.bf16.mxu1 %v3012_v54  ;;  %v3091_v53 = vld [vmem:[%s4065_s1 + $0x750] ss:$8 sps:$4 sm:$0xff]   ;;  %v3096_v54 = vld [vmem:[%s4065_s1 + $0x364] ss:$8 sps:$4 sm:$0xff]  }
  0xa5   : > { %2172 = vmatprep.subr.bf16.mxu0 %v3015_v55  ;;  %v3099_v55 = vld [vmem:[%s4065_s1 + $0x764] ss:$8 sps:$4 sm:$0xff]  }
  0xa7   : > { %2001 = vmatpush1.bf16.msra.mxu1 %v3010_v56  ;;  %v3094_v56 = vld [vmem:[%s4065_s1 + $0x360] ss:$8 sps:$4 sm:$0xff]  }
  0xa8   : > { %2173 = vmatpush1.bf16.msra.mxu0 %v3013_v57  ;;  %2002 = vmatprep.subr.bf16.mxu1 %v3018_v58  ;;  %v3097_v57 = vld [vmem:[%s4065_s1 + $0x760] ss:$8 sps:$4 sm:$0xff]   ;;  %v3102_v58 = vld [vmem:[%s4065_s1 + $0x374] ss:$8 sps:$4 sm:$0xff]  }
  0xa9   : > { %2174 = vmatprep.subr.bf16.mxu0 %v3021_v59  ;;  %v3105_v59 = vld [vmem:[%s4065_s1 + $0x774] ss:$8 sps:$4 sm:$0xff]  }
  0xab   : > { %2003 = vmatpush1.bf16.msra.mxu1 %v3016_v60  ;;  %v3100_v60 = vld [vmem:[%s4065_s1 + $0x370] ss:$8 sps:$4 sm:$0xff]  }
  0xac   : > { %2175 = vmatpush1.bf16.msra.mxu0 %v3019_v61  ;;  %2004 = vmatprep.subr.bf16.mxu1 %v3024_v62  ;;  %v3103_v61 = vld [vmem:[%s4065_s1 + $0x770] ss:$8 sps:$4 sm:$0xff]   ;;  %v3108_v62 = vld [vmem:[%s4065_s1 + $0x384] ss:$8 sps:$4 sm:$0xff]  }
  0xad   : > { %2176 = vmatprep.subr.bf16.mxu0 %v3027_v63  ;;  %v3111_v63 = vld [vmem:[%s4065_s1 + $0x784] ss:$8 sps:$4 sm:$0xff]  }
  0xaf   : > { %2005 = vmatpush1.bf16.msra.mxu1 %v3022_v0  ;;  %v3106_v0 = vld [vmem:[%s4065_s1 + $0x380] ss:$8 sps:$4 sm:$0xff]  }
  0xb0   : > { %2177 = vmatpush1.bf16.msra.mxu0 %v3025_v1  ;;  %2006 = vmatprep.subr.bf16.mxu1 %v3030_v2  ;;  %v3109_v1 = vld [vmem:[%s4065_s1 + $0x780] ss:$8 sps:$4 sm:$0xff]   ;;  %v3114_v2 = vld [vmem:[%s4065_s1 + $0x394] ss:$8 sps:$4 sm:$0xff]  }
  0xb1   : > { %2178 = vmatprep.subr.bf16.mxu0 %v3033_v3  ;;  %v3117_v3 = vld [vmem:[%s4065_s1 + $0x794] ss:$8 sps:$4 sm:$0xff]  }
  0xb3   : > { %2007 = vmatpush1.bf16.msra.mxu1 %v3028_v4  ;;  %v3112_v4 = vld [vmem:[%s4065_s1 + $0x390] ss:$8 sps:$4 sm:$0xff]  }
  0xb4   : > { %2179 = vmatpush1.bf16.msra.mxu0 %v3031_v5  ;;  %2008 = vmatprep.subr.bf16.mxu1 %v3036_v6  ;;  %v3115_v5 = vld [vmem:[%s4065_s1 + $0x790] ss:$8 sps:$4 sm:$0xff]   ;;  %v3120_v6 = vld [vmem:[%s4065_s1 + $0x3a4] ss:$8 sps:$4 sm:$0xff]  }
  0xb5   : > { %2180 = vmatprep.subr.bf16.mxu0 %v3039_v7  ;;  %v3123_v7 = vld [vmem:[%s4065_s1 + $0x7a4] ss:$8 sps:$4 sm:$0xff]  }
  0xb7   : > { %2009 = vmatpush1.bf16.msra.mxu1 %v3034_v8  ;;  %v3118_v8 = vld [vmem:[%s4065_s1 + $0x3a0] ss:$8 sps:$4 sm:$0xff]  }
  0xb8   : > { %2181 = vmatpush1.bf16.msra.mxu0 %v3037_v9  ;;  %2010 = vmatprep.subr.bf16.mxu1 %v3042_v10  ;;  %v3121_v9 = vld [vmem:[%s4065_s1 + $0x7a0] ss:$8 sps:$4 sm:$0xff]   ;;  %v3126_v10 = vld [vmem:[%s4065_s1 + $0x3b4] ss:$8 sps:$4 sm:$0xff]  }
  0xb9   : > { %2182 = vmatprep.subr.bf16.mxu0 %v3045_v11  ;;  %v3129_v11 = vld [vmem:[%s4065_s1 + $0x7b4] ss:$8 sps:$4 sm:$0xff]  }
  0xbb   : > { %2011 = vmatpush1.bf16.msra.mxu1 %v3040_v12  ;;  %v3124_v12 = vld [vmem:[%s4065_s1 + $0x3b0] ss:$8 sps:$4 sm:$0xff]  }
  0xbc   : > { %2183 = vmatpush1.bf16.msra.mxu0 %v3043_v13  ;;  %2012 = vmatprep.subr.bf16.mxu1 %v3048_v14  ;;  %v3127_v13 = vld [vmem:[%s4065_s1 + $0x7b0] ss:$8 sps:$4 sm:$0xff]   ;;  %v3132_v14 = vld [vmem:[%s4065_s1 + $0x3c4] ss:$8 sps:$4 sm:$0xff]  }
  0xbd   : > { %2184 = vmatprep.subr.bf16.mxu0 %v3051_v15  ;;  %v3135_v15 = vld [vmem:[%s4065_s1 + $0x7c4] ss:$8 sps:$4 sm:$0xff]  }
  0xbf   : > { %2013 = vmatpush1.bf16.msra.mxu1 %v3046_v16  ;;  %v3130_v16 = vld [vmem:[%s4065_s1 + $0x3c0] ss:$8 sps:$4 sm:$0xff]  }
  0xc0   : > { %2185 = vmatpush1.bf16.msra.mxu0 %v3049_v17  ;;  %2014 = vmatprep.subr.bf16.mxu1 %v3054_v18  ;;  %v3133_v17 = vld [vmem:[%s4065_s1 + $0x7c0] ss:$8 sps:$4 sm:$0xff]   ;;  %v3138_v18 = vld [vmem:[%s4065_s1 + $0x3d4] ss:$8 sps:$4 sm:$0xff]  }
  0xc1   : > { %2186 = vmatprep.subr.bf16.mxu0 %v3057_v19  ;;  %v3141_v19 = vld [vmem:[%s4065_s1 + $0x7d4] ss:$8 sps:$4 sm:$0xff]  }
  0xc3   : > { %2015 = vmatpush1.bf16.msra.mxu1 %v3052_v20  ;;  %v3136_v20 = vld [vmem:[%s4065_s1 + $0x3d0] ss:$8 sps:$4 sm:$0xff]  }
  0xc4   : > { %2187 = vmatpush1.bf16.msra.mxu0 %v3055_v21  ;;  %2027 = vmatprep.subr.bf16.mxu1 %v3060_v22  ;;  %v3139_v21 = vld [vmem:[%s4065_s1 + $0x7d0] ss:$8 sps:$4 sm:$0xff]   ;;  %v3144_v22 = vld [vmem:[%s4065_s1 + $0x3e4] ss:$8 sps:$4 sm:$0xff]  }
  0xc5   : > { %2199 = vmatprep.subr.bf16.mxu0 %v3063_v23  ;;  %v3147_v23 = vld [vmem:[%s4065_s1 + $0x7e4] ss:$8 sps:$4 sm:$0xff]  }
  0xc6   : > { %2017 = vmatmul.mubr.bf16.vlgmr.msra.gmra.mrb[0].mxu1 %v2457_v27  ;;  %v3142_v27 = vld [vmem:[%s4065_s1 + $0x3e0] ss:$8 sps:$4 sm:$0xff]  }
  0xc7   : > { %2189 = vmatmul.mubr.bf16.vlgmr.msra.gmra.mrb[0].mxu0 %v2465_v28  ;;  %2028 = vmatpush1.bf16.msra.mxu1 %v3058_v34  ;;  %v3145_v28 = vld [vmem:[%s4065_s1 + $0x7e0] ss:$8 sps:$4 sm:$0xff]   ;;  %v3150_v34 = vld [vmem:[%s4065_s1 + $0x3f4] ss:$8 sps:$4 sm:$0xff]  }
  0xc8   : > { %2200 = vmatpush1.bf16.msra.mxu0 %v3061_v35  ;;  %2029 = vmatprep.subr.bf16.mxu1 %v3066_v24  ;;  %v3153_v35 = vld [vmem:[%s4065_s1 + $0x7f4] ss:$8 sps:$4 sm:$0xff]   ;;  %v3148_v24 = vld [vmem:[%s4065_s1 + $0x3f0] ss:$8 sps:$4 sm:$0xff]  }
  0xc9   : > { %2201 = vmatprep.subr.bf16.mxu0 %v3069_v25  ;;  %2059 = vmatprep.mubr.bf16.mxu1 %v2460_v29  ;;  %v3151_v25 = vld [vmem:[%s4065_s1 + $0x7f0] ss:$8 sps:$4 sm:$0xff]   ;;  %v2459_v29 = vcombine.low %v3835_v26, %v3842_v31 }
  0xca   : > { %2231 = vmatprep.mubr.bf16.mxu0 %v2468_v30  ;;  %v2467_v30 = vcombine.low %v3845_v32, %v3848_v33 }
  0xcb   : > { %2030 = vmatpush1.bf16.msra.mxu1 %v3064_v36  ;;  %v528_v36 = vlaneseq }
  0xcc   : > { %2202 = vmatpush1.bf16.msra.mxu0 %v3067_v37  ;;  %2031 = vmatprep.subr.bf16.mxu1 %v3072_v38 }
  0xcd   : > { %2203 = vmatprep.subr.bf16.mxu0 %v3075_v39  ;;  %v529_v37 = vshrl.u32 %v528_v36, 7  ;;  %v526_v39 = vld [vmem:[%s4066_s2] sm:$0x3]  ;;  %vm2276_vm0 = vcmp.lt.s32.totalorder %v528_v36, 256 }
  0xcf   : > { %2032 = vmatpush1.bf16.msra.mxu1 %v3070_v40  ;;  %v530_v38 = vsub.s32 0, %v529_v37  ;;  %v534_v40 = vsub.s32 1, %v529_v37 }
  0xd0   : > { %2204 = vmatpush1.bf16.msra.mxu0 %v3073_v41  ;;  %2033 = vmatprep.subr.bf16.mxu1 %v3078_v42 }
  0xd1   : > { %2205 = vmatprep.subr.bf16.mxu0 %v3081_v43  ;;  %v531_v41 = vrot.slane %v526_v39, %v530_v38  ;;  %v535_v42 = vrot.slane %v526_v39, %v534_v40 }
  0xd3   : > { %2034 = vmatpush1.bf16.msra.mxu1 %v3076_v44 }
  0xd4   : > { %2206 = vmatpush1.bf16.msra.mxu0 %v3079_v45  ;;  %2035 = vmatprep.subr.bf16.mxu1 %v3084_v46 }
  0xd5   : > { %2207 = vmatprep.subr.bf16.mxu0 %v3087_v47 }
  0xd7   : > { %2036 = vmatpush1.bf16.msra.mxu1 %v3082_v48 }
  0xd8   : > { %2208 = vmatpush1.bf16.msra.mxu0 %v3085_v49  ;;  %2037 = vmatprep.subr.bf16.mxu1 %v3090_v50 }
  0xd9   : > { %2209 = vmatprep.subr.bf16.mxu0 %v3093_v51 }
  0xdb   : > { %2038 = vmatpush1.bf16.msra.mxu1 %v3088_v52 }
  0xdc   : > { %2210 = vmatpush1.bf16.msra.mxu0 %v3091_v53  ;;  %2039 = vmatprep.subr.bf16.mxu1 %v3096_v54 }
  0xdd   : > { %2211 = vmatprep.subr.bf16.mxu0 %v3099_v55 }
  0xdf   : > { %2040 = vmatpush1.bf16.msra.mxu1 %v3094_v56 }
  0xe0   : > { %2212 = vmatpush1.bf16.msra.mxu0 %v3097_v57  ;;  %2041 = vmatprep.subr.bf16.mxu1 %v3102_v58 }
  0xe1   : > { %2213 = vmatprep.subr.bf16.mxu0 %v3105_v59 }
  0xe3   : > { %2042 = vmatpush1.bf16.msra.mxu1 %v3100_v60 }
  0xe4   : > { %2214 = vmatpush1.bf16.msra.mxu0 %v3103_v61  ;;  %2043 = vmatprep.subr.bf16.mxu1 %v3108_v62 }
  0xe5   : > { %2215 = vmatprep.subr.bf16.mxu0 %v3111_v63 }
  0xe7   : > { %2044 = vmatpush1.bf16.msra.mxu1 %v3106_v0 }
  0xe8   : > { %2216 = vmatpush1.bf16.msra.mxu0 %v3109_v1  ;;  %2045 = vmatprep.subr.bf16.mxu1 %v3114_v2 }
  0xe9   : > { %2217 = vmatprep.subr.bf16.mxu0 %v3117_v3  ;;  %v3162_v3 = vmov 1966171168  }
  0xeb   : > { %2046 = vmatpush1.bf16.msra.mxu1 %v3112_v4  ;;  %v2260_v4 = vunpack.c.l.s4 %v3162_v3 }
  0xec   : > { %2218 = vmatpush1.bf16.msra.mxu0 %v3115_v5  ;;  %2047 = vmatprep.subr.bf16.mxu1 %v3120_v6 }
  0xed   : > { %2219 = vmatprep.subr.bf16.mxu0 %v3123_v7 }
  0xef   : > { %2048 = vmatpush1.bf16.msra.mxu1 %v3118_v8 }
  0xf0   : > { %2220 = vmatpush1.bf16.msra.mxu0 %v3121_v9  ;;  %2049 = vmatprep.subr.bf16.mxu1 %v3126_v10 }
  0xf1   : > { %2221 = vmatprep.subr.bf16.mxu0 %v3129_v11 }
  0xf3   : > { %2050 = vmatpush1.bf16.msra.mxu1 %v3124_v12 }
  0xf4   : > { %2222 = vmatpush1.bf16.msra.mxu0 %v3127_v13  ;;  %2051 = vmatprep.subr.bf16.mxu1 %v3132_v14  ;;  %v2261_v13 = vunpack.c.0.s8 %v2260_v4 }
  0xf5   : > { %2223 = vmatprep.subr.bf16.mxu0 %v3135_v15 }
  0xf7   : > { %2052 = vmatpush1.bf16.msra.mxu1 %v3130_v16 }
  0xf8   : > { %2224 = vmatpush1.bf16.msra.mxu0 %v3133_v17  ;;  %2053 = vmatprep.subr.bf16.mxu1 %v3138_v18 }
  0xf9   : > { %2225 = vmatprep.subr.bf16.mxu0 %v3141_v19 }
  0xfb   : > { %2054 = vmatpush1.bf16.msra.mxu1 %v3136_v20 }
  0xfc   : > { %2226 = vmatpush1.bf16.msra.mxu0 %v3139_v21  ;;  %2055 = vmatprep.subr.bf16.mxu1 %v3144_v22  ;;  %v2264_v22 = vsub.s32 %v2261_v13, %v529_v37 }
  0xfd   : > { %2227 = vmatprep.subr.bf16.mxu0 %v3147_v23 }
  0xff   : > { %2056 = vmatpush1.bf16.msra.mxu1 %v3142_v27 }
 0x100   : > { %2228 = vmatpush1.bf16.msra.mxu0 %v3145_v28  ;;  %2057 = vmatprep.subr.bf16.mxu1 %v3150_v34 }
 0x101   : > { %2229 = vmatprep.subr.bf16.mxu0 %v3153_v35 }
 0x103   : > { %2058 = vmatpush1.bf16.msra.mxu1 %v3148_v24 }
 0x104   : > { %2230 = vmatpush1.bf16.msra.mxu0 %v3151_v25 }
 0x106   : > { %2060 = vmatmul.mubr.bf16.vlgmr.msra.gmra.mrb[0].mxu1 %v2459_v29 }
 0x107   : > { %2232 = vmatmul.mubr.bf16.vlgmr.msra.gmra.mrb[0].mxu0 %v2467_v30 }
 0x1d9   : > { %v2061_v26 = vpop.f32.mrb[0].mxu1 }
 0x1da   : > { %v2233_v31 = vpop.f32.mrb[0].mxu0  ;;  %v2729_v43 = vadd.f32 %v2061_v26, %v531_v41  ;;  %v2063_v32 = vpop.f32.mrb[1].mxu1 }
 0x1db   : > { %v2235_v33 = vpop.f32.mrb[1].mxu0  ;;  %v2731_v44 = vadd.f32 %v2063_v32, %v535_v42  ;;  %v2065_v45 = vpop.f32.mrb[2].mxu1 }
 0x1dc   : > { %v2237_v46 = vpop.f32.mrb[2].mxu0  ;;  %v2730_v47 = vadd.f32 %v2729_v43, %v2233_v31  ;;  %v2733_v48 = vadd.f32 %v2065_v45, %v531_v41  ;;  %v2067_v49 = vpop.f32.mrb[3].mxu1 }
 0x1dd   : > { %v2239_v50 = vpop.f32.mrb[3].mxu0  ;;  %v2732_v51 = vadd.f32 %v2731_v44, %v2235_v33  ;;  %v2735_v52 = vadd.f32 %v2067_v49, %v535_v42 }
 0x1de   : > { %2316 = vst [vmem:[%s244_s25] sm:$0xff] %v2730_v47  ;;  %v2734_v53 = vadd.f32 %v2733_v48, %v2237_v46  ;;  %v2279_v55 = vmul.f32 %v2730_v47, %v2730_v47 }
 0x1df   : > { %2317 = vst [vmem:[%s244_s25 + $0x8] sm:$0xff] %v2732_v51  ;;  %v2736_v54 = vadd.f32 %v2735_v52, %v2239_v50  ;;  %v2280_v58 = vmul.f32 %v2732_v51, %v2732_v51 }
 0x1e0   : > { %v2242_v56 = vadd.f32 %v2734_v53, %v2730_v47  ;;  %v2281_v57 = vmul.f32 %v2734_v53, %v2734_v53  ;;  %2318 = vst [vmem:[%s244_s25 + $0x10] sm:$0xff] %v2734_v53 }
 0x1e1   : > { %v2249_v59 = vadd.f32 %v2736_v54, %v2732_v51  ;;  %v2282_v60 = vmul.f32 %v2736_v54, %v2736_v54  ;;  %2319 = vst [vmem:[%s244_s25 + $0x18] sm:$0xff] %v2736_v54 }
 0x1e2   : > { %v2243_v61 = vrot.slane %v2242_v56, 4  ;;  %v2283_v62 = vadd.f32 %v2281_v57, %v2279_v55 }
 0x1e3   : > { %v2250_v63 = vrot.slane %v2249_v59, 4  ;;  %v2290_v0 = vadd.f32 %v2282_v60, %v2280_v58 }
 0x1e4   : > { %v2244_v1 = vadd.f32 %v2243_v61, %v2242_v56  ;;  %v2284_v2 = vrot.slane %v2283_v62, 4 }
 0x1e5   : > { %v2251_v5 = vadd.f32 %v2250_v63, %v2249_v59  ;;  %v2291_v6 = vrot.slane %v2290_v0, 4 }
 0x1e6   : > { %v2245_v7 = vrot.slane %v2244_v1, 2  ;;  %v2285_v8 = vadd.f32 %v2284_v2, %v2283_v62 }
 0x1e7   : > { %v2252_v9 = vrot.slane %v2251_v5, 2  ;;  %v2292_v10 = vadd.f32 %v2291_v6, %v2290_v0 }
 0x1e8   : > { %v2246_v11 = vadd.f32 %v2245_v7, %v2244_v1  ;;  %v2286_v12 = vrot.slane %v2285_v8, 2 }
 0x1e9   : > { %v2253_v14 = vadd.f32 %v2252_v9, %v2251_v5  ;;  %v2293_v15 = vrot.slane %v2292_v10, 2 }
 0x1ea   : > { %v2247_v16 = vrot.slane %v2246_v11, 1  ;;  %v2287_v17 = vadd.f32 %v2286_v12, %v2285_v8 }
 0x1eb   : > { %v2254_v18 = vrot.slane %v2253_v14, 1  ;;  %v2294_v19 = vadd.f32 %v2293_v15, %v2292_v10 }
 0x1ec   : > { %v2248_v20 = vadd.f32 %v2247_v16, %v2246_v11  ;;  %v2288_v21 = vrot.slane %v2287_v17, 1 }
 0x1ed   : > { %v2255_v23 = vadd.f32 %v2254_v18, %v2253_v14  ;;  %v2295_v27 = vrot.slane %v2294_v19, 1 }
 0x1ee   : > { %v2289_v28 = vadd.f32 %v2288_v21, %v2287_v17 }
 0x1ef   : > { %v2258_v34 = vcombine.low %v2248_v20, %v2255_v23  ;;  %v2296_v35 = vadd.f32 %v2295_v27, %v2294_v19 }
 0x1f1   : > { %v2265_v24 = vrot.slane %v2258_v34, %v2264_v22  ;;  %v2299_v25 = vcombine.low %v2289_v28, %v2296_v35 }
 0x1f3   : > { %v2272_v29 = vrot.slane %v2265_v24, %v2264_v22  ;;  %v2306_v30 = vrot.slane %v2299_v25, %v2264_v22 }
 0x1f5   : > { %2278 = vst.msk [vmem:[%s249_s28] sm:$0x3] %vm2276_vm0, %v2272_v29  ;;  %v2313_v37 = vrot.slane %v2306_v30, %v2264_v22 }
 0x1f7   : > { %2315 = vst.msk [vmem:[%s253_s6] sm:$0x3] %vm2276_vm0, %v2313_v37 }
 0x1f8 PF: > { %s16_s18 = sadd.s32 1, %s3160_s18  }
 0x1f9   : > { %p13_p5 = scmp.ge.s32.totalorder %s16_s18, 4  }
 0x1fb   :  { %15 = sbr.rel (!%p13_p5) target bundleno = 1 (0x1), region = 86 }

// kernel: discriminator_forward.9
= control target key start
LH: loop header
LB: loop body
LE: loop exit
PB: predicated region body
PF: predicated region fallthrough
CT: control target
= control target key end

     0   :  { %v3821_v22 = vmov 1966171168   ;;  %v546_v24 = vlaneseq  ;;  %s4674_s1 = inlined_call_operand.vmem [shape: bf16[4096,128], index: 1, kind: input, shape index: {}]   ;;  %s4675_s0 = inlined_call_operand.vmem [shape: bf16[2,4096], index: 0, kind: input, shape index: {}]   ;;  %s4676_s2 = inlined_call_operand.vmem [shape: f32[1,128], index: 2, kind: input, shape index: {}]   ;;  %s4677_s3 = inlined_call_operand.vmem [shape: f32[2,128], index: 3, kind: output, shape index: {}]  }
   0x1   :  { %v3561_v0 = vld [vmem:[%s4674_s1 + $0x40] sm:$0xff]   ;;  %v3565_v4 = vld [vmem:[%s4674_s1 + $0x48] sm:$0xff]   ;;  %v3569_v8 = vld [vmem:[%s4674_s1 + $0x50] sm:$0xff]   ;;  %v544_v23 = vunpack.c.l.s4 %v3821_v22 }
   0x2   :  { %v3562_v1 = vld [vmem:[%s4674_s1 + $0xc0] sm:$0xff]   ;;  %3208 = vmatprep.subr.bf16.mxu0 %v3561_v0  ;;  %v3566_v5 = vld [vmem:[%s4674_s1 + $0xc8] sm:$0xff]   ;;  %v3570_v9 = vld [vmem:[%s4674_s1 + $0xd0] sm:$0xff]   ;;  %v547_v30 = vshrl.u32 %v546_v24, 7 }
   0x3   :  { %v3563_v2 = vld [vmem:[%s4674_s1] sm:$0xff]   ;;  %3230 = vmatprep.subr.bf16.mxu1 %v3562_v1  ;;  %v3567_v6 = vld [vmem:[%s4674_s1 + $0x8] sm:$0xff]   ;;  %v3571_v10 = vld [vmem:[%s4674_s1 + $0x10] sm:$0xff]   ;;  %v545_v29 = vunpack.c.0.s8 %v544_v23 }
   0x4   :  { %v3564_v3 = vld [vmem:[%s4674_s1 + $0x80] sm:$0xff]   ;;  %3209 = vmatpush3.bf16.msra.mxu0 %v3563_v2  ;;  %v3568_v7 = vld [vmem:[%s4674_s1 + $0x88] sm:$0xff]   ;;  %v3572_v11 = vld [vmem:[%s4674_s1 + $0x90] sm:$0xff]  }
   0x5   :  { %3231 = vmatpush3.bf16.msra.mxu1 %v3564_v3  ;;  %3210 = vmatprep.subr.bf16.mxu0 %v3565_v4  ;;  %v3573_v12 = vld [vmem:[%s4674_s1 + $0x58] sm:$0xff]   ;;  %v3577_v16 = vld [vmem:[%s4674_s1 + $0x60] sm:$0xff]   ;;  %v3581_v20 = vld [vmem:[%s4674_s1 + $0x68] sm:$0xff]   ;;  %v3932_v35 = vsub.s32 %v545_v29, %v547_v30 }
   0x6   :  { %3232 = vmatprep.subr.bf16.mxu1 %v3566_v5  ;;  %v3574_v13 = vld [vmem:[%s4674_s1 + $0xd8] sm:$0xff]   ;;  %v3578_v17 = vld [vmem:[%s4674_s1 + $0xe0] sm:$0xff]   ;;  %v3582_v21 = vld [vmem:[%s4674_s1 + $0xe8] sm:$0xff]  }
   0x7   :  { %v3575_v14 = vld [vmem:[%s4674_s1 + $0x18] sm:$0xff]   ;;  %v3579_v18 = vld [vmem:[%s4674_s1 + $0x20] sm:$0xff]   ;;  %v3583_v25 = vld [vmem:[%s4674_s1 + $0x28] sm:$0xff]  }
   0x8   :  { %3211 = vmatpush3.bf16.msra.mxu0 %v3567_v6  ;;  %v3576_v15 = vld [vmem:[%s4674_s1 + $0x98] sm:$0xff]   ;;  %v3580_v19 = vld [vmem:[%s4674_s1 + $0xa0] sm:$0xff]   ;;  %v3584_v26 = vld [vmem:[%s4674_s1 + $0xa8] sm:$0xff]  }
   0x9   :  { %3233 = vmatpush3.bf16.msra.mxu1 %v3568_v7  ;;  %3212 = vmatprep.subr.bf16.mxu0 %v3569_v8  ;;  %v3585_v27 = vld [vmem:[%s4674_s1 + $0x70] sm:$0xff]   ;;  %v3589_v33 = vld [vmem:[%s4674_s1 + $0x78] sm:$0xff]   ;;  %v15_v38 = vld [vmem:[%s4675_s0] sm:$0xff] }
   0xa   :  { %3234 = vmatprep.subr.bf16.mxu1 %v3570_v9  ;;  %v3586_v28 = vld [vmem:[%s4674_s1 + $0xf0] sm:$0xff]   ;;  %v3590_v34 = vld [vmem:[%s4674_s1 + $0xf8] sm:$0xff]   ;;  %v542_v39 = vcombine.high %v15_v38, %v15_v38  ;;  %v549_v40 = vrot.slane %v15_v38, %v3932_v35  ;;  %v3594_v41 = vld [vmem:[%s4674_s1 + $0x140] sm:$0xff]  }
   0xb   :  { %v3587_v31 = vld [vmem:[%s4674_s1 + $0x30] sm:$0xff]   ;;  %v3591_v36 = vld [vmem:[%s4674_s1 + $0x38] sm:$0xff]   ;;  %v3595_v42 = vld [vmem:[%s4674_s1 + $0x1c0] sm:$0xff]  }
   0xc   :  { %3213 = vmatpush3.bf16.msra.mxu0 %v3571_v10  ;;  %v3588_v32 = vld [vmem:[%s4674_s1 + $0xb0] sm:$0xff]   ;;  %v3592_v37 = vld [vmem:[%s4674_s1 + $0xb8] sm:$0xff]   ;;  %v557_v43 = vcombine.high %v549_v40, %v549_v40  ;;  %v565_v44 = vrot.slane %v549_v40, %v3932_v35  ;;  %v3952_v45 = vrot.slane %v542_v39, %v3932_v35  ;;  %v3596_v46 = vld [vmem:[%s4674_s1 + $0x100] sm:$0xff]  }
   0xd   :  { %3235 = vmatpush3.bf16.msra.mxu1 %v3572_v11  ;;  %3214 = vmatprep.subr.bf16.mxu0 %v3573_v12  ;;  %v3597_v48 = vld [vmem:[%s4674_s1 + $0x180] sm:$0xff]   ;;  %v3598_v51 = vld [vmem:[%s4674_s1 + $0x148] sm:$0xff]   ;;  %v3602_v58 = vld [vmem:[%s4674_s1 + $0x150] sm:$0xff]  }
   0xe   :  { %3236 = vmatprep.subr.bf16.mxu1 %v3574_v13  ;;  %v579_v47 = vrot.slane %v557_v43, %v3932_v35  ;;  %v558_v49 = vcombine.high %v3952_v45, %v3952_v45  ;;  %v587_v50 = vcombine.high %v565_v44, %v565_v44  ;;  %v3599_v53 = vld [vmem:[%s4674_s1 + $0x1c8] sm:$0xff]   ;;  %v3603_v59 = vld [vmem:[%s4674_s1 + $0x1d0] sm:$0xff]   ;;  %v3606_v62 = vld [vmem:[%s4674_s1 + $0x158] sm:$0xff]  }
   0xf   :  { %v3600_v55 = vld [vmem:[%s4674_s1 + $0x108] sm:$0xff]   ;;  %v3604_v60 = vld [vmem:[%s4674_s1 + $0x110] sm:$0xff]   ;;  %v3607_v63 = vld [vmem:[%s4674_s1 + $0x1d8] sm:$0xff]  }
  0x10   :  { %3215 = vmatpush3.bf16.msra.mxu0 %v3575_v14  ;;  %2338 = vmatprep.mubr.bf16.mxu0 %v579_v47  ;;  %v589_v52 = vcombine.high %v579_v47, %v579_v47  ;;  %v586_v54 = vrot.slane %v558_v49, %v3932_v35  ;;  %v3601_v56 = vld [vmem:[%s4674_s1 + $0x188] sm:$0xff]   ;;  %v3605_v61 = vld [vmem:[%s4674_s1 + $0x190] sm:$0xff]   ;;  %v3608_v0 = vld [vmem:[%s4674_s1 + $0x118] sm:$0xff]  }
  0x11   :  { %3237 = vmatpush3.bf16.msra.mxu1 %v3576_v15  ;;  %3216 = vmatprep.subr.bf16.mxu0 %v3577_v16  ;;  %v3609_v1 = vld [vmem:[%s4674_s1 + $0x198] sm:$0xff]   ;;  %v3610_v2 = vld [vmem:[%s4674_s1 + $0x160] sm:$0xff]   ;;  %v3614_v6 = vld [vmem:[%s4674_s1 + $0x168] sm:$0xff]  }
  0x12   :  { %3238 = vmatprep.subr.bf16.mxu1 %v3578_v17  ;;  %2378 = vmatprep.mubr.bf16.mxu1 %v589_v52  ;;  %v590_v57 = vcombine.high %v586_v54, %v586_v54  ;;  %v3611_v3 = vld [vmem:[%s4674_s1 + $0x1e0] sm:$0xff]   ;;  %v3615_v7 = vld [vmem:[%s4674_s1 + $0x1e8] sm:$0xff]   ;;  %v3618_v10 = vld [vmem:[%s4674_s1 + $0x170] sm:$0xff]  }
  0x13   :  { %v3612_v4 = vld [vmem:[%s4674_s1 + $0x120] sm:$0xff]   ;;  %v3616_v8 = vld [vmem:[%s4674_s1 + $0x128] sm:$0xff]   ;;  %v3619_v11 = vld [vmem:[%s4674_s1 + $0x1f0] sm:$0xff]  }
  0x14   :  { %3217 = vmatpush3.bf16.msra.mxu0 %v3579_v18  ;;  %v3613_v5 = vld [vmem:[%s4674_s1 + $0x1a0] sm:$0xff]   ;;  %v3617_v9 = vld [vmem:[%s4674_s1 + $0x1a8] sm:$0xff]   ;;  %v3620_v12 = vld [vmem:[%s4674_s1 + $0x130] sm:$0xff]   ;;  %v572_v18 = vrot.slane %v3952_v45, %v3932_v35 }
  0x15   :  { %3239 = vmatpush3.bf16.msra.mxu1 %v3580_v19  ;;  %3218 = vmatprep.subr.bf16.mxu0 %v3581_v20  ;;  %v3621_v13 = vld [vmem:[%s4674_s1 + $0x1b0] sm:$0xff]   ;;  %v3622_v14 = vld [vmem:[%s4674_s1 + $0x178] sm:$0xff]   ;;  %v3626_v19 = vld [vmem:[%s4674_s1 + $0x240] sm:$0xff]  }
  0x16   :  { %3240 = vmatprep.subr.bf16.mxu1 %v3582_v21  ;;  %v3623_v15 = vld [vmem:[%s4674_s1 + $0x1f8] sm:$0xff]   ;;  %v3627_v20 = vld [vmem:[%s4674_s1 + $0x2c0] sm:$0xff]   ;;  %v588_v23 = vcombine.high %v572_v18, %v572_v18  ;;  %v3630_v24 = vld [vmem:[%s4674_s1 + $0x248] sm:$0xff]  }
  0x17   :  { %v3624_v16 = vld [vmem:[%s4674_s1 + $0x138] sm:$0xff]   ;;  %v3628_v21 = vld [vmem:[%s4674_s1 + $0x200] sm:$0xff]   ;;  %v3635_v29 = vld [vmem:[%s4674_s1 + $0x2d0] sm:$0xff]  }
  0x18   :  { %3219 = vmatpush3.bf16.msra.mxu0 %v3583_v25  ;;  %v3625_v17 = vld [vmem:[%s4674_s1 + $0x1b8] sm:$0xff]   ;;  %v3629_v22 = vld [vmem:[%s4674_s1 + $0x280] sm:$0xff]   ;;  %v3631_v25 = vld [vmem:[%s4674_s1 + $0x2c8] sm:$0xff]  }
  0x19   :  { %3241 = vmatpush3.bf16.msra.mxu1 %v3584_v26  ;;  %3220 = vmatprep.subr.bf16.mxu0 %v3585_v27  ;;  %v3632_v26 = vld [vmem:[%s4674_s1 + $0x208] sm:$0xff]   ;;  %v3636_v30 = vld [vmem:[%s4674_s1 + $0x210] sm:$0xff]   ;;  %v3643_v38 = vld [vmem:[%s4674_s1 + $0x2e0] sm:$0xff]  }
  0x1a   :  { %3242 = vmatprep.subr.bf16.mxu1 %v3586_v28  ;;  %v3633_v27 = vld [vmem:[%s4674_s1 + $0x288] sm:$0xff]   ;;  %v3634_v28 = vld [vmem:[%s4674_s1 + $0x250] sm:$0xff]   ;;  %v3644_v39 = vld [vmem:[%s4674_s1 + $0x220] sm:$0xff]  }
  0x1b   :  { %v3645_v40 = vld [vmem:[%s4674_s1 + $0x2a0] sm:$0xff]   ;;  %v3648_v43 = vld [vmem:[%s4674_s1 + $0x228] sm:$0xff]   ;;  %v3650_v45 = vld [vmem:[%s4674_s1 + $0x270] sm:$0xff]  }
  0x1c   :  { %3221 = vmatpush3.bf16.msra.mxu0 %v3587_v31  ;;  %v3637_v31 = vld [vmem:[%s4674_s1 + $0x290] sm:$0xff]   ;;  %v3654_v49 = vld [vmem:[%s4674_s1 + $0x278] sm:$0xff]   ;;  %v16_v52 = vld [vmem:[%s4675_s0 + $0x8] sm:$0xff] }
  0x1d   :  { %3243 = vmatpush3.bf16.msra.mxu1 %v3588_v32  ;;  %3222 = vmatprep.subr.bf16.mxu0 %v3589_v33  ;;  %v3638_v32 = vld [vmem:[%s4674_s1 + $0x258] sm:$0xff]   ;;  %v3652_v47 = vld [vmem:[%s4674_s1 + $0x230] sm:$0xff]  }
  0x1e   :  { %3244 = vmatprep.subr.bf16.mxu1 %v3590_v34  ;;  %v3639_v33 = vld [vmem:[%s4674_s1 + $0x2d8] sm:$0xff]  }
  0x1f   :  { %v3640_v34 = vld [vmem:[%s4674_s1 + $0x218] sm:$0xff]  }
  0x20   :  { %3223 = vmatpush3.bf16.msra.mxu0 %v3591_v36  ;;  %v3641_v36 = vld [vmem:[%s4674_s1 + $0x298] sm:$0xff]  }
  0x21   :  { %3245 = vmatpush3.bf16.msra.mxu1 %v3592_v37  ;;  %3252 = vmatprep.subr.bf16.mxu0 %v3594_v41  ;;  %v3642_v37 = vld [vmem:[%s4674_s1 + $0x260] sm:$0xff]   ;;  %v3646_v41 = vld [vmem:[%s4674_s1 + $0x268] sm:$0xff]  }
  0x22   :  { %3274 = vmatprep.subr.bf16.mxu1 %v3595_v42  ;;  %v3647_v42 = vld [vmem:[%s4674_s1 + $0x2e8] sm:$0xff]  }
  0x23   :  { %2339 = vmatmul.mubr.bf16.vlgmr.msra.gmra.mrb[0].mxu0 %v565_v44  ;;  %v3649_v44 = vld [vmem:[%s4674_s1 + $0x2a8] sm:$0xff]  }
  0x24   :  { %3253 = vmatpush3.bf16.msra.mxu0 %v3596_v46  ;;  %2379 = vmatmul.mubr.bf16.vlgmr.msra.gmra.mrb[0].mxu1 %v587_v50  ;;  %v3651_v46 = vld [vmem:[%s4674_s1 + $0x2f0] sm:$0xff]   ;;  %v3655_v50 = vld [vmem:[%s4674_s1 + $0x2f8] sm:$0xff]  }
  0x25   :  { %3254 = vmatprep.subr.bf16.mxu0 %v3598_v51  ;;  %3275 = vmatpush3.bf16.msra.mxu1 %v3597_v48  ;;  %v3653_v48 = vld [vmem:[%s4674_s1 + $0x2b0] sm:$0xff]   ;;  %v3656_v51 = vld [vmem:[%s4674_s1 + $0x238] sm:$0xff]  }
  0x26   :  { %2418 = vmatprep.mubr.bf16.mxu0 %v586_v54  ;;  %3276 = vmatprep.subr.bf16.mxu1 %v3599_v53  ;;  %v3657_v53 = vld [vmem:[%s4674_s1 + $0x2b8] sm:$0xff]   ;;  %v598_v54 = vrot.slane %v16_v52, %v3932_v35 }
  0x27   :  { %2458 = vmatprep.mubr.bf16.mxu1 %v590_v57 }
  0x28   :  { %3255 = vmatpush3.bf16.msra.mxu0 %v3600_v55  ;;  %v591_v55 = vcombine.high %v16_v52, %v16_v52  ;;  %v606_v57 = vcombine.high %v598_v54, %v598_v54  ;;  %v3707_v52 = vld [vmem:[%s4674_s1 + $0x460] sm:$0xff]  }
  0x29   :  { %3256 = vmatprep.subr.bf16.mxu0 %v3602_v58  ;;  %3277 = vmatpush3.bf16.msra.mxu1 %v3601_v56  ;;  %v3658_v56 = vld [vmem:[%s4674_s1 + $0x340] sm:$0xff]   ;;  %v614_v58 = vrot.slane %v598_v54, %v3932_v35 }
  0x2a   :  { %3278 = vmatprep.subr.bf16.mxu1 %v3603_v59  ;;  %v3659_v59 = vld [vmem:[%s4674_s1 + $0x3c0] sm:$0xff]  }
  0x2b   :  { %v3709_v54 = vld [vmem:[%s4674_s1 + $0x420] sm:$0xff]  }
  0x2c   :  { %3257 = vmatpush3.bf16.msra.mxu0 %v3604_v60  ;;  %v4158_v60 = vrot.slane %v591_v55, %v3932_v35  ;;  %v3710_v55 = vld [vmem:[%s4674_s1 + $0x4a0] sm:$0xff]  }
  0x2d   :  { %3258 = vmatprep.subr.bf16.mxu0 %v3606_v62  ;;  %3279 = vmatpush3.bf16.msra.mxu1 %v3605_v61  ;;  %v3660_v61 = vld [vmem:[%s4674_s1 + $0x300] sm:$0xff]   ;;  %v628_v62 = vrot.slane %v606_v57, %v3932_v35  ;;  %v3712_v57 = vld [vmem:[%s4674_s1 + $0x4e8] sm:$0xff]  }
  0x2e   :  { %3280 = vmatprep.subr.bf16.mxu1 %v3607_v63  ;;  %v3661_v63 = vld [vmem:[%s4674_s1 + $0x380] sm:$0xff]  }
  0x30   :  { %3259 = vmatpush3.bf16.msra.mxu0 %v3608_v0  ;;  %v607_v0 = vcombine.high %v4158_v60, %v4158_v60 }
  0x31   :  { %3260 = vmatprep.subr.bf16.mxu0 %v3610_v2  ;;  %3281 = vmatpush3.bf16.msra.mxu1 %v3609_v1  ;;  %v636_v1 = vcombine.high %v614_v58, %v614_v58  ;;  %v3662_v2 = vld [vmem:[%s4674_s1 + $0x348] sm:$0xff]  }
  0x32   :  { %3282 = vmatprep.subr.bf16.mxu1 %v3611_v3  ;;  %v638_v3 = vcombine.high %v628_v62, %v628_v62 }
  0x34   :  { %3261 = vmatpush3.bf16.msra.mxu0 %v3612_v4  ;;  %v3663_v4 = vld [vmem:[%s4674_s1 + $0x3c8] sm:$0xff]  }
  0x35   :  { %3262 = vmatprep.subr.bf16.mxu0 %v3614_v6  ;;  %3283 = vmatpush3.bf16.msra.mxu1 %v3613_v5  ;;  %v635_v5 = vrot.slane %v607_v0, %v3932_v35  ;;  %v3664_v6 = vld [vmem:[%s4674_s1 + $0x308] sm:$0xff]   ;;  %v3719_v0 = vld [vmem:[%s4674_s1 + $0x478] sm:$0xff]  }
  0x36   :  { %3284 = vmatprep.subr.bf16.mxu1 %v3615_v7  ;;  %v3665_v7 = vld [vmem:[%s4674_s1 + $0x388] sm:$0xff]  }
  0x38   :  { %3263 = vmatpush3.bf16.msra.mxu0 %v3616_v8  ;;  %v639_v8 = vcombine.high %v635_v5, %v635_v5 }
  0x39   :  { %3264 = vmatprep.subr.bf16.mxu0 %v3618_v10  ;;  %3285 = vmatpush3.bf16.msra.mxu1 %v3617_v9  ;;  %v3666_v9 = vld [vmem:[%s4674_s1 + $0x350] sm:$0xff]  }
  0x3a   :  { %3286 = vmatprep.subr.bf16.mxu1 %v3619_v11  ;;  %v3667_v10 = vld [vmem:[%s4674_s1 + $0x3d0] sm:$0xff]  }
  0x3b   :  { %v3668_v11 = vld [vmem:[%s4674_s1 + $0x310] sm:$0xff]  }
  0x3c   :  { %3265 = vmatpush3.bf16.msra.mxu0 %v3620_v12  ;;  %v3669_v12 = vld [vmem:[%s4674_s1 + $0x390] sm:$0xff]  }
  0x3d   :  { %3266 = vmatprep.subr.bf16.mxu0 %v3622_v14  ;;  %3287 = vmatpush3.bf16.msra.mxu1 %v3621_v13  ;;  %v3670_v13 = vld [vmem:[%s4674_s1 + $0x358] sm:$0xff]  }
  0x3e   :  { %3288 = vmatprep.subr.bf16.mxu1 %v3623_v15  ;;  %v3671_v14 = vld [vmem:[%s4674_s1 + $0x3d8] sm:$0xff]  }
  0x3f   :  { %v3672_v15 = vld [vmem:[%s4674_s1 + $0x318] sm:$0xff]  }
  0x40   :  { %3267 = vmatpush3.bf16.msra.mxu0 %v3624_v16  ;;  %v3673_v16 = vld [vmem:[%s4674_s1 + $0x398] sm:$0xff]  }
  0x41   :  { %3296 = vmatprep.subr.bf16.mxu0 %v3626_v19  ;;  %3289 = vmatpush3.bf16.msra.mxu1 %v3625_v17  ;;  %v3674_v17 = vld [vmem:[%s4674_s1 + $0x360] sm:$0xff]  }
  0x42   :  { %3318 = vmatprep.subr.bf16.mxu1 %v3627_v20  ;;  %v3676_v19 = vld [vmem:[%s4674_s1 + $0x320] sm:$0xff]  }
  0x43   :  { %2419 = vmatmul.mubr.bf16.vlgmr.msra.gmra.mrb[4].mxu0 %v572_v18  ;;  %v3675_v18 = vld [vmem:[%s4674_s1 + $0x3e0] sm:$0xff]  }
  0x44   :  { %3297 = vmatpush3.bf16.msra.mxu0 %v3628_v21  ;;  %2459 = vmatmul.mubr.bf16.vlgmr.msra.gmra.mrb[4].mxu1 %v588_v23  ;;  %v3677_v20 = vld [vmem:[%s4674_s1 + $0x3a0] sm:$0xff]   ;;  %v3678_v21 = vld [vmem:[%s4674_s1 + $0x368] sm:$0xff]  }
  0x45   :  { %3298 = vmatprep.subr.bf16.mxu0 %v3630_v24  ;;  %3319 = vmatpush3.bf16.msra.mxu1 %v3629_v22  ;;  %v3679_v22 = vld [vmem:[%s4674_s1 + $0x3e8] sm:$0xff]  }
  0x46   :  { %3320 = vmatprep.subr.bf16.mxu1 %v3631_v25  ;;  %2498 = vmatprep.mubr.bf16.mxu0 %v628_v62  ;;  %v3680_v23 = vld [vmem:[%s4674_s1 + $0x328] sm:$0xff]   ;;  %v3682_v25 = vld [vmem:[%s4674_s1 + $0x370] sm:$0xff]  }
  0x47   :  { %2538 = vmatprep.mubr.bf16.mxu1 %v638_v3  ;;  %v3681_v24 = vld [vmem:[%s4674_s1 + $0x3a8] sm:$0xff]   ;;  %v3717_v62 = vld [vmem:[%s4674_s1 + $0x430] sm:$0xff]  }
  0x48   :  { %3299 = vmatpush3.bf16.msra.mxu0 %v3632_v26  ;;  %v3683_v26 = vld [vmem:[%s4674_s1 + $0x3f0] sm:$0xff]  }
  0x49   :  { %3300 = vmatprep.subr.bf16.mxu0 %v3634_v28  ;;  %3321 = vmatpush3.bf16.msra.mxu1 %v3633_v27  ;;  %v3684_v27 = vld [vmem:[%s4674_s1 + $0x330] sm:$0xff]  }
  0x4a   :  { %3322 = vmatprep.subr.bf16.mxu1 %v3635_v29  ;;  %v3685_v28 = vld [vmem:[%s4674_s1 + $0x3b0] sm:$0xff]   ;;  %v3686_v29 = vld [vmem:[%s4674_s1 + $0x378] sm:$0xff]  }
  0x4b   :  { %v17_v3 = vld [vmem:[%s4675_s0 + $0x10] sm:$0xff] }
  0x4c   :  { %3301 = vmatpush3.bf16.msra.mxu0 %v3636_v30  ;;  %v3687_v30 = vld [vmem:[%s4674_s1 + $0x3f8] sm:$0xff]  }
  0x4d   :  { %3302 = vmatprep.subr.bf16.mxu0 %v3638_v32  ;;  %3323 = vmatpush3.bf16.msra.mxu1 %v3637_v31  ;;  %v3688_v31 = vld [vmem:[%s4674_s1 + $0x338] sm:$0xff]  }
  0x4e   :  { %3324 = vmatprep.subr.bf16.mxu1 %v3639_v33  ;;  %v3689_v32 = vld [vmem:[%s4674_s1 + $0x3b8] sm:$0xff]   ;;  %v621_v33 = vrot.slane %v4158_v60, %v3932_v35  ;;  %v3715_v60 = vld [vmem:[%s4674_s1 + $0x470] sm:$0xff]  }
  0x50   :  { %3303 = vmatpush3.bf16.msra.mxu0 %v3640_v34  ;;  %v3691_v34 = vld [vmem:[%s4674_s1 + $0x440] sm:$0xff]  }
  0x51   :  { %3304 = vmatprep.subr.bf16.mxu0 %v3642_v37  ;;  %3325 = vmatpush3.bf16.msra.mxu1 %v3641_v36  ;;  %v3692_v36 = vld [vmem:[%s4674_s1 + $0x4c0] sm:$0xff]  }
  0x52   :  { %3326 = vmatprep.subr.bf16.mxu1 %v3643_v38  ;;  %v3693_v37 = vld [vmem:[%s4674_s1 + $0x400] sm:$0xff]  }
  0x53   :  { %v3694_v38 = vld [vmem:[%s4674_s1 + $0x480] sm:$0xff]  }
  0x54   :  { %3305 = vmatpush3.bf16.msra.mxu0 %v3644_v39  ;;  %v637_v39 = vcombine.high %v621_v33, %v621_v33 }
  0x55   :  { %3306 = vmatprep.subr.bf16.mxu0 %v3646_v41  ;;  %3327 = vmatpush3.bf16.msra.mxu1 %v3645_v40  ;;  %v3695_v40 = vld [vmem:[%s4674_s1 + $0x448] sm:$0xff]  }
  0x56   :  { %3328 = vmatprep.subr.bf16.mxu1 %v3647_v42  ;;  %v3696_v41 = vld [vmem:[%s4674_s1 + $0x4c8] sm:$0xff]  }
  0x57   :  { %v3697_v42 = vld [vmem:[%s4674_s1 + $0x408] sm:$0xff]  }
  0x58   :  { %3307 = vmatpush3.bf16.msra.mxu0 %v3648_v43  ;;  %v3698_v43 = vld [vmem:[%s4674_s1 + $0x488] sm:$0xff]  }
  0x59   :  { %3308 = vmatprep.subr.bf16.mxu0 %v3650_v45  ;;  %3329 = vmatpush3.bf16.msra.mxu1 %v3649_v44  ;;  %v3699_v44 = vld [vmem:[%s4674_s1 + $0x450] sm:$0xff]  }
  0x5a   :  { %3330 = vmatprep.subr.bf16.mxu1 %v3651_v46  ;;  %v3700_v45 = vld [vmem:[%s4674_s1 + $0x4d0] sm:$0xff]  }
  0x5b   :  { %v3701_v46 = vld [vmem:[%s4674_s1 + $0x410] sm:$0xff]  }
  0x5c   :  { %3309 = vmatpush3.bf16.msra.mxu0 %v3652_v47  ;;  %v3702_v47 = vld [vmem:[%s4674_s1 + $0x490] sm:$0xff]  }
  0x5d   :  { %3310 = vmatprep.subr.bf16.mxu0 %v3654_v49  ;;  %3331 = vmatpush3.bf16.msra.mxu1 %v3653_v48  ;;  %v3703_v48 = vld [vmem:[%s4674_s1 + $0x458] sm:$0xff]  }
  0x5e   :  { %3332 = vmatprep.subr.bf16.mxu1 %v3655_v50  ;;  %v3704_v49 = vld [vmem:[%s4674_s1 + $0x4d8] sm:$0xff]  }
  0x5f   :  { %v3705_v50 = vld [vmem:[%s4674_s1 + $0x418] sm:$0xff]  }
  0x60   :  { %3311 = vmatpush3.bf16.msra.mxu0 %v3656_v51  ;;  %v3706_v51 = vld [vmem:[%s4674_s1 + $0x498] sm:$0xff]  }
  0x61   :  { %3340 = vmatprep.subr.bf16.mxu0 %v3658_v56  ;;  %3333 = vmatpush3.bf16.msra.mxu1 %v3657_v53  ;;  %v3708_v53 = vld [vmem:[%s4674_s1 + $0x4e0] sm:$0xff]   ;;  %v3711_v56 = vld [vmem:[%s4674_s1 + $0x468] sm:$0xff]  }
  0x62   :  { %3362 = vmatprep.subr.bf16.mxu1 %v3659_v59  ;;  %v3714_v59 = vld [vmem:[%s4674_s1 + $0x4a8] sm:$0xff]  }
  0x63   :  { %2499 = vmatmul.mubr.bf16.vlgmr.msra.gmra.mrb[8].mxu0 %v614_v58  ;;  %v3713_v58 = vld [vmem:[%s4674_s1 + $0x428] sm:$0xff]  }
  0x64   :  { %3341 = vmatpush3.bf16.msra.mxu0 %v3660_v61  ;;  %2539 = vmatmul.mubr.bf16.vlgmr.msra.gmra.mrb[8].mxu1 %v636_v1  ;;  %v3716_v61 = vld [vmem:[%s4674_s1 + $0x4f0] sm:$0xff]   ;;  %v3720_v1 = vld [vmem:[%s4674_s1 + $0x4f8] sm:$0xff]  }
  0x65   :  { %3342 = vmatprep.subr.bf16.mxu0 %v3662_v2  ;;  %3363 = vmatpush3.bf16.msra.mxu1 %v3661_v63  ;;  %v3718_v63 = vld [vmem:[%s4674_s1 + $0x4b0] sm:$0xff]   ;;  %v3721_v2 = vld [vmem:[%s4674_s1 + $0x438] sm:$0xff]  }
  0x66   :  { %2578 = vmatprep.mubr.bf16.mxu0 %v635_v5  ;;  %3364 = vmatprep.subr.bf16.mxu1 %v3663_v4  ;;  %v3722_v4 = vld [vmem:[%s4674_s1 + $0x4b8] sm:$0xff]   ;;  %v647_v5 = vrot.slane %v17_v3, %v3932_v35 }
  0x67   :  { %2618 = vmatprep.mubr.bf16.mxu1 %v639_v8 }
  0x68   :  { %3343 = vmatpush3.bf16.msra.mxu0 %v3664_v6  ;;  %v640_v6 = vcombine.high %v17_v3, %v17_v3  ;;  %v655_v8 = vcombine.high %v647_v5, %v647_v5  ;;  %v3772_v3 = vld [vmem:[%s4674_s1 + $0x660] sm:$0xff]  }
  0x69   :  { %3344 = vmatprep.subr.bf16.mxu0 %v3666_v9  ;;  %3365 = vmatpush3.bf16.msra.mxu1 %v3665_v7  ;;  %v3723_v7 = vld [vmem:[%s4674_s1 + $0x540] sm:$0xff]   ;;  %v663_v9 = vrot.slane %v647_v5, %v3932_v35 }
  0x6a   :  { %3366 = vmatprep.subr.bf16.mxu1 %v3667_v10  ;;  %v3724_v10 = vld [vmem:[%s4674_s1 + $0x5c0] sm:$0xff]  }
  0x6b   :  { %v3774_v5 = vld [vmem:[%s4674_s1 + $0x620] sm:$0xff]  }
  0x6c   :  { %3345 = vmatpush3.bf16.msra.mxu0 %v3668_v11  ;;  %v4364_v11 = vrot.slane %v640_v6, %v3932_v35  ;;  %v3775_v6 = vld [vmem:[%s4674_s1 + $0x6a0] sm:$0xff]  }
  0x6d   :  { %3346 = vmatprep.subr.bf16.mxu0 %v3670_v13  ;;  %3367 = vmatpush3.bf16.msra.mxu1 %v3669_v12  ;;  %v3725_v12 = vld [vmem:[%s4674_s1 + $0x500] sm:$0xff]   ;;  %v677_v13 = vrot.slane %v655_v8, %v3932_v35  ;;  %v3777_v8 = vld [vmem:[%s4674_s1 + $0x6e8] sm:$0xff]  }
  0x6e   :  { %3368 = vmatprep.subr.bf16.mxu1 %v3671_v14  ;;  %v3726_v14 = vld [vmem:[%s4674_s1 + $0x580] sm:$0xff]  }
  0x70   :  { %3347 = vmatpush3.bf16.msra.mxu0 %v3672_v15  ;;  %v656_v15 = vcombine.high %v4364_v11, %v4364_v11 }
  0x71   :  { %3348 = vmatprep.subr.bf16.mxu0 %v3674_v17  ;;  %3369 = vmatpush3.bf16.msra.mxu1 %v3673_v16  ;;  %v685_v16 = vcombine.high %v663_v9, %v663_v9  ;;  %v3727_v17 = vld [vmem:[%s4674_s1 + $0x548] sm:$0xff]  }
  0x72   :  { %3370 = vmatprep.subr.bf16.mxu1 %v3675_v18  ;;  %v687_v18 = vcombine.high %v677_v13, %v677_v13 }
  0x74   :  { %3349 = vmatpush3.bf16.msra.mxu0 %v3676_v19  ;;  %v3728_v19 = vld [vmem:[%s4674_s1 + $0x5c8] sm:$0xff]  }
  0x75   :  { %3350 = vmatprep.subr.bf16.mxu0 %v3678_v21  ;;  %3371 = vmatpush3.bf16.msra.mxu1 %v3677_v20  ;;  %v684_v20 = vrot.slane %v656_v15, %v3932_v35  ;;  %v3729_v21 = vld [vmem:[%s4674_s1 + $0x508] sm:$0xff]   ;;  %v3784_v15 = vld [vmem:[%s4674_s1 + $0x678] sm:$0xff]  }
  0x76   :  { %3372 = vmatprep.subr.bf16.mxu1 %v3679_v22  ;;  %v3730_v22 = vld [vmem:[%s4674_s1 + $0x588] sm:$0xff]  }
  0x78   :  { %3351 = vmatpush3.bf16.msra.mxu0 %v3680_v23  ;;  %v688_v23 = vcombine.high %v684_v20, %v684_v20 }
  0x79   :  { %3352 = vmatprep.subr.bf16.mxu0 %v3682_v25  ;;  %3373 = vmatpush3.bf16.msra.mxu1 %v3681_v24  ;;  %v3731_v24 = vld [vmem:[%s4674_s1 + $0x550] sm:$0xff]  }
  0x7a   :  { %3374 = vmatprep.subr.bf16.mxu1 %v3683_v26  ;;  %v3732_v25 = vld [vmem:[%s4674_s1 + $0x5d0] sm:$0xff]  }
  0x7b   :  { %v3733_v26 = vld [vmem:[%s4674_s1 + $0x510] sm:$0xff]  }
  0x7c   :  { %3353 = vmatpush3.bf16.msra.mxu0 %v3684_v27  ;;  %v3734_v27 = vld [vmem:[%s4674_s1 + $0x590] sm:$0xff]  }
  0x7d   :  { %3354 = vmatprep.subr.bf16.mxu0 %v3686_v29  ;;  %3375 = vmatpush3.bf16.msra.mxu1 %v3685_v28  ;;  %v3735_v28 = vld [vmem:[%s4674_s1 + $0x558] sm:$0xff]  }
  0x7e   :  { %3376 = vmatprep.subr.bf16.mxu1 %v3687_v30  ;;  %v3736_v29 = vld [vmem:[%s4674_s1 + $0x5d8] sm:$0xff]  }
  0x7f   :  { %v3737_v30 = vld [vmem:[%s4674_s1 + $0x518] sm:$0xff]  }
  0x80   :  { %3355 = vmatpush3.bf16.msra.mxu0 %v3688_v31  ;;  %v3738_v31 = vld [vmem:[%s4674_s1 + $0x598] sm:$0xff]  }
  0x81   :  { %3384 = vmatprep.subr.bf16.mxu0 %v3691_v34  ;;  %3377 = vmatpush3.bf16.msra.mxu1 %v3689_v32  ;;  %v3739_v32 = vld [vmem:[%s4674_s1 + $0x560] sm:$0xff]  }
  0x82   :  { %3406 = vmatprep.subr.bf16.mxu1 %v3692_v36  ;;  %v3741_v34 = vld [vmem:[%s4674_s1 + $0x520] sm:$0xff]  }
  0x83   :  { %2579 = vmatmul.mubr.bf16.vlgmr.msra.gmra.mrb[12].mxu0 %v621_v33  ;;  %v3740_v33 = vld [vmem:[%s4674_s1 + $0x5e0] sm:$0xff]  }
  0x84   :  { %3385 = vmatpush3.bf16.msra.mxu0 %v3693_v37  ;;  %2619 = vmatmul.mubr.bf16.vlgmr.msra.gmra.mrb[12].mxu1 %v637_v39  ;;  %v3742_v36 = vld [vmem:[%s4674_s1 + $0x5a0] sm:$0xff]   ;;  %v3743_v37 = vld [vmem:[%s4674_s1 + $0x568] sm:$0xff]  }
  0x85   :  { %3386 = vmatprep.subr.bf16.mxu0 %v3695_v40  ;;  %3407 = vmatpush3.bf16.msra.mxu1 %v3694_v38  ;;  %v3744_v38 = vld [vmem:[%s4674_s1 + $0x5e8] sm:$0xff]  }
  0x86   :  { %3408 = vmatprep.subr.bf16.mxu1 %v3696_v41  ;;  %2658 = vmatprep.mubr.bf16.mxu0 %v677_v13  ;;  %v3745_v39 = vld [vmem:[%s4674_s1 + $0x528] sm:$0xff]   ;;  %v3747_v41 = vld [vmem:[%s4674_s1 + $0x570] sm:$0xff]  }
  0x87   :  { %2698 = vmatprep.mubr.bf16.mxu1 %v687_v18  ;;  %v3746_v40 = vld [vmem:[%s4674_s1 + $0x5a8] sm:$0xff]   ;;  %v3782_v13 = vld [vmem:[%s4674_s1 + $0x630] sm:$0xff]   ;;  %v18_v18 = vld [vmem:[%s4675_s0 + $0x18] sm:$0xff] }
  0x88   :  { %3387 = vmatpush3.bf16.msra.mxu0 %v3697_v42  ;;  %v3748_v42 = vld [vmem:[%s4674_s1 + $0x5f0] sm:$0xff]  }
  0x89   :  { %3388 = vmatprep.subr.bf16.mxu0 %v3699_v44  ;;  %3409 = vmatpush3.bf16.msra.mxu1 %v3698_v43  ;;  %v3749_v43 = vld [vmem:[%s4674_s1 + $0x530] sm:$0xff]  }
  0x8a   :  { %3410 = vmatprep.subr.bf16.mxu1 %v3700_v45  ;;  %v3750_v44 = vld [vmem:[%s4674_s1 + $0x5b0] sm:$0xff]   ;;  %v3751_v45 = vld [vmem:[%s4674_s1 + $0x578] sm:$0xff]  }
  0x8c   :  { %3389 = vmatpush3.bf16.msra.mxu0 %v3701_v46  ;;  %v3752_v46 = vld [vmem:[%s4674_s1 + $0x5f8] sm:$0xff]  }
  0x8d   :  { %3390 = vmatprep.subr.bf16.mxu0 %v3703_v48  ;;  %3411 = vmatpush3.bf16.msra.mxu1 %v3702_v47  ;;  %v3753_v47 = vld [vmem:[%s4674_s1 + $0x538] sm:$0xff]  }
  0x8e   :  { %3412 = vmatprep.subr.bf16.mxu1 %v3704_v49  ;;  %v3754_v48 = vld [vmem:[%s4674_s1 + $0x5b8] sm:$0xff]   ;;  %v670_v49 = vrot.slane %v4364_v11, %v3932_v35  ;;  %v3780_v11 = vld [vmem:[%s4674_s1 + $0x670] sm:$0xff]  }
  0x90   :  { %3391 = vmatpush3.bf16.msra.mxu0 %v3705_v50  ;;  %v3756_v50 = vld [vmem:[%s4674_s1 + $0x640] sm:$0xff]  }
  0x91   :  { %3392 = vmatprep.subr.bf16.mxu0 %v3707_v52  ;;  %3413 = vmatpush3.bf16.msra.mxu1 %v3706_v51  ;;  %v3757_v51 = vld [vmem:[%s4674_s1 + $0x6c0] sm:$0xff]  }
  0x92   :  { %3414 = vmatprep.subr.bf16.mxu1 %v3708_v53  ;;  %v3758_v52 = vld [vmem:[%s4674_s1 + $0x600] sm:$0xff]  }
  0x93   :  { %v3759_v53 = vld [vmem:[%s4674_s1 + $0x680] sm:$0xff]  }
  0x94   :  { %3393 = vmatpush3.bf16.msra.mxu0 %v3709_v54  ;;  %v686_v54 = vcombine.high %v670_v49, %v670_v49 }
  0x95   :  { %3394 = vmatprep.subr.bf16.mxu0 %v3711_v56  ;;  %3415 = vmatpush3.bf16.msra.mxu1 %v3710_v55  ;;  %v3760_v55 = vld [vmem:[%s4674_s1 + $0x648] sm:$0xff]  }
  0x96   :  { %3416 = vmatprep.subr.bf16.mxu1 %v3712_v57  ;;  %v3761_v56 = vld [vmem:[%s4674_s1 + $0x6c8] sm:$0xff]  }
  0x97   :  { %v3762_v57 = vld [vmem:[%s4674_s1 + $0x608] sm:$0xff]  }
  0x98   :  { %3395 = vmatpush3.bf16.msra.mxu0 %v3713_v58  ;;  %v3763_v58 = vld [vmem:[%s4674_s1 + $0x688] sm:$0xff]  }
  0x99   :  { %3396 = vmatprep.subr.bf16.mxu0 %v3715_v60  ;;  %3417 = vmatpush3.bf16.msra.mxu1 %v3714_v59  ;;  %v3764_v59 = vld [vmem:[%s4674_s1 + $0x650] sm:$0xff]  }
  0x9a   :  { %3418 = vmatprep.subr.bf16.mxu1 %v3716_v61  ;;  %v3765_v60 = vld [vmem:[%s4674_s1 + $0x6d0] sm:$0xff]  }
  0x9b   :  { %v3766_v61 = vld [vmem:[%s4674_s1 + $0x610] sm:$0xff]  }
  0x9c   :  { %3397 = vmatpush3.bf16.msra.mxu0 %v3717_v62  ;;  %v3767_v62 = vld [vmem:[%s4674_s1 + $0x690] sm:$0xff]  }
  0x9d   :  { %3398 = vmatprep.subr.bf16.mxu0 %v3719_v0  ;;  %3419 = vmatpush3.bf16.msra.mxu1 %v3718_v63  ;;  %v3768_v63 = vld [vmem:[%s4674_s1 + $0x658] sm:$0xff]  }
  0x9e   :  { %3420 = vmatprep.subr.bf16.mxu1 %v3720_v1  ;;  %v3769_v0 = vld [vmem:[%s4674_s1 + $0x6d8] sm:$0xff]  }
  0x9f   :  { %v3770_v1 = vld [vmem:[%s4674_s1 + $0x618] sm:$0xff]  }
  0xa0   :  { %3399 = vmatpush3.bf16.msra.mxu0 %v3721_v2  ;;  %v3771_v2 = vld [vmem:[%s4674_s1 + $0x698] sm:$0xff]  }
  0xa1   :  { %3428 = vmatprep.subr.bf16.mxu0 %v3723_v7  ;;  %3421 = vmatpush3.bf16.msra.mxu1 %v3722_v4  ;;  %v3773_v4 = vld [vmem:[%s4674_s1 + $0x6e0] sm:$0xff]   ;;  %v3776_v7 = vld [vmem:[%s4674_s1 + $0x668] sm:$0xff]  }
  0xa2   :  { %3450 = vmatprep.subr.bf16.mxu1 %v3724_v10  ;;  %v3779_v10 = vld [vmem:[%s4674_s1 + $0x6a8] sm:$0xff]  }
  0xa3   :  { %2659 = vmatmul.mubr.bf16.vlgmr.msra.gmra.mrb[16].mxu0 %v663_v9  ;;  %v3778_v9 = vld [vmem:[%s4674_s1 + $0x628] sm:$0xff]  }
  0xa4   :  { %3429 = vmatpush3.bf16.msra.mxu0 %v3725_v12  ;;  %2699 = vmatmul.mubr.bf16.vlgmr.msra.gmra.mrb[16].mxu1 %v685_v16  ;;  %v3781_v12 = vld [vmem:[%s4674_s1 + $0x6f0] sm:$0xff]   ;;  %v3785_v16 = vld [vmem:[%s4674_s1 + $0x6f8] sm:$0xff]  }
  0xa5   :  { %3430 = vmatprep.subr.bf16.mxu0 %v3727_v17  ;;  %3451 = vmatpush3.bf16.msra.mxu1 %v3726_v14  ;;  %v3783_v14 = vld [vmem:[%s4674_s1 + $0x6b0] sm:$0xff]   ;;  %v3786_v17 = vld [vmem:[%s4674_s1 + $0x638] sm:$0xff]  }
  0xa6   :  { %2738 = vmatprep.mubr.bf16.mxu0 %v684_v20  ;;  %3452 = vmatprep.subr.bf16.mxu1 %v3728_v19  ;;  %v696_v19 = vrot.slane %v18_v18, %v3932_v35  ;;  %v3788_v20 = vld [vmem:[%s4674_s1 + $0x740] sm:$0xff]  }
  0xa7   :  { %2778 = vmatprep.mubr.bf16.mxu1 %v688_v23 }
  0xa8   :  { %3431 = vmatpush3.bf16.msra.mxu0 %v3729_v21  ;;  %v689_v21 = vcombine.high %v18_v18, %v18_v18  ;;  %v704_v23 = vcombine.high %v696_v19, %v696_v19 }
  0xa9   :  { %3432 = vmatprep.subr.bf16.mxu0 %v3731_v24  ;;  %3453 = vmatpush3.bf16.msra.mxu1 %v3730_v22  ;;  %v3787_v22 = vld [vmem:[%s4674_s1 + $0x6b8] sm:$0xff]   ;;  %v712_v24 = vrot.slane %v696_v19, %v3932_v35 }
  0xaa   :  { %3454 = vmatprep.subr.bf16.mxu1 %v3732_v25  ;;  %v3789_v25 = vld [vmem:[%s4674_s1 + $0x7c0] sm:$0xff]  }
  0xac   :  { %3433 = vmatpush3.bf16.msra.mxu0 %v3733_v26  ;;  %v4570_v26 = vrot.slane %v689_v21, %v3932_v35 }
  0xad   :  { %3434 = vmatprep.subr.bf16.mxu0 %v3735_v28  ;;  %3455 = vmatpush3.bf16.msra.mxu1 %v3734_v27  ;;  %v726_v27 = vrot.slane %v704_v23, %v3932_v35  ;;  %v3790_v28 = vld [vmem:[%s4674_s1 + $0x700] sm:$0xff]  }
  0xae   :  { %3456 = vmatprep.subr.bf16.mxu1 %v3736_v29  ;;  %v705_v29 = vcombine.high %v4570_v26, %v4570_v26 }
  0xb0   :  { %3435 = vmatpush3.bf16.msra.mxu0 %v3737_v30  ;;  %v734_v30 = vcombine.high %v712_v24, %v712_v24 }
  0xb1   :  { %3436 = vmatprep.subr.bf16.mxu0 %v3739_v32  ;;  %3457 = vmatpush3.bf16.msra.mxu1 %v3738_v31  ;;  %v3792_v31 = vld [vmem:[%s4674_s1 + $0x748] sm:$0xff]   ;;  %v736_v32 = vcombine.high %v726_v27, %v726_v27 }
  0xb2   :  { %3458 = vmatprep.subr.bf16.mxu1 %v3740_v33  ;;  %v3791_v33 = vld [vmem:[%s4674_s1 + $0x780] sm:$0xff]  }
  0xb4   :  { %3437 = vmatpush3.bf16.msra.mxu0 %v3741_v34  ;;  %v733_v34 = vrot.slane %v705_v29, %v3932_v35 }
  0xb5   :  { %3438 = vmatprep.subr.bf16.mxu0 %v3743_v37  ;;  %3459 = vmatpush3.bf16.msra.mxu1 %v3742_v36  ;;  %v3793_v36 = vld [vmem:[%s4674_s1 + $0x7c8] sm:$0xff]  }
  0xb6   :  { %3460 = vmatprep.subr.bf16.mxu1 %v3744_v38  ;;  %v3794_v37 = vld [vmem:[%s4674_s1 + $0x708] sm:$0xff]   ;;  %v737_v38 = vcombine.high %v733_v34, %v733_v34 }
  0xb8   :  { %3439 = vmatpush3.bf16.msra.mxu0 %v3745_v39  ;;  %v3796_v39 = vld [vmem:[%s4674_s1 + $0x750] sm:$0xff]  }
  0xb9   :  { %3440 = vmatprep.subr.bf16.mxu0 %v3747_v41  ;;  %3461 = vmatpush3.bf16.msra.mxu1 %v3746_v40  ;;  %v3795_v40 = vld [vmem:[%s4674_s1 + $0x788] sm:$0xff]   ;;  %v3797_v41 = vld [vmem:[%s4674_s1 + $0x7d0] sm:$0xff]  }
  0xba   :  { %3462 = vmatprep.subr.bf16.mxu1 %v3748_v42  ;;  %v3798_v42 = vld [vmem:[%s4674_s1 + $0x710] sm:$0xff]  }
  0xbc   :  { %3441 = vmatpush3.bf16.msra.mxu0 %v3749_v43  ;;  %v3800_v43 = vld [vmem:[%s4674_s1 + $0x758] sm:$0xff]  }
  0xbd   :  { %3442 = vmatprep.subr.bf16.mxu0 %v3751_v45  ;;  %3463 = vmatpush3.bf16.msra.mxu1 %v3750_v44  ;;  %v3799_v44 = vld [vmem:[%s4674_s1 + $0x790] sm:$0xff]   ;;  %v3801_v45 = vld [vmem:[%s4674_s1 + $0x7d8] sm:$0xff]  }
  0xbe   :  { %3464 = vmatprep.subr.bf16.mxu1 %v3752_v46  ;;  %v3802_v46 = vld [vmem:[%s4674_s1 + $0x718] sm:$0xff]  }
  0xc0   :  { %3443 = vmatpush3.bf16.msra.mxu0 %v3753_v47  ;;  %v3804_v47 = vld [vmem:[%s4674_s1 + $0x760] sm:$0xff]  }
  0xc1   :  { %3472 = vmatprep.subr.bf16.mxu0 %v3756_v50  ;;  %3465 = vmatpush3.bf16.msra.mxu1 %v3754_v48  ;;  %v3803_v48 = vld [vmem:[%s4674_s1 + $0x798] sm:$0xff]   ;;  %v3806_v50 = vld [vmem:[%s4674_s1 + $0x720] sm:$0xff]  }
  0xc2   :  { %3494 = vmatprep.subr.bf16.mxu1 %v3757_v51  ;;  %v3808_v51 = vld [vmem:[%s4674_s1 + $0x768] sm:$0xff]  }
  0xc3   :  { %2739 = vmatmul.mubr.bf16.vlgmr.msra.gmra.mrb[20].mxu0 %v670_v49  ;;  %v3805_v49 = vld [vmem:[%s4674_s1 + $0x7e0] sm:$0xff]  }
  0xc4   :  { %3473 = vmatpush3.bf16.msra.mxu0 %v3758_v52  ;;  %2779 = vmatmul.mubr.bf16.vlgmr.msra.gmra.mrb[20].mxu1 %v686_v54  ;;  %v3807_v52 = vld [vmem:[%s4674_s1 + $0x7a0] sm:$0xff]  }
  0xc5   :  { %3474 = vmatprep.subr.bf16.mxu0 %v3760_v55  ;;  %3495 = vmatpush3.bf16.msra.mxu1 %v3759_v53  ;;  %v3809_v53 = vld [vmem:[%s4674_s1 + $0x7e8] sm:$0xff]   ;;  %v2951_v54 = vld [vmem:[%s4676_s2] ss:$0 sm:$0xff] }
  0xc6   :  { %3496 = vmatprep.subr.bf16.mxu1 %v3761_v56  ;;  %2818 = vmatprep.mubr.bf16.mxu0 %v726_v27  ;;  %v3810_v55 = vld [vmem:[%s4674_s1 + $0x728] sm:$0xff]  }
  0xc7   :  { %2858 = vmatprep.mubr.bf16.mxu1 %v736_v32 }
  0xc8   :  { %3475 = vmatpush3.bf16.msra.mxu0 %v3762_v57  ;;  %v3812_v57 = vld [vmem:[%s4674_s1 + $0x770] sm:$0xff]  }
  0xc9   :  { %3476 = vmatprep.subr.bf16.mxu0 %v3764_v59  ;;  %3497 = vmatpush3.bf16.msra.mxu1 %v3763_v58  ;;  %v3811_v59 = vld [vmem:[%s4674_s1 + $0x7a8] sm:$0xff]  }
  0xca   :  { %3498 = vmatprep.subr.bf16.mxu1 %v3765_v60 }
  0xcc   :  { %3477 = vmatpush3.bf16.msra.mxu0 %v3766_v61 }
  0xcd   :  { %3478 = vmatprep.subr.bf16.mxu0 %v3768_v63  ;;  %3499 = vmatpush3.bf16.msra.mxu1 %v3767_v62  ;;  %v3813_v63 = vld [vmem:[%s4674_s1 + $0x7f0] sm:$0xff]  }
  0xce   :  { %3500 = vmatprep.subr.bf16.mxu1 %v3769_v0  ;;  %v3814_v0 = vld [vmem:[%s4674_s1 + $0x730] sm:$0xff]  }
  0xd0   :  { %3479 = vmatpush3.bf16.msra.mxu0 %v3770_v1 }
  0xd1   :  { %3480 = vmatprep.subr.bf16.mxu0 %v3772_v3  ;;  %3501 = vmatpush3.bf16.msra.mxu1 %v3771_v2 }
  0xd2   :  { %3502 = vmatprep.subr.bf16.mxu1 %v3773_v4 }
  0xd4   :  { %3481 = vmatpush3.bf16.msra.mxu0 %v3774_v5 }
  0xd5   :  { %3482 = vmatprep.subr.bf16.mxu0 %v3776_v7  ;;  %3503 = vmatpush3.bf16.msra.mxu1 %v3775_v6  ;;  %v3816_v6 = vld [vmem:[%s4674_s1 + $0x778] sm:$0xff]  }
  0xd6   :  { %3504 = vmatprep.subr.bf16.mxu1 %v3777_v8  ;;  %v3815_v8 = vld [vmem:[%s4674_s1 + $0x7b0] sm:$0xff]  }
  0xd8   :  { %3483 = vmatpush3.bf16.msra.mxu0 %v3778_v9 }
  0xd9   :  { %3484 = vmatprep.subr.bf16.mxu0 %v3780_v11  ;;  %3505 = vmatpush3.bf16.msra.mxu1 %v3779_v10  ;;  %v3817_v10 = vld [vmem:[%s4674_s1 + $0x7f8] sm:$0xff]  }
  0xda   :  { %3506 = vmatprep.subr.bf16.mxu1 %v3781_v12  ;;  %v3818_v11 = vld [vmem:[%s4674_s1 + $0x738] sm:$0xff]   ;;  %v719_v12 = vrot.slane %v4570_v26, %v3932_v35 }
  0xdc   :  { %3485 = vmatpush3.bf16.msra.mxu0 %v3782_v13  ;;  %v3819_v13 = vld [vmem:[%s4674_s1 + $0x7b8] sm:$0xff]  }
  0xdd   :  { %3486 = vmatprep.subr.bf16.mxu0 %v3784_v15  ;;  %3507 = vmatpush3.bf16.msra.mxu1 %v3783_v14  ;;  %v735_v14 = vcombine.high %v719_v12, %v719_v12 }
  0xde   :  { %3508 = vmatprep.subr.bf16.mxu1 %v3785_v16 }
  0xe0   :  { %3487 = vmatpush3.bf16.msra.mxu0 %v3786_v17 }
  0xe1   :  { %3516 = vmatprep.subr.bf16.mxu0 %v3788_v20  ;;  %3509 = vmatpush3.bf16.msra.mxu1 %v3787_v22 }
  0xe2   :  { %3538 = vmatprep.subr.bf16.mxu1 %v3789_v25 }
  0xe3   :  { %2819 = vmatmul.mubr.bf16.vlgmr.msra.gmra.mrb[24].mxu0 %v712_v24 }
  0xe4   :  { %3517 = vmatpush3.bf16.msra.mxu0 %v3790_v28  ;;  %2859 = vmatmul.mubr.bf16.vlgmr.msra.gmra.mrb[24].mxu1 %v734_v30 }
  0xe5   :  { %3518 = vmatprep.subr.bf16.mxu0 %v3792_v31  ;;  %3539 = vmatpush3.bf16.msra.mxu1 %v3791_v33 }
  0xe6   :  { %2898 = vmatprep.mubr.bf16.mxu0 %v733_v34  ;;  %3540 = vmatprep.subr.bf16.mxu1 %v3793_v36 }
  0xe7   :  { %2938 = vmatprep.mubr.bf16.mxu1 %v737_v38 }
  0xe8   :  { %3519 = vmatpush3.bf16.msra.mxu0 %v3794_v37 }
  0xe9   :  { %3520 = vmatprep.subr.bf16.mxu0 %v3796_v39  ;;  %3541 = vmatpush3.bf16.msra.mxu1 %v3795_v40 }
  0xea   :  { %3542 = vmatprep.subr.bf16.mxu1 %v3797_v41 }
  0xec   :  { %3521 = vmatpush3.bf16.msra.mxu0 %v3798_v42 }
  0xed   :  { %3522 = vmatprep.subr.bf16.mxu0 %v3800_v43  ;;  %3543 = vmatpush3.bf16.msra.mxu1 %v3799_v44 }
  0xee   :  { %3544 = vmatprep.subr.bf16.mxu1 %v3801_v45 }
  0xf0   :  { %3523 = vmatpush3.bf16.msra.mxu0 %v3802_v46 }
  0xf1   :  { %3524 = vmatprep.subr.bf16.mxu0 %v3804_v47  ;;  %3545 = vmatpush3.bf16.msra.mxu1 %v3803_v48 }
  0xf2   :  { %3546 = vmatprep.subr.bf16.mxu1 %v3805_v49 }
  0xf4   :  { %3525 = vmatpush3.bf16.msra.mxu0 %v3806_v50 }
  0xf5   :  { %3526 = vmatprep.subr.bf16.mxu0 %v3808_v51  ;;  %3547 = vmatpush3.bf16.msra.mxu1 %v3807_v52 }
  0xf6   :  { %v3224_v56 = vpop.f32.mrb[0].mxu0  ;;  %3548 = vmatprep.subr.bf16.mxu1 %v3809_v53 }
  0xf7   :  { %v3225_v58 = vpop.f32.mrb[1].mxu0  ;;  %v3246_v60 = vpop.f32.mrb[0].mxu1 }
  0xf8   :  { %v3226_v61 = vadd.f32 %v3225_v58, %v3224_v56  ;;  %v3227_v62 = vpop.f32.mrb[2].mxu0  ;;  %v3247_v1 = vpop.f32.mrb[1].mxu1  ;;  %3527 = vmatpush3.bf16.msra.mxu0 %v3810_v55 }
  0xf9   :  { %v3228_v2 = vpop.f32.mrb[3].mxu0  ;;  %v3248_v4 = vadd.f32 %v3247_v1, %v3246_v60  ;;  %v3249_v5 = vpop.f32.mrb[2].mxu1  ;;  %3528 = vmatprep.subr.bf16.mxu0 %v3812_v57  ;;  %3549 = vmatpush3.bf16.msra.mxu1 %v3811_v59 }
  0xfa   :  { %v2341_v3 = vadd.f32 %v3226_v61, %v2951_v54  ;;  %v3250_v7 = vpop.f32.mrb[3].mxu1  ;;  %3550 = vmatprep.subr.bf16.mxu1 %v3813_v63 }
  0xfc   :  { %v2381_v9 = vadd.f32 %v3248_v4, %v2341_v3  ;;  %3529 = vmatpush3.bf16.msra.mxu0 %v3814_v0 }
  0xfd   :  { %3530 = vmatprep.subr.bf16.mxu0 %v3816_v6  ;;  %3551 = vmatpush3.bf16.msra.mxu1 %v3815_v8 }
  0xfe   :  { %3552 = vmatprep.subr.bf16.mxu1 %v3817_v10 }
 0x100   :  { %3531 = vmatpush3.bf16.msra.mxu0 %v3818_v11 }
 0x101   :  { %3553 = vmatpush3.bf16.msra.mxu1 %v3819_v13 }
 0x103   :  { %2899 = vmatmul.mubr.bf16.vlgmr.msra.gmra.mrb[28].mxu0 %v719_v12 }
 0x104   :  { %2939 = vmatmul.mubr.bf16.vlgmr.msra.gmra.mrb[28].mxu1 %v735_v14 }
 0x116   :  { %v3268_v15 = vpop.f32.mrb[4].mxu0 }
 0x117   :  { %v3269_v16 = vpop.f32.mrb[5].mxu0  ;;  %v3290_v17 = vpop.f32.mrb[4].mxu1 }
 0x118   :  { %v3270_v18 = vadd.f32 %v3269_v16, %v3268_v15  ;;  %v3271_v19 = vpop.f32.mrb[6].mxu0  ;;  %v3291_v20 = vpop.f32.mrb[5].mxu1 }
 0x119   :  { %v3272_v21 = vpop.f32.mrb[7].mxu0  ;;  %v3292_v35 = vadd.f32 %v3291_v20, %v3290_v17  ;;  %v3293_v23 = vpop.f32.mrb[6].mxu1 }
 0x11a   :  { %v2421_v22 = vadd.f32 %v3270_v18, %v2381_v9  ;;  %v3294_v24 = vpop.f32.mrb[7].mxu1 }
 0x11c   :  { %v2461_v25 = vadd.f32 %v3292_v35, %v2421_v22 }
 0x136   :  { %v3312_v26 = vpop.f32.mrb[8].mxu0 }
 0x137   :  { %v3313_v27 = vpop.f32.mrb[9].mxu0  ;;  %v3334_v28 = vpop.f32.mrb[8].mxu1 }
 0x138   :  { %v3314_v29 = vadd.f32 %v3313_v27, %v3312_v26  ;;  %v3315_v30 = vpop.f32.mrb[10].mxu0  ;;  %v3335_v31 = vpop.f32.mrb[9].mxu1 }
 0x139   :  { %v3316_v32 = vpop.f32.mrb[11].mxu0  ;;  %v3336_v34 = vadd.f32 %v3335_v31, %v3334_v28  ;;  %v3337_v36 = vpop.f32.mrb[10].mxu1 }
 0x13a   :  { %v2501_v33 = vadd.f32 %v3314_v29, %v2461_v25  ;;  %v3338_v37 = vpop.f32.mrb[11].mxu1 }
 0x13c   :  { %v2541_v38 = vadd.f32 %v3336_v34, %v2501_v33 }
 0x156   :  { %v3356_v39 = vpop.f32.mrb[12].mxu0 }
 0x157   :  { %v3357_v40 = vpop.f32.mrb[13].mxu0  ;;  %v3378_v41 = vpop.f32.mrb[12].mxu1 }
 0x158   :  { %v3358_v42 = vadd.f32 %v3357_v40, %v3356_v39  ;;  %v3359_v43 = vpop.f32.mrb[14].mxu0  ;;  %v3379_v44 = vpop.f32.mrb[13].mxu1 }
 0x159   :  { %v3360_v45 = vpop.f32.mrb[15].mxu0  ;;  %v3380_v47 = vadd.f32 %v3379_v44, %v3378_v41  ;;  %v3381_v48 = vpop.f32.mrb[14].mxu1 }
 0x15a   :  { %v2581_v46 = vadd.f32 %v3358_v42, %v2541_v38  ;;  %v3382_v49 = vpop.f32.mrb[15].mxu1 }
 0x15c   :  { %v2621_v50 = vadd.f32 %v3380_v47, %v2581_v46 }
 0x176   :  { %v3400_v51 = vpop.f32.mrb[16].mxu0 }
 0x177   :  { %v3401_v52 = vpop.f32.mrb[17].mxu0  ;;  %v3422_v53 = vpop.f32.mrb[16].mxu1 }
 0x178   :  { %v3402_v54 = vadd.f32 %v3401_v52, %v3400_v51  ;;  %v3403_v55 = vpop.f32.mrb[18].mxu0  ;;  %v3423_v56 = vpop.f32.mrb[17].mxu1 }
 0x179   :  { %v3404_v57 = vpop.f32.mrb[19].mxu0  ;;  %v3424_v59 = vadd.f32 %v3423_v56, %v3422_v53  ;;  %v3425_v60 = vpop.f32.mrb[18].mxu1 }
 0x17a   :  { %v2661_v58 = vadd.f32 %v3402_v54, %v2621_v50  ;;  %v3426_v61 = vpop.f32.mrb[19].mxu1 }
 0x17c   :  { %v2701_v62 = vadd.f32 %v3424_v59, %v2661_v58 }
 0x196   :  { %v3444_v63 = vpop.f32.mrb[20].mxu0 }
 0x197   :  { %v3445_v0 = vpop.f32.mrb[21].mxu0  ;;  %v3466_v1 = vpop.f32.mrb[20].mxu1 }
 0x198   :  { %v3446_v2 = vadd.f32 %v3445_v0, %v3444_v63  ;;  %v3447_v3 = vpop.f32.mrb[22].mxu0  ;;  %v3467_v4 = vpop.f32.mrb[21].mxu1 }
 0x199   :  { %v3448_v5 = vpop.f32.mrb[23].mxu0  ;;  %v3468_v7 = vadd.f32 %v3467_v4, %v3466_v1  ;;  %v3469_v8 = vpop.f32.mrb[22].mxu1 }
 0x19a   :  { %v2741_v6 = vadd.f32 %v3446_v2, %v2701_v62  ;;  %v3470_v9 = vpop.f32.mrb[23].mxu1 }
 0x19c   :  { %v2781_v10 = vadd.f32 %v3468_v7, %v2741_v6 }
 0x1b6   :  { %v3488_v11 = vpop.f32.mrb[24].mxu0 }
 0x1b7   :  { %v3489_v12 = vpop.f32.mrb[25].mxu0  ;;  %v3510_v13 = vpop.f32.mrb[24].mxu1 }
 0x1b8   :  { %v3490_v14 = vadd.f32 %v3489_v12, %v3488_v11  ;;  %v3491_v15 = vpop.f32.mrb[26].mxu0  ;;  %v3511_v16 = vpop.f32.mrb[25].mxu1 }
 0x1b9   :  { %v3492_v17 = vpop.f32.mrb[27].mxu0  ;;  %v3512_v19 = vadd.f32 %v3511_v16, %v3510_v13  ;;  %v3513_v20 = vpop.f32.mrb[26].mxu1 }
 0x1ba   :  { %v2821_v18 = vadd.f32 %v3490_v14, %v2781_v10  ;;  %v3514_v21 = vpop.f32.mrb[27].mxu1 }
 0x1bc   :  { %v2861_v22 = vadd.f32 %v3512_v19, %v2821_v18 }
 0x1d6   :  { %v3532_v35 = vpop.f32.mrb[28].mxu0 }
 0x1d7   :  { %v3533_v23 = vpop.f32.mrb[29].mxu0  ;;  %v3554_v24 = vpop.f32.mrb[28].mxu1 }
 0x1d8   :  { %v3534_v25 = vadd.f32 %v3533_v23, %v3532_v35  ;;  %v3535_v26 = vpop.f32.mrb[30].mxu0  ;;  %v3555_v27 = vpop.f32.mrb[29].mxu1 }
 0x1d9   :  { %v3536_v28 = vpop.f32.mrb[31].mxu0  ;;  %v3556_v30 = vadd.f32 %v3555_v27, %v3554_v24  ;;  %v3557_v31 = vpop.f32.mrb[30].mxu1 }
 0x1da   :  { %v2901_v29 = vadd.f32 %v3534_v25, %v2861_v22  ;;  %v3558_v32 = vpop.f32.mrb[31].mxu1 }
 0x1dc   :  { %v2941_v33 = vadd.f32 %v3556_v30, %v2901_v29 }
 0x1de   :  { %2946 = vst [vmem:[%s4677_s3] sm:$0x3] %v2941_v33 }

</bundles_post_ra>
